<compile_context>
chip_gen: v5e
topology: v5e:2x2
jax: 0.10.0
libtpu: 0.0.40
codegen_flags: <defaults>
</compile_context>

<pallas_src>
import jax
import jax.numpy as jnp
from jax.experimental import pallas as pl
from jax.experimental.pallas import tpu as pltpu


def _nonlocal_kernel(x_ref, w3_ref, b3_ref, ww_ref, bw_ref, g_ref, be_ref, out_ref):
    """One block of `bblk` batch elements: full non-local block."""
    bb, c, l = x_ref.shape
    ci = w3_ref.shape[1] // 3
    nkv = l // 2
    inv_std = (1.0 + 1e-5) ** -0.5          # BN eval mode: running_mean=0, running_var=1
    bf = jnp.bfloat16

    # NCL -> NLC inside the kernel (2-D XLU transposes); stack rows for the projections.
    xt = [x_ref[i].T for i in range(bb)]                                   # bb x (l, c) f32
    x2 = xt[0] if bb == 1 else jnp.concatenate(xt, axis=0)                 # (bb*l, c)

    # Fused theta|origin|phi 1x1 convs: one MXU pass, bf16 operands, f32 accumulation.
    proj = jnp.dot(x2.astype(bf), w3_ref[...],
                   preferred_element_type=jnp.float32) + b3_ref[...]       # (bb*l, 3*ci)

    theta_all = proj[:, :ci]                                               # (bb*l, ci)
    # MaxPool1d(kernel=2, stride=2) on origin & phi jointly, in registers.
    pooled = jnp.max(proj[:, ci:].reshape(bb * nkv, 2, 2 * ci), axis=1)    # (bb*nkv, 2*ci)
    f_x_all = pooled[:, :ci]                                               # origin (pooled)
    phi_all = pooled[:, ci:]                                               # phi    (pooled)

    ys = []
    for i in range(bb):                                                    # small, unrolled
        th = theta_all[i * l:(i + 1) * l].astype(bf)                       # (l, ci)
        ph = phi_all[i * nkv:(i + 1) * nkv].astype(bf)                     # (nkv, ci)
        fx = f_x_all[i * nkv:(i + 1) * nkv].astype(bf)                     # (nkv, ci)
        # scores: contract the channel dim of both operands (no explicit transpose)
        f = jax.lax.dot_general(th, ph, (((1,), (1,)), ((), ())),
                                preferred_element_type=jnp.float32)        # (l, nkv)
        f = f - jnp.max(f, axis=-1, keepdims=True)
        e = jnp.exp(f)
        attn = e * pl.reciprocal(jnp.sum(e, axis=-1, keepdims=True), approx=True)
        ys.append(jnp.dot(attn.astype(bf), fx,
                          preferred_element_type=jnp.float32))             # (l, ci)
    y = ys[0] if bb == 1 else jnp.concatenate(ys, axis=0)                  # (bb*l, ci)

    # W (1x1 conv Ci->C) + BatchNorm1d (eval mode) + residual, epilogue in f32.
    wy = jnp.dot(y.astype(bf), ww_ref[...],
                 preferred_element_type=jnp.float32) + bw_ref[...]         # (bb*l, c)
    bn = g_ref[...] * (wy * inv_std) + be_ref[...]
    for i in range(bb):
        out_ref[i] = (bn[i * l:(i + 1) * l] + xt[i]).T                     # (c, l) lane-dense


def _pick_block_batch(batch, length):
    """Batch elements per grid step: >=256 projection rows if possible, but keep
    >=2 grid steps when the batch allows (v7x has 2 TensorCores)."""
    divisors = [d for d in range(1, batch + 1) if batch % d == 0]
    cands = [d for d in divisors if d * length >= 256] or [divisors[-1]]
    bblk = cands[0]
    while bblk > 1 and batch // bblk < 2:
        bblk = max(d for d in divisors if d < bblk)
    return bblk


def nonlocal1d_forward(x, params):
    """x: (B, C, L) float32, PyTorch NCL layout.  Returns (B, C, L) float32."""
    B, C, L = x.shape
    Ci = params["wo"].shape[1]
    assert L % 2 == 0, "L must be even for MaxPool1d(kernel_size=2)"
    bblk = _pick_block_batch(B, L)
    grid = (B // bblk,)
    nkv = L // 2

    # Fuse the three projection weights: [theta | origin | phi] -> (C, 3*Ci), bf16.
    w3 = jnp.concatenate([params["wt"], params["wo"], params["wp"]], axis=1).astype(jnp.bfloat16)
    b3 = jnp.concatenate([params["bt"], params["bo"], params["bp"]], axis=1).astype(jnp.float32)
    ww = params["wW"].astype(jnp.bfloat16)
    bw = params["bW"].astype(jnp.float32)
    gamma = params["gamma"].astype(jnp.float32)
    beta = params["beta"].astype(jnp.float32)

    cost = pl.CostEstimate(
        flops=2 * B * L * Ci * (4 * C + L),
        transcendentals=B * L * (nkv + 1),
        bytes_accessed=2 * B * C * L * 4 + (C * 3 * Ci + Ci * C) * 2 + 6 * C * 4,
    )

    weight_specs = [
        pl.BlockSpec((C, 3 * Ci), lambda b: (0, 0)),   # w3 (bf16)
        pl.BlockSpec((1, 3 * Ci), lambda b: (0, 0)),   # b3
        pl.BlockSpec((Ci, C), lambda b: (0, 0)),       # wW (bf16)
        pl.BlockSpec((1, C), lambda b: (0, 0)),        # bW
        pl.BlockSpec((1, C), lambda b: (0, 0)),        # gamma
        pl.BlockSpec((1, C), lambda b: (0, 0)),        # beta
    ]

    return pl.pallas_call(
        _nonlocal_kernel,
        out_shape=jax.ShapeDtypeStruct((B, C, L), jnp.float32),
        grid_spec=pltpu.PrefetchScalarGridSpec(
            num_scalar_prefetch=0,
            grid=grid,
            in_specs=[pl.BlockSpec((bblk, C, L), lambda b: (b, 0, 0))] + weight_specs,
            out_specs=pl.BlockSpec((bblk, C, L), lambda b: (b, 0, 0)),
        ),
        compiler_params=pltpu.CompilerParams(
            dimension_semantics=("parallel",),
            vmem_limit_bytes=32 * 1024 * 1024,
        ),
        cost_estimate=cost,
    )(x.astype(jnp.float32), w3, b3, ww, bw, gamma, beta)


def nonlocal1d_reference(x, params):
    """Plain-JAX reference with the same bf16-matmul / f32-accumulate recipe."""
    bf = jnp.bfloat16
    B, C, L = x.shape
    Ci = params["wo"].shape[1]
    inv_std = (1.0 + 1e-5) ** -0.5
    xt = jnp.transpose(x, (0, 2, 1)).astype(jnp.float32)                  # (B, L, C)
    xb = xt.astype(bf)

    def proj(w, b):
        return jnp.einsum("blc,cd->bld", xb, w.astype(bf),
                          preferred_element_type=jnp.float32) + b

    fo = proj(params["wo"], params["bo"])
    th = proj(params["wt"], params["bt"])
    ph = proj(params["wp"], params["bp"])
    f_x = jnp.max(fo.reshape(B, L // 2, 2, Ci), axis=2)                   # MaxPool1d(2)
    phi = jnp.max(ph.reshape(B, L // 2, 2, Ci), axis=2)
    f = jnp.einsum("bqd,bkd->bqk", th.astype(bf), phi.astype(bf),
                   preferred_element_type=jnp.float32)
    attn = jax.nn.softmax(f, axis=-1)
    y = jnp.einsum("bqk,bkd->bqd", attn.astype(bf), f_x.astype(bf),
                   preferred_element_type=jnp.float32)
    wy = jnp.einsum("bld,dc->blc", y.astype(bf), params["wW"].astype(bf),
                    preferred_element_type=jnp.float32) + params["bW"]
    bn = params["gamma"] * (wy * inv_std) + params["beta"]
    return jnp.transpose(bn + xt, (0, 2, 1))


def make_params(key, in_feat, inter_feat):
    """Conv1d weights U(-1/sqrt(fan_in), 1/sqrt(fan_in)); BN gamma/beta zero (module init)."""
    ks = jax.random.split(key, 8)

    def u(k, fan_in, shape):
        bound = 1.0 / (fan_in ** 0.5)
        return jax.random.uniform(k, shape, jnp.float32, -bound, bound)

    return {
        "wo": u(ks[0], in_feat, (in_feat, inter_feat)),
        "bo": u(ks[1], in_feat, (1, inter_feat)),
        "wt": u(ks[2], in_feat, (in_feat, inter_feat)),
        "bt": u(ks[3], in_feat, (1, inter_feat)),
        "wp": u(ks[4], in_feat, (in_feat, inter_feat)),
        "bp": u(ks[5], in_feat, (1, inter_feat)),
        "wW": u(ks[6], inter_feat, (inter_feat, in_feat)),
        "bW": u(ks[7], inter_feat, (1, in_feat)),
        "gamma": jnp.zeros((1, in_feat), jnp.float32),   # nn.init.constant_(W[1].weight, 0)
        "beta": jnp.zeros((1, in_feat), jnp.float32),    # nn.init.constant_(W[1].bias, 0)
    }


if __name__ == "__main__":
    B, C, L = 4, 64, 128        # in_feat=64 (NONLocalG1D default), L multiple of 128
    inter = 32                  # inter_feat=32

    key = jax.random.PRNGKey(0)
    kx, kp, kg1, kg2 = jax.random.split(key, 4)
    x = jax.random.normal(kx, (B, C, L), jnp.float32)
    params = make_params(kp, C, inter)

    # 1) Module-init semantics: BN gamma = beta = 0 -> block is the identity residual.
    out = jax.block_until_ready(nonlocal1d_forward(x, params))
    assert out.shape == (B, C, L)
    assert jnp.allclose(out, x, atol=1e-5, rtol=1e-5)

    # 2) Exercise the full attention datapath with non-trivial BN affine parameters.
    params_nz = dict(params)
    params_nz["gamma"] = jax.random.normal(kg1, (1, C), jnp.float32)
    params_nz["beta"] = jax.random.normal(kg2, (1, C), jnp.float32)
    out_nz = jax.block_until_ready(nonlocal1d_forward(x, params_nz))
    ref_nz = jax.block_until_ready(nonlocal1d_reference(x, params_nz))
    max_err = float(jnp.max(jnp.abs(out_nz - ref_nz)))
    assert jnp.allclose(out_nz, ref_nz, atol=5e-2, rtol=5e-2), f"max abs err {max_err}"

    print("KERNEL_OK")
</pallas_src>

<mosaic_0001>
module attributes {stable_mosaic.version = 11 : i64} {
  func.func @_nonlocal_kernel(%arg0: i32, %arg1: memref<2x64x128xf32, #tpu.memory_space<vmem>>, %arg2: memref<64x96xbf16, #tpu.memory_space<vmem>>, %arg3: memref<1x96xf32, #tpu.memory_space<vmem>>, %arg4: memref<32x64xbf16, #tpu.memory_space<vmem>>, %arg5: memref<1x64xf32, #tpu.memory_space<vmem>>, %arg6: memref<1x64xf32, #tpu.memory_space<vmem>>, %arg7: memref<1x64xf32, #tpu.memory_space<vmem>>, %arg8: memref<2x64x128xf32, #tpu.memory_space<vmem>>) attributes {dimension_semantics = [#tpu.dimension_semantics<parallel>], iteration_bounds = array<i64: 2>, scalar_prefetch = 0 : i64, scratch_operands = 0 : i64, tpu.core_type = #tpu.core_type<tc>, window_params = [{transform_indices = @transform_0, window_bounds = array<i64: 2, 64, 128>}, {pipeline_mode = #tpu.pipeline_mode<synchronous>, transform_indices = @transform_1, window_bounds = array<i64: 64, 96>}, {pipeline_mode = #tpu.pipeline_mode<synchronous>, transform_indices = @transform_2, window_bounds = array<i64: 1, 96>}, {pipeline_mode = #tpu.pipeline_mode<synchronous>, transform_indices = @transform_3, window_bounds = array<i64: 32, 64>}, {pipeline_mode = #tpu.pipeline_mode<synchronous>, transform_indices = @transform_4, window_bounds = array<i64: 1, 64>}, {pipeline_mode = #tpu.pipeline_mode<synchronous>, transform_indices = @transform_5, window_bounds = array<i64: 1, 64>}, {pipeline_mode = #tpu.pipeline_mode<synchronous>, transform_indices = @transform_6, window_bounds = array<i64: 1, 64>}, {transform_indices = @transform_7, window_bounds = array<i64: 2, 64, 128>}]} {
    %c0 = arith.constant 0 : index
    %c0_0 = arith.constant 0 : index
    %c0_1 = arith.constant 0 : index
    %0 = vector.load %arg1[%c0, %c0_0, %c0_1] : memref<2x64x128xf32, #tpu.memory_space<vmem>>, vector<1x64x128xf32>
    %1 = vector.shape_cast %0 : vector<1x64x128xf32> to vector<64x128xf32>
    %2 = tpu.transpose %1, [1, 0] : vector<64x128xf32> -> vector<128x64xf32>
    %c1 = arith.constant 1 : index
    %c0_2 = arith.constant 0 : index
    %c0_3 = arith.constant 0 : index
    %3 = vector.load %arg1[%c1, %c0_2, %c0_3] : memref<2x64x128xf32, #tpu.memory_space<vmem>>, vector<1x64x128xf32>
    %4 = vector.shape_cast %3 : vector<1x64x128xf32> to vector<64x128xf32>
    %5 = tpu.transpose %4, [1, 0] : vector<64x128xf32> -> vector<128x64xf32>
    %6 = tpu.concatenate %2, %5 in 0 : vector<128x64xf32>, vector<128x64xf32> -> vector<256x64xf32>
    %7 = arith.truncf %6 : vector<256x64xf32> to vector<256x64xbf16>
    %c0_4 = arith.constant 0 : index
    %c0_5 = arith.constant 0 : index
    %8 = vector.load %arg2[%c0_4, %c0_5] : memref<64x96xbf16, #tpu.memory_space<vmem>>, vector<64x96xbf16>
    %cst = arith.constant dense<0.000000e+00> : vector<256x96xf32>
    %9 = tpu.matmul %7, %8, %cst {dimension_numbers = #tpu.dot_dimension_numbers<[1], [0], [0], [1], [0, 0, 1, 1], [], []>} : vector<256x64xbf16>, vector<64x96xbf16>, vector<256x96xf32> -> vector<256x96xf32>
    %c0_6 = arith.constant 0 : index
    %c0_7 = arith.constant 0 : index
    %10 = vector.load %arg3[%c0_6, %c0_7] : memref<1x96xf32, #tpu.memory_space<vmem>>, vector<1x96xf32>
    %11 = vector.broadcast %10 : vector<1x96xf32> to vector<256x96xf32>
    %12 = arith.addf %9, %11 : vector<256x96xf32>
    %13 = vector.extract_strided_slice %12 {offsets = [0, 0], sizes = [256, 32], strides = [1, 1]} : vector<256x96xf32> to vector<256x32xf32>
    %14 = vector.extract_strided_slice %12 {offsets = [0, 32], sizes = [256, 64], strides = [1, 1]} : vector<256x96xf32> to vector<256x64xf32>
    %15 = vector.shape_cast %14 : vector<256x64xf32> to vector<128x2x64xf32>
    %cst_8 = arith.constant dense<0xFF800000> : vector<128x64xf32>
    %16 = vector.multi_reduction <maximumf>, %15, %cst_8 [1] : vector<128x2x64xf32> to vector<128x64xf32>
    %17 = vector.extract_strided_slice %16 {offsets = [0, 0], sizes = [128, 32], strides = [1, 1]} : vector<128x64xf32> to vector<128x32xf32>
    %18 = vector.extract_strided_slice %16 {offsets = [0, 32], sizes = [128, 32], strides = [1, 1]} : vector<128x64xf32> to vector<128x32xf32>
    %19 = vector.extract_strided_slice %13 {offsets = [0, 0], sizes = [128, 32], strides = [1, 1]} : vector<256x32xf32> to vector<128x32xf32>
    %20 = arith.truncf %19 : vector<128x32xf32> to vector<128x32xbf16>
    %21 = vector.extract_strided_slice %18 {offsets = [0, 0], sizes = [64, 32], strides = [1, 1]} : vector<128x32xf32> to vector<64x32xf32>
    %22 = arith.truncf %21 : vector<64x32xf32> to vector<64x32xbf16>
    %23 = vector.extract_strided_slice %17 {offsets = [0, 0], sizes = [64, 32], strides = [1, 1]} : vector<128x32xf32> to vector<64x32xf32>
    %24 = arith.truncf %23 : vector<64x32xf32> to vector<64x32xbf16>
    %cst_9 = arith.constant dense<0.000000e+00> : vector<128x64xf32>
    %25 = tpu.matmul %20, %22, %cst_9 {dimension_numbers = #tpu.dot_dimension_numbers<[1], [1], [0], [0], [0, 0, 1, 0], [], []>} : vector<128x32xbf16>, vector<64x32xbf16>, vector<128x64xf32> -> vector<128x64xf32>
    %cst_10 = arith.constant dense<0xFF800000> : vector<128xf32>
    %26 = vector.multi_reduction <maximumf>, %25, %cst_10 [1] : vector<128x64xf32> to vector<128xf32>
    %27 = vector.shape_cast %26 : vector<128xf32> to vector<128x1xf32>
    %28 = vector.broadcast %27 : vector<128x1xf32> to vector<128x64xf32>
    %29 = arith.subf %25, %28 : vector<128x64xf32>
    %30 = math.exp %29 : vector<128x64xf32>
    %cst_11 = arith.constant dense<0.000000e+00> : vector<128xf32>
    %31 = vector.multi_reduction <add>, %30, %cst_11 [1] : vector<128x64xf32> to vector<128xf32>
    %32 = vector.shape_cast %31 : vector<128xf32> to vector<128x1xf32>
    %33 = tpu.reciprocal %32 {approx = true} : vector<128x1xf32> -> vector<128x1xf32>
    %34 = vector.broadcast %33 : vector<128x1xf32> to vector<128x64xf32>
    %35 = arith.mulf %30, %34 : vector<128x64xf32>
    %36 = arith.truncf %35 : vector<128x64xf32> to vector<128x64xbf16>
    %cst_12 = arith.constant dense<0.000000e+00> : vector<128x32xf32>
    %37 = tpu.matmul %36, %24, %cst_12 {dimension_numbers = #tpu.dot_dimension_numbers<[1], [0], [0], [1], [0, 0, 1, 1], [], []>} : vector<128x64xbf16>, vector<64x32xbf16>, vector<128x32xf32> -> vector<128x32xf32>
    %38 = vector.extract_strided_slice %13 {offsets = [128, 0], sizes = [128, 32], strides = [1, 1]} : vector<256x32xf32> to vector<128x32xf32>
    %39 = arith.truncf %38 : vector<128x32xf32> to vector<128x32xbf16>
    %40 = vector.extract_strided_slice %18 {offsets = [64, 0], sizes = [64, 32], strides = [1, 1]} : vector<128x32xf32> to vector<64x32xf32>
    %41 = arith.truncf %40 : vector<64x32xf32> to vector<64x32xbf16>
    %42 = vector.extract_strided_slice %17 {offsets = [64, 0], sizes = [64, 32], strides = [1, 1]} : vector<128x32xf32> to vector<64x32xf32>
    %43 = arith.truncf %42 : vector<64x32xf32> to vector<64x32xbf16>
    %cst_13 = arith.constant dense<0.000000e+00> : vector<128x64xf32>
    %44 = tpu.matmul %39, %41, %cst_13 {dimension_numbers = #tpu.dot_dimension_numbers<[1], [1], [0], [0], [0, 0, 1, 0], [], []>} : vector<128x32xbf16>, vector<64x32xbf16>, vector<128x64xf32> -> vector<128x64xf32>
    %cst_14 = arith.constant dense<0xFF800000> : vector<128xf32>
    %45 = vector.multi_reduction <maximumf>, %44, %cst_14 [1] : vector<128x64xf32> to vector<128xf32>
    %46 = vector.shape_cast %45 : vector<128xf32> to vector<128x1xf32>
    %47 = vector.broadcast %46 : vector<128x1xf32> to vector<128x64xf32>
    %48 = arith.subf %44, %47 : vector<128x64xf32>
    %49 = math.exp %48 : vector<128x64xf32>
    %cst_15 = arith.constant dense<0.000000e+00> : vector<128xf32>
    %50 = vector.multi_reduction <add>, %49, %cst_15 [1] : vector<128x64xf32> to vector<128xf32>
    %51 = vector.shape_cast %50 : vector<128xf32> to vector<128x1xf32>
    %52 = tpu.reciprocal %51 {approx = true} : vector<128x1xf32> -> vector<128x1xf32>
    %53 = vector.broadcast %52 : vector<128x1xf32> to vector<128x64xf32>
    %54 = arith.mulf %49, %53 : vector<128x64xf32>
    %55 = arith.truncf %54 : vector<128x64xf32> to vector<128x64xbf16>
    %cst_16 = arith.constant dense<0.000000e+00> : vector<128x32xf32>
    %56 = tpu.matmul %55, %43, %cst_16 {dimension_numbers = #tpu.dot_dimension_numbers<[1], [0], [0], [1], [0, 0, 1, 1], [], []>} : vector<128x64xbf16>, vector<64x32xbf16>, vector<128x32xf32> -> vector<128x32xf32>
    %57 = tpu.concatenate %37, %56 in 0 : vector<128x32xf32>, vector<128x32xf32> -> vector<256x32xf32>
    %58 = arith.truncf %57 : vector<256x32xf32> to vector<256x32xbf16>
    %c0_17 = arith.constant 0 : index
    %c0_18 = arith.constant 0 : index
    %59 = vector.load %arg4[%c0_17, %c0_18] : memref<32x64xbf16, #tpu.memory_space<vmem>>, vector<32x64xbf16>
    %cst_19 = arith.constant dense<0.000000e+00> : vector<256x64xf32>
    %60 = tpu.matmul %58, %59, %cst_19 {dimension_numbers = #tpu.dot_dimension_numbers<[1], [0], [0], [1], [0, 0, 1, 1], [], []>} : vector<256x32xbf16>, vector<32x64xbf16>, vector<256x64xf32> -> vector<256x64xf32>
    %c0_20 = arith.constant 0 : index
    %c0_21 = arith.constant 0 : index
    %61 = vector.load %arg5[%c0_20, %c0_21] : memref<1x64xf32, #tpu.memory_space<vmem>>, vector<1x64xf32>
    %62 = vector.broadcast %61 : vector<1x64xf32> to vector<256x64xf32>
    %63 = arith.addf %60, %62 : vector<256x64xf32>
    %c0_22 = arith.constant 0 : index
    %c0_23 = arith.constant 0 : index
    %64 = vector.load %arg6[%c0_22, %c0_23] : memref<1x64xf32, #tpu.memory_space<vmem>>, vector<1x64xf32>
    %cst_24 = arith.constant 0.999994993 : f32
    %65 = vector.broadcast %cst_24 : f32 to vector<256x64xf32>
    %66 = arith.mulf %63, %65 : vector<256x64xf32>
    %67 = vector.broadcast %64 : vector<1x64xf32> to vector<256x64xf32>
    %68 = arith.mulf %67, %66 : vector<256x64xf32>
    %c0_25 = arith.constant 0 : index
    %c0_26 = arith.constant 0 : index
    %69 = vector.load %arg7[%c0_25, %c0_26] : memref<1x64xf32, #tpu.memory_space<vmem>>, vector<1x64xf32>
    %70 = vector.broadcast %69 : vector<1x64xf32> to vector<256x64xf32>
    %71 = arith.addf %68, %70 : vector<256x64xf32>
    %72 = vector.extract_strided_slice %71 {offsets = [0, 0], sizes = [128, 64], strides = [1, 1]} : vector<256x64xf32> to vector<128x64xf32>
    %73 = arith.addf %72, %2 : vector<128x64xf32>
    %74 = tpu.transpose %73, [1, 0] : vector<128x64xf32> -> vector<64x128xf32>
    %c0_27 = arith.constant 0 : index
    %c0_28 = arith.constant 0 : index
    %c0_29 = arith.constant 0 : index
    %75 = vector.load %arg8[%c0_27, %c0_28, %c0_29] : memref<2x64x128xf32, #tpu.memory_space<vmem>>, vector<1x64x128xf32>
    %76 = vector.shape_cast %75 : vector<1x64x128xf32> to vector<64x128xf32>
    %77 = vector.shape_cast %74 : vector<64x128xf32> to vector<1x64x128xf32>
    tpu.vector_store %arg8[%c0_27, %c0_28, %c0_29], %77 {strides = array<i32>} : memref<2x64x128xf32, #tpu.memory_space<vmem>>, vector<1x64x128xf32>,
    %78 = vector.extract_strided_slice %71 {offsets = [128, 0], sizes = [128, 64], strides = [1, 1]} : vector<256x64xf32> to vector<128x64xf32>
    %79 = arith.addf %78, %5 : vector<128x64xf32>
    %80 = tpu.transpose %79, [1, 0] : vector<128x64xf32> -> vector<64x128xf32>
    %c1_30 = arith.constant 1 : index
    %c0_31 = arith.constant 0 : index
    %c0_32 = arith.constant 0 : index
    %81 = vector.load %arg8[%c1_30, %c0_31, %c0_32] : memref<2x64x128xf32, #tpu.memory_space<vmem>>, vector<1x64x128xf32>
    %82 = vector.shape_cast %81 : vector<1x64x128xf32> to vector<64x128xf32>
    %83 = vector.shape_cast %80 : vector<64x128xf32> to vector<1x64x128xf32>
    tpu.vector_store %arg8[%c1_30, %c0_31, %c0_32], %83 {strides = array<i32>} : memref<2x64x128xf32, #tpu.memory_space<vmem>>, vector<1x64x128xf32>,
    return
  }
  func.func @transform_0(%arg0: i32) -> (i32, i32, i32) {
    %c0_i32 = arith.constant 0 : i32
    %c0_i32_0 = arith.constant 0 : i32
    %c0_i32_1 = arith.constant 0 : i32
    return %arg0, %c0_i32, %c0_i32_0 : i32, i32, i32
  }
  func.func @transform_1(%arg0: i32) -> (i32, i32) {
    %c0_i32 = arith.constant 0 : i32
    %c0_i32_0 = arith.constant 0 : i32
    %c0_i32_1 = arith.constant 0 : i32
    return %c0_i32, %c0_i32_0 : i32, i32
  }
  func.func @transform_2(%arg0: i32) -> (i32, i32) {
    %c0_i32 = arith.constant 0 : i32
    %c0_i32_0 = arith.constant 0 : i32
    %c0_i32_1 = arith.constant 0 : i32
    return %c0_i32, %c0_i32_0 : i32, i32
  }
  func.func @transform_3(%arg0: i32) -> (i32, i32) {
    %c0_i32 = arith.constant 0 : i32
    %c0_i32_0 = arith.constant 0 : i32
    %c0_i32_1 = arith.constant 0 : i32
    return %c0_i32, %c0_i32_0 : i32, i32
  }
  func.func @transform_4(%arg0: i32) -> (i32, i32) {
    %c0_i32 = arith.constant 0 : i32
    %c0_i32_0 = arith.constant 0 : i32
    %c0_i32_1 = arith.constant 0 : i32
    return %c0_i32, %c0_i32_0 : i32, i32
  }
  func.func @transform_5(%arg0: i32) -> (i32, i32) {
    %c0_i32 = arith.constant 0 : i32
    %c0_i32_0 = arith.constant 0 : i32
    %c0_i32_1 = arith.constant 0 : i32
    return %c0_i32, %c0_i32_0 : i32, i32
  }
  func.func @transform_6(%arg0: i32) -> (i32, i32) {
    %c0_i32 = arith.constant 0 : i32
    %c0_i32_0 = arith.constant 0 : i32
    %c0_i32_1 = arith.constant 0 : i32
    return %c0_i32, %c0_i32_0 : i32, i32
  }
  func.func @transform_7(%arg0: i32) -> (i32, i32, i32) {
    %c0_i32 = arith.constant 0 : i32
    %c0_i32_0 = arith.constant 0 : i32
    %c0_i32_1 = arith.constant 0 : i32
    return %arg0, %c0_i32, %c0_i32_0 : i32, i32, i32
  }
}

</mosaic_0001>

<bundles_post_ra>
// kernel: tpu_custom_call.1
= control target key start
LH: loop header
LB: loop body
LE: loop exit
PB: predicated region body
PF: predicated region fallthrough
CT: control target
= control target key end

     0   :  { %s6058_s0 = inlined_call_operand.hbm [shape: f32[4,64,128], index: 0, kind: input, shape index: {}]   ;;  %s6059_s1 = inlined_call_operand.hbm [shape: bf16[64,96], index: 1, kind: input, shape index: {}]   ;;  %s6060_s2 = inlined_call_operand.vmem [shape: f32[1,96], index: 2, kind: input, shape index: {}]   ;;  %s6061_s3 = inlined_call_operand.hbm [shape: bf16[32,64], index: 3, kind: input, shape index: {}]   ;;  %s6062_s4 = inlined_call_operand.vmem [shape: f32[1,64], index: 4, kind: input, shape index: {}]   ;;  %s6063_s5 = inlined_call_operand.vmem [shape: f32[1,64], index: 5, kind: input, shape index: {}]   ;;  %s6064_s6 = inlined_call_operand.vmem [shape: f32[1,64], index: 6, kind: input, shape index: {}]   ;;  %s6065_s7 = inlined_call_operand.hbm [shape: f32[4,64,128], index: 7, kind: output, shape index: {}]  }
   0x1   :  { %6173 = sst [smem:[#allocation96_spill]] %s6059_s1 }
   0x2   :  { %12 = vsyncpa [#allocation3], 0 }
   0x3   :  { %14 = vsyncpa [#allocation3 + $0x1], 0 }
   0x4   :  { %15 = vsyncpa [#allocation6], 0 }
   0x5   :  { %16 = vsyncpa [#allocation4], 0 }
   0x6   :  { %18 = vsyncpa [#allocation4 + $0x1], 0  ;;  %s4035_s24 = smov 0   ;;  %s4037_s25 = smov 0  }
   0x7   :  { %s4039_s26 = smov 0   ;;  %s4041_s27 = smov 0  }
   0x8 LB: > { %s4056_s28 = sadd.s32 4294967295, %s3983_s27   ;;  %s3479_s29 = sadd.s32 4294967294, %s3983_s27   ;;  %s3983_s27 = sphi %s4041_s27, %s6449_s27   ;;  %s3979_s26 = sphi %s4039_s26, %s6448_s26   ;;  %s3975_s25 = sphi %s4037_s25, %s6447_s25   ;;  %s3971_s24 = sphi %s4035_s24, %s6446_s24  }
   0x9   : > { %p44_p0 = scmp.ne.s32.totalorder %s3975_s25, %s3971_s24  ;;  %p45_p1 = scmp.eq.s32.totalorder %s4056_s28, 0 }
   0xa   : > { %p194_p2 = scmp.eq.s32.totalorder %s4056_s28, 1  ;;  %p200_p3 = scmp.eq.s32.totalorder %s3479_s29, 1 }
   0xb   : > { %p4065_p4 = por %p45_p1, %p44_p0  ;;  %p3480_p5 = scmp.ge.s32.totalorder %s3983_s27, 1 }
   0xc   : > { %p4070_p6 = por %p200_p3, %p44_p0  ;;  %p207_p7 = scmp.lt.s32.totalorder %s3983_s27, 3 }
   0xd   : > { %s6176_s1 = sld [smem:[#allocation96_spill]]  ;;  %s3985_s13 = smov [#allocation5]  }
   0xe   : > { %p4078_p8 = pnand %p3480_p5, %p207_p7  ;;  %s220_s14 = sshll.u32 %s3985_s13, 4  ;;  %s221_s14 = int_to_ptr.vmem [resolvable:$true] %s220_s14 }
   0xf   : > { %s235_s17 = sshll.u32 %s6061_s3, 4  ;;  %s3986_s18 = smov 64   ;;  %s236_s17 = int_to_ptr.hbm [resolvable:$true] %s235_s17 }
  0x10   : > { %p3625_p9 = pneg %p4078_p8  ;;  %s3987_s19 = smov 4  }
  0x11   : > { %s3988_s20 = smov [#allocation7]   ;;  %s4091_s22 = sadd.s32 1, %s3983_s27  }
  0x12   : > { %p3626_p10 = pnand %p3625_p9, %p45_p1  ;;  %s237_s21 = sshll.u32 %s3988_s20, 4  ;;  %s238_s21 = int_to_ptr.vmem [resolvable:$true] %s237_s21 }
  0x13   : > { %s218_s11 = sshll.u32 %s6176_s1, 4  ;;  %s31_s23 = sadd.s32 1, %s3979_s26  ;;  %s219_s11 = int_to_ptr.hbm [resolvable:$true] %s218_s11 }
  0x14   : > { %3628 = dma.hbm_to_vmem [thread:$0]  (!%p3626_p10), %s219_s11, 512, %s221_s14, [#allocation6], %s3986_s18, %s3986_s18, %s3987_s19  }
  0x15   : > { %3631 = dma.hbm_to_vmem [thread:$0]  (!%p3626_p10), %s236_s17, 256, %s238_s21, [#allocation6], %s3986_s18, %s3986_s18, %s3987_s19  }
  0x16   : > { %s28_s29 = ssub.s32 %s3983_s27, %s4091_s22  ;;  %p38_p12 = scmp.ne.s32.totalorder %s3979_s26, %s3975_s25 }
  0x17   : > { %p29_p13 = scmp.eq.s32.totalorder %s28_s29, 0  ;;  %p39_p0 = scmp.eq.s32.totalorder %s3983_s27, 0 }
  0x18   : > { %p4101_p3 = por %p194_p2, %p38_p12  ;;  %p3642_p5 = scmp.lt.s32.totalorder %s3983_s27, 2 }
  0x19   : > { %s4107_s10 = scalar_select %p29_p13, %s3979_s26, %s31_s23  }
  0x1a   : > { %p40_p7 = por %p39_p0, %p38_p12  ;;  %s260_s11 = sand.u32 1, %s3979_s26  }
  0x1b   : > { %s3484_s13 = sshll.u32 %s260_s11, 7  ;;  %s3604_s14 = sshll.u32 %s3983_s27, 7 }
  0x1c   : > { %s270_s17 = scalar_lea.hbm %s6058_s0, %s3604_s14  ;;  %s264_s18 = scalar_lea.vmem [#allocation2], %s3484_s13 }
  0x1d   : > { %s273_s19 = sshll.u32 %s264_s18, 4  ;;  %s271_s20 = sshll.u32 %s270_s17, 4  ;;  %s274_s19 = int_to_ptr.vmem [resolvable:$true] %s273_s19  ;;  %s272_s20 = int_to_ptr.hbm [resolvable:$true] %s271_s20 }
  0x1e   : > { %p4114_p2 = pnand %p3642_p5, %p40_p7  ;;  %s261_s23 = scalar_lea.sflag [#allocation3], %s260_s11 }
  0x1f   : > { %s3883_s29 = sshra.s32 %s272_s20, 4  ;;  %s3890_s15 = scalar_lea.hbm %s6058_s0, 256  ;;  %s3884_s29 = int_to_ptr.hbm [resolvable:$true] %s3883_s29 }
  0x20   : > { %s3885_s1 = scalar_lea.hbm %s3884_s29, 128  ;;  %p3887_p10 = pneg %p4114_p2 }
  0x21   : > { %p3886_p9 = scmp.ne.s32.totalorder %s3884_s29, %s3885_s1  ;;  %p3891_p0 = scmp.lt.s32.totalorder %s3884_s29, %s6058_s0 }
  0x22   : > { %p3892_p5 = scmp.lt.s32.totalorder %s3890_s15, %s3885_s1 }
  0x23   : > { %p3888_p12 = pnand %p3887_p10, %p3886_p9 }
  0x24   : > { %p3893_p7 = por %p3892_p5, %p3891_p0 }
  0x25   : > { %p3889_p13 = pneg %p3888_p12 }
  0x27   : > { %p3894_p11 = pnand %p3893_p7, %p3889_p13 }
  0x29   : > { %3897 = shalt.err (!%p3894_p11)
}
  0x2a   : > { %s3989_s11 = smov 128   ;;  %s3990_s18 = smov 8  }
  0x2b   : > { %3635 = dma.hbm_to_vmem [thread:$0]  (!%p4114_p2), %s272_s20, 2048, %s274_s19, %s261_s23, %s3989_s11, %s3989_s11, %s3990_s18  }
  0x2c   : > { %285 = sbr.rel (%p4078_p8) target bundleno = 1866 (0x74a), region = 48 }
  0x31   : > { %s4131_s14 = sand.u32 1, %s3975_s25  }
  0x32   : > { %s3489_s29 = sshll.u32 %s4131_s14, 7  ;;  %s288_s1 = scalar_lea.sflag [#allocation3], %s4131_s14 }
  0x33   : > { %s4137_s13 = scalar_lea.vmem [#allocation2], %s3489_s29 }
  0x34   : > { %3958 = dma.done.wait (%p4065_p4), %s288_s1, 2048  }
  0x35   : > { %3960 = vsyncadd (%p4065_p4), %s288_s1, 4294965248 }
  0x36   : > { %3962 = dma.done.wait (%p45_p1), [#allocation6], 768  }
  0x37   : > { %3964 = vsyncadd (%p45_p1), [#allocation6], 4294966528  ;;  %v336_v0 = vld [vmem:[%s4137_s13] sm:$0xff]  ;;  %v337_v1 = vld [vmem:[%s4137_s13 + $0x8] sm:$0xff]  ;;  %vm469_vm0 = vcmask 523264   ;;  %vm831_vm1 = vcmask 779520  }
  0x38   : > { %344 = vxpose.xlu0.b32.start [1/8] (short) %v336_v0, 128  ;;  %v338_v2 = vld [vmem:[%s4137_s13 + $0x10] sm:$0xff]  ;;  %v339_v3 = vld [vmem:[%s4137_s13 + $0x18] sm:$0xff]  ;;  %v3493_v4 = vld [vmem:[%s4137_s13 + $0x40] sm:$0xff]  ;;  %vm1928_vm2 = vcmask 1041409   ;;  %vm1930_vm3 = vcmask 1042434   ;;  %vm1932_vm4 = vcmask 1043459  }
  0x39   : > { %385 = vxpose.xlu1.b32.start [1/8] (short) %v3493_v4, 128  ;;  %v3608_v5 = vld [vmem:[#allocation5 + $0x18] sm:$0xff]  ;;  %v340_v6 = vld [vmem:[%s4137_s13 + $0x20] sm:$0xff]  ;;  %v3494_v7 = vld [vmem:[%s4137_s13 + $0x48] sm:$0xff]  ;;  %vm1934_vm5 = vcmask 1044484   ;;  %vm1936_vm6 = vcmask 1045509   ;;  %vm1938_vm7 = vcmask 1046534  }
  0x3a   : > { %522 = vmatpush.bf16.msra.mxu0 %v3608_v5  ;;  %v3607_v8 = vld [vmem:[#allocation5 + $0x10] sm:$0xff]  ;;  %v341_v9 = vld [vmem:[%s4137_s13 + $0x28] sm:$0xff]  ;;  %v3496_v12 = vld [vmem:[%s4137_s13 + $0x58] sm:$0xff]  ;;  %vm1940_vm8 = vcmask 1047559   ;;  %s3991_s19 = smov 96   ;;  %s3992_s23 = smov 64  }
  0x3b   : > { %v3495_v10 = vld [vmem:[%s4137_s13 + $0x50] sm:$0xff]  ;;  %v343_v13 = vld [vmem:[%s4137_s13 + $0x38] sm:$0xff]  ;;  %v3497_v14 = vld [vmem:[%s4137_s13 + $0x60] sm:$0xff]  ;;  %vm2003_vm9 = vcmask 261120   ;;  %s5991_s12 = scalar_lea.vmem [#allocation8], %s3489_s29  ;;  %s3612_s29 = sshll.u32 %s4056_s28, 7 }
  0x3c   : > { %v342_v11 = vld [vmem:[%s4137_s13 + $0x30] sm:$0xff]  ;;  %v3498_v15 = vld [vmem:[%s4137_s13 + $0x68] sm:$0xff]  ;;  %v3605_v18 = vld [vmem:[#allocation5] sm:$0xff]  ;;  %s3383_s21 = scalar_lea.hbm %s6065_s7, %s3612_s29  ;;  %s3371_s16 = scalar_lea.sflag [#allocation4], %s4131_s14 }
  0x3d   : > { %v3606_v16 = vld [vmem:[#allocation5 + $0x8] sm:$0xff]  ;;  %v3499_v17 = vld [vmem:[%s4137_s13 + $0x70] sm:$0xff]  ;;  %v3500_v19 = vld [vmem:[%s4137_s13 + $0x78] sm:$0xff]  ;;  %s3386_s15 = sshll.u32 %s3383_s21, 4  ;;  %s3933_s1 = scalar_lea.hbm %s6065_s7, 256  ;;  %s3387_s15 = int_to_ptr.hbm [resolvable:$true] %s3386_s15 }
  0x3e   : > { %523 = vmatpush.bf16.msra.mxu0 %v3607_v8  ;;  %v4232_v49 = vld [vmem:[%s6060_s2] ss:$0 sm:$0xff]  ;;  %s3927_s17 = sshra.s32 %s3387_s15, 4  ;;  %s3928_s17 = int_to_ptr.hbm [resolvable:$true] %s3927_s17 }
  0x3f   : > { %s3929_s11 = scalar_lea.hbm %s3928_s17, 128  ;;  %p3934_p11 = scmp.lt.s32.totalorder %s3928_s17, %s6065_s7 }
  0x40   : > { %345 = vxpose.xlu0.b32.cont [2/8] (short) %v337_v1, 128  ;;  %p3930_p1 = scmp.ne.s32.totalorder %s3928_s17, %s3929_s11  ;;  %p3935_p2 = scmp.lt.s32.totalorder %s3933_s1, %s3929_s11 }
  0x41   : > { %386 = vxpose.xlu1.b32.cont [2/8] (short) %v3494_v7, 128 }
  0x42   : > { %524 = vmatpush.bf16.msra.mxu0 %v3606_v16  ;;  %p3931_p4 = pnand %p3930_p1, %p4101_p3  ;;  %p3936_p9 = por %p3935_p2, %p3934_p11 }
  0x44   : > { %p3932_p8 = pneg %p3931_p4 }
  0x46   : > { %525 = vmatpush.bf16.msra.mxu0 %v3605_v18  ;;  %p3937_p10 = pnand %p3936_p9, %p3932_p8 }
  0x48   : > { %346 = vxpose.xlu0.b32.cont [3/8] (short) %v338_v2, 128 }
  0x49   : > { %387 = vxpose.xlu1.b32.cont [3/8] (short) %v3495_v10, 128 }
  0x50   : > { %347 = vxpose.xlu0.b32.cont [4/8] (short) %v339_v3, 128 }
  0x51   : > { %388 = vxpose.xlu1.b32.cont [4/8] (short) %v3496_v12, 128 }
  0x58   : > { %348 = vxpose.xlu0.b32.cont [5/8] (short) %v340_v6, 128 }
  0x59   : > { %389 = vxpose.xlu1.b32.cont [5/8] (short) %v3497_v14, 128 }
  0x60   : > { %349 = vxpose.xlu0.b32.cont [6/8] (short) %v341_v9, 128 }
  0x61   : > { %390 = vxpose.xlu1.b32.cont [6/8] (short) %v3498_v15, 128 }
  0x68   : > { %350 = vxpose.xlu0.b32.cont [7/8] (short) %v342_v11, 128 }
  0x69   : > { %391 = vxpose.xlu1.b32.cont [7/8] (short) %v3499_v17, 128 }
  0x70   : > { %351 = vxpose.xlu0.b32.end [8/8] (short) %v343_v13, 128 }
  0x71   : > { %392 = vxpose.xlu1.b32.end [8/8] (short) %v3500_v19, 128 }
  0xdc   : > { %v4163_v20 = vpop.trf.xlu0 }
  0xdd   : > { %6180 = vst [vmem:[#allocation12_spill] sm:$0xff] %v4163_v20  ;;  %v4204_v38 = vpop.trf.xlu1 }
  0xde   : > { %6192 = vst [vmem:[#allocation24_spill] sm:$0xff] %v4204_v38 }
  0xe4   : > { %v4165_v21 = vpop.trf.xlu0 }
  0xe5   : > { %6181 = vst [vmem:[#allocation13_spill] sm:$0xff] %v4165_v21  ;;  %v417_v22 = vpack.c.bf16 %v4165_v21, %v4163_v20  ;;  %v4209_v40 = vpop.trf.xlu1 }
  0xe6   : > { %6194 = vst [vmem:[#allocation26_spill] sm:$0xff] %v4209_v40  ;;  %v425_v50 = vpack.c.bf16 %v4209_v40, %v4204_v38 }
  0xe7   : > { %3517 = vmatmul.msk.bf16.vlgmr.msra.gmra.mxu0 %vm469_vm0, %v417_v22 }
  0xec   : > { %v4170_v23 = vpop.trf.xlu0 }
  0xed   : > { %6182 = vst [vmem:[#allocation14_spill] sm:$0xff] %v4170_v23  ;;  %v4216_v43 = vpop.trf.xlu1 }
  0xee   : > { %6196 = vst [vmem:[#allocation28_spill] sm:$0xff] %v4216_v43 }
  0xf4   : > { %v4172_v24 = vpop.trf.xlu0 }
  0xf5   : > { %6183 = vst [vmem:[#allocation15_spill] sm:$0xff] %v4172_v24  ;;  %v418_v25 = vpack.c.bf16 %v4172_v24, %v4170_v23  ;;  %v4222_v46 = vpop.trf.xlu1 }
  0xf6   : > { %6199 = vst [vmem:[#allocation31_spill] sm:$0xff] %v4222_v46  ;;  %v426_v10 = vpack.c.bf16 %v4222_v46, %v4216_v43 }
  0xf7   : > { %3518 = vmatmul.msk.bf16.gmra.mxu0 %vm469_vm0, %v418_v25 }
  0xfc   : > { %v4177_v26 = vpop.trf.xlu0 }
  0xfd   : > { %6184 = vst [vmem:[#allocation16_spill] sm:$0xff] %v4177_v26  ;;  %v4227_v48 = vpop.trf.xlu1 }
  0xfe   : > { %6200 = vst [vmem:[#allocation32_spill] sm:$0xff] %v4227_v48 }
 0x104   : > { %v4179_v27 = vpop.trf.xlu0 }
 0x105   : > { %6185 = vst [vmem:[#allocation17_spill] sm:$0xff] %v4179_v27  ;;  %v419_v28 = vpack.c.bf16 %v4179_v27, %v4177_v26  ;;  %v4239_v53 = vpop.trf.xlu1 }
 0x106   : > { %6202 = vst [vmem:[#allocation34_spill] sm:$0xff] %v4239_v53 }
 0x107   : > { %3519 = vmatmul.msk.bf16.gmra.mxu0 %vm469_vm0, %v419_v28 }
 0x10c   : > { %v4184_v29 = vpop.trf.xlu0 }
 0x10d   : > { %6186 = vst [vmem:[#allocation18_spill] sm:$0xff] %v4184_v29  ;;  %v4250_v2 = vpop.trf.xlu1 }
 0x10e   : > { %6203 = vst [vmem:[#allocation35_spill] sm:$0xff] %v4250_v2 }
 0x114   : > { %v4186_v30 = vpop.trf.xlu0 }
 0x115   : > { %6187 = vst [vmem:[#allocation19_spill] sm:$0xff] %v4186_v30  ;;  %v420_v31 = vpack.c.bf16 %v4186_v30, %v4184_v29  ;;  %v4262_v16 = vpop.trf.xlu1 }
 0x116   : > { %6206 = vst [vmem:[#allocation38_spill] sm:$0xff] %v4262_v16 }
 0x117   : > { %3520 = vmatmul.msk.bf16.gmra.mxu0 %vm469_vm0, %v420_v31 }
 0x11c   : > { %v4191_v32 = vpop.trf.xlu0 }
 0x11d   : > { %6188 = vst [vmem:[#allocation20_spill] sm:$0xff] %v4191_v32 }
 0x124   : > { %v4193_v33 = vpop.trf.xlu0 }
 0x125   : > { %6189 = vst [vmem:[#allocation21_spill] sm:$0xff] %v4193_v33  ;;  %v421_v34 = vpack.c.bf16 %v4193_v33, %v4191_v32 }
 0x127   : > { %3521 = vmatmul.msk.bf16.gmra.mxu0 %vm469_vm0, %v421_v34 }
 0x12c   : > { %v4198_v35 = vpop.trf.xlu0 }
 0x12d   : > { %6190 = vst [vmem:[#allocation22_spill] sm:$0xff] %v4198_v35 }
 0x134   : > { %v4200_v36 = vpop.trf.xlu0 }
 0x135   : > { %6191 = vst [vmem:[#allocation23_spill] sm:$0xff] %v4200_v36  ;;  %v422_v37 = vpack.c.bf16 %v4200_v36, %v4198_v35 }
 0x137   : > { %3522 = vmatmul.msk.bf16.gmra.mxu0 %vm469_vm0, %v422_v37 }
 0x13c   : > { %v4207_v39 = vpop.trf.xlu0 }
 0x13d   : > { %6193 = vst [vmem:[#allocation25_spill] sm:$0xff] %v4207_v39 }
 0x144   : > { %v4211_v41 = vpop.trf.xlu0 }
 0x145   : > { %6195 = vst [vmem:[#allocation27_spill] sm:$0xff] %v4211_v41  ;;  %v423_v42 = vpack.c.bf16 %v4211_v41, %v4207_v39 }
 0x147   : > { %3523 = vmatmul.msk.bf16.gmra.mxu0 %vm469_vm0, %v423_v42 }
 0x14c   : > { %v4218_v44 = vpop.trf.xlu0 }
 0x14d   : > { %6197 = vst [vmem:[#allocation29_spill] sm:$0xff] %v4218_v44 }
 0x154   : > { %v4220_v45 = vpop.trf.xlu0 }
 0x155   : > { %6198 = vst [vmem:[#allocation30_spill] sm:$0xff] %v4220_v45  ;;  %v424_v47 = vpack.c.bf16 %v4220_v45, %v4218_v44 }
 0x157   : > { %3524 = vmatmul.msk.bf16.gmra.mxu0 %vm469_vm0, %v424_v47 }
 0x164   : > { %v527_v51 = vpop.f32.mrf.mxu0 }
 0x165   : > { %v4237_v52 = vadd.f32 %v4232_v49, %v527_v51 }
 0x167   : > { %6201 = vst [vmem:[#allocation33_spill] sm:$0xff] %v4237_v52  ;;  %v639_v54 = vrot.slane %v4237_v52, 2  ;;  %v640_v55 = vrot.slane %v4237_v52, 4  ;;  %v832_v56 = vsel %vm831_vm1, %v4237_v52, -inf  ;;  %3525 = vmatmul.msk.bf16.gmra.mxu0 %vm469_vm0, %v425_v50  ;;  %v641_v58 = vrot.slane %v4237_v52, 6 }
 0x168   : > { %v833_v57 = vrot.slane %v832_v56, 4 }
 0x169   : > { %v839_v59 = vsel %vm831_vm1, %v639_v54, -inf  ;;  %v846_v60 = vsel %vm831_vm1, %v640_v55, -inf  ;;  %v853_v1 = vsel %vm831_vm1, %v641_v58, -inf }
 0x16a   : > { %v840_v61 = vrot.slane %v839_v59, 4  ;;  %v847_v62 = vrot.slane %v846_v60, 4  ;;  %v834_v63 = vmax.f32 %v832_v56, %v833_v57  ;;  %v854_v6 = vrot.slane %v853_v1, 4 }
 0x16c   : > { %v529_v0 = vpop.f32.mrf.mxu0  ;;  %v841_v3 = vmax.f32 %v839_v59, %v840_v61  ;;  %v848_v4 = vmax.f32 %v846_v60, %v847_v62  ;;  %v835_v5 = vrot.slane %v834_v63, 2  ;;  %v855_v12 = vmax.f32 %v853_v1, %v854_v6 }
 0x16d   : > { %v4253_v7 = vadd.f32 %v4232_v49, %v529_v0 }
 0x16e   : > { %v842_v8 = vrot.slane %v841_v3, 2  ;;  %v849_v9 = vrot.slane %v848_v4, 2  ;;  %v836_v11 = vmax.f32 %v834_v63, %v835_v5  ;;  %v856_v34 = vrot.slane %v855_v12, 2 }
 0x16f   : > { %6204 = vst [vmem:[#allocation36_spill] sm:$0xff] %v4253_v7  ;;  %v860_v14 = vsel %vm831_vm1, %v4253_v7, -inf  ;;  %v642_v18 = vrot.slane %v4253_v7, 2  ;;  %v643_v60 = vrot.slane %v4253_v7, 4 }
 0x170   : > { %v843_v17 = vmax.f32 %v841_v3, %v842_v8  ;;  %v850_v19 = vmax.f32 %v848_v4, %v849_v9  ;;  %v837_v31 = vrot.slane %v836_v11, 1  ;;  %v861_v37 = vrot.slane %v860_v14, 4  ;;  %v4279_v9 = vpop.trf.xlu1 }
 0x171   : > { %v867_v61 = vsel %vm831_vm1, %v642_v18, -inf  ;;  %6208 = vst [vmem:[#allocation40_spill] sm:$0xff] %v4279_v9 }
 0x172   : > { %v844_v55 = vrot.slane %v843_v17, 1  ;;  %v851_v59 = vrot.slane %v850_v19, 1  ;;  %v838_v63 = vmax.f32 %v836_v11, %v837_v31  ;;  %v862_v5 = vmax.f32 %v860_v14, %v861_v37 }
 0x173   : > { %v868_v18 = vrot.slane %v867_v61, 4  ;;  %v427_v31 = vpack.c.bf16 %v4239_v53, %v4227_v48  ;;  %v4288_v14 = vsel %vm831_vm1, %v643_v60, -inf }
 0x174   : > { %v532_v13 = vpop.f32.mrf.mxu0  ;;  %6210 = vst [vmem:[#allocation42_spill] sm:$0xff] %v4288_v14 }
 0x175   : > { %v4260_v15 = vadd.f32 %v4232_v49, %v532_v13  ;;  %v4281_v13 = vmax.f32 %v855_v12, %v856_v34  ;;  %v863_v12 = vrot.slane %v862_v5, 2 }
 0x177   : > { %6205 = vst [vmem:[#allocation37_spill] sm:$0xff] %v4260_v15  ;;  %v645_v22 = vrot.slane %v4260_v15, 2  ;;  %v646_v25 = vrot.slane %v4260_v15, 4  ;;  %v647_v28 = vrot.slane %v4260_v15, 6  ;;  %3526 = vmatmul.msk.bf16.gmra.mxu0 %vm469_vm0, %v426_v10  ;;  %v888_v42 = vsel %vm831_vm1, %v4260_v15, -inf }
 0x178   : > { %v889_v47 = vrot.slane %v888_v42, 4  ;;  %v845_v10 = vmax.f32 %v843_v17, %v844_v55 }
 0x179   : > { %v895_v50 = vsel %vm831_vm1, %v645_v22, -inf  ;;  %v902_v51 = vsel %vm831_vm1, %v646_v25, -inf  ;;  %v909_v54 = vsel %vm831_vm1, %v647_v28, -inf  ;;  %v4283_v28 = vmax.f32 %v850_v19, %v851_v59 }
 0x17a   : > { %v896_v56 = vrot.slane %v895_v50, 4  ;;  %v903_v57 = vrot.slane %v902_v51, 4  ;;  %v910_v58 = vrot.slane %v909_v54, 4  ;;  %v890_v62 = vmax.f32 %v888_v42, %v889_v47 }
 0x17b   : > { %6209 = vst [vmem:[#allocation41_spill] sm:$0xff] %v4283_v28  ;;  %v1736_v42 = vpack.c.bf16 %v838_v63, %v838_v63 }
 0x17c   : > { %v897_v0 = vmax.f32 %v895_v50, %v896_v56  ;;  %v904_v1 = vmax.f32 %v902_v51, %v903_v57  ;;  %v911_v3 = vmax.f32 %v909_v54, %v910_v58  ;;  %v534_v4 = vpop.f32.mrf.mxu0  ;;  %v891_v6 = vrot.slane %v890_v62, 2 }
 0x17d   : > { %v4277_v8 = vadd.f32 %v4232_v49, %v534_v4  ;;  %v1737_v51 = vpack.c.bf16 %v845_v10, %v845_v10  ;;  %v4298_v57 = vmax.f32 %v867_v61, %v868_v18  ;;  %v4303_v60 = vunpack.c.l.b16 %v1736_v42 }
 0x17e   : > { %v898_v22 = vrot.slane %v897_v0, 2  ;;  %v905_v25 = vrot.slane %v904_v1, 2  ;;  %v912_v11 = vrot.slane %v911_v3, 2  ;;  %v892_v37 = vmax.f32 %v890_v62, %v891_v6 }
 0x17f   : > { %6207 = vst [vmem:[#allocation39_spill] sm:$0xff] %v4277_v8  ;;  %v648_v47 = vrot.slane %v4277_v8, 2  ;;  %v916_v19 = vsel %vm831_vm1, %v4277_v8, -inf  ;;  %v649_v55 = vrot.slane %v4277_v8, 4  ;;  %v4306_v6 = vmax.f32 %v862_v5, %v863_v12 }
 0x180   : > { %v899_v34 = vmax.f32 %v897_v0, %v898_v22  ;;  %v906_v54 = vmax.f32 %v904_v1, %v905_v25  ;;  %v4301_v59 = vmax.f32 %v911_v3, %v912_v11  ;;  %6212 = vst [vmem:[#allocation44_spill] sm:$0xff] %v4303_v60  ;;  %v893_v62 = vrot.slane %v892_v37, 1  ;;  %v4313_v22 = vpop.trf.xlu1 }
 0x181   : > { %v917_v63 = vrot.slane %v916_v19, 4  ;;  %v923_v0 = vsel %vm831_vm1, %v648_v47, -inf  ;;  %6214 = vst [vmem:[#allocation46_spill] sm:$0xff] %v4313_v22  ;;  %v4315_v3 = vunpack.c.l.b16 %v1737_v51  ;;  %v4319_v11 = vsel %vm831_vm1, %v649_v55, -inf }
 0x182   : > { %6211 = vst [vmem:[#allocation43_spill] sm:$0xff] %v4301_v59  ;;  %v900_v1 = vrot.slane %v899_v34, 1  ;;  %v907_v25 = vrot.slane %v906_v54, 1  ;;  %v924_v42 = vrot.slane %v923_v0, 4 }
 0x183   : > { %6215 = vst [vmem:[#allocation47_spill] sm:$0xff] %v4315_v3  ;;  %v918_v56 = vmax.f32 %v916_v19, %v917_v63 }
 0x184   : > { %v537_v4 = vpop.f32.mrf.mxu0  ;;  %6216 = vst [vmem:[#allocation48_spill] sm:$0xff] %v4319_v11  ;;  %v901_v18 = vmax.f32 %v899_v34, %v900_v1  ;;  %v4330_v50 = vmax.f32 %v906_v54, %v907_v25 }
 0x185   : > { %v4309_v10 = vadd.f32 %v4232_v49, %v537_v4  ;;  %v894_v4 = vmax.f32 %v892_v37, %v893_v62  ;;  %v919_v46 = vrot.slane %v918_v56, 2 }
 0x186   : > { %6217 = vst [vmem:[#allocation49_spill] sm:$0xff] %v4330_v50 }
 0x187   : > { %6213 = vst [vmem:[#allocation45_spill] sm:$0xff] %v4309_v10  ;;  %v651_v47 = vrot.slane %v4309_v10, 2  ;;  %v652_v12 = vrot.slane %v4309_v10, 4  ;;  %3527 = vmatmul.msk.bf16.gmra.mxu0 %vm469_vm0, %v427_v31  ;;  %v653_v51 = vrot.slane %v4309_v10, 6  ;;  %v944_v17 = vsel %vm831_vm1, %v4309_v10, -inf }
 0x188   : > { %v945_v58 = vrot.slane %v944_v17, 4  ;;  %v4333_v31 = vmax.f32 %v923_v0, %v924_v42  ;;  %v1744_v63 = vpack.c.bf16 %v894_v4, %v894_v4  ;;  %v4339_v25 = vpop.trf.xlu1 }
 0x189   : > { %v951_v55 = vsel %vm831_vm1, %v651_v47, -inf  ;;  %v958_v5 = vsel %vm831_vm1, %v652_v12, -inf  ;;  %v965_v48 = vsel %vm831_vm1, %v653_v51, -inf  ;;  %v1745_v47 = vpack.c.bf16 %v901_v18, %v901_v18  ;;  %6220 = vst [vmem:[#allocation52_spill] sm:$0xff] %v4339_v25 }
 0x18a   : > { %v952_v61 = vrot.slane %v951_v55, 4  ;;  %v959_v53 = vrot.slane %v958_v5, 4  ;;  %6218 = vst [vmem:[#allocation50_spill] sm:$0xff] %v4333_v31  ;;  %v946_v19 = vmax.f32 %v944_v17, %v945_v58  ;;  %v966_v62 = vrot.slane %v965_v48, 4 }
 0x18b   : > { %v4352_v45 = vunpack.c.l.b16 %v1744_v63 }
 0x18c   : > { %v953_v34 = vmax.f32 %v951_v55, %v952_v61  ;;  %v960_v1 = vmax.f32 %v958_v5, %v959_v53  ;;  %v539_v43 = vpop.f32.mrf.mxu0  ;;  %v947_v40 = vrot.slane %v946_v19, 2  ;;  %v967_v12 = vmax.f32 %v965_v48, %v966_v62 }
 0x18d   : > { %v4337_v54 = vadd.f32 %v4232_v49, %v539_v43  ;;  %6221 = vst [vmem:[#allocation53_spill] sm:$0xff] %v4352_v45 }
 0x18e   : > { %v954_v42 = vrot.slane %v953_v34, 2  ;;  %v961_v51 = vrot.slane %v960_v1, 2  ;;  %v948_v58 = vmax.f32 %v946_v19, %v947_v40  ;;  %v968_v61 = vrot.slane %v967_v12, 2 }
 0x18f   : > { %6219 = vst [vmem:[#allocation51_spill] sm:$0xff] %v4337_v54  ;;  %v654_v53 = vrot.slane %v4337_v54, 2  ;;  %v655_v18 = vrot.slane %v4337_v54, 4  ;;  %v656_v43 = vrot.slane %v4337_v54, 6  ;;  %v972_v4 = vsel %vm831_vm1, %v4337_v54, -inf }
 0x190   : > { %v955_v48 = vmax.f32 %v953_v34, %v954_v42  ;;  %v962_v5 = vmax.f32 %v960_v1, %v961_v51  ;;  %v949_v55 = vrot.slane %v948_v58, 1  ;;  %v969_v62 = vmax.f32 %v967_v12, %v968_v61 }
 0x191   : > { %v973_v0 = vrot.slane %v972_v4, 4  ;;  %v979_v37 = vsel %vm831_vm1, %v654_v53, -inf  ;;  %v986_v19 = vsel %vm831_vm1, %v655_v18, -inf  ;;  %v4354_v42 = vmax.f32 %v918_v56, %v919_v46  ;;  %v4363_v18 = vpop.trf.xlu1 }
 0x192   : > { %v956_v38 = vrot.slane %v955_v48, 1  ;;  %v963_v17 = vrot.slane %v962_v5, 1  ;;  %v980_v40 = vrot.slane %v979_v37, 4  ;;  %v950_v44 = vmax.f32 %v948_v58, %v949_v55  ;;  %6225 = vst [vmem:[#allocation57_spill] sm:$0xff] %v4363_v18 }
 0x193   : > { %v970_v34 = vrot.slane %v969_v62, 1  ;;  %v974_v1 = vmax.f32 %v972_v4, %v973_v0  ;;  %6222 = vst [vmem:[#allocation54_spill] sm:$0xff] %v4354_v42  ;;  %v4358_v61 = vunpack.c.l.b16 %v1745_v47  ;;  %v987_v36 = vrot.slane %v986_v19, 4 }
 0x194   : > { %v957_v51 = vmax.f32 %v955_v48, %v956_v38  ;;  %v4356_v41 = vmax.f32 %v962_v5, %v963_v17  ;;  %v981_v39 = vmax.f32 %v979_v37, %v980_v40  ;;  %v542_v12 = vpop.f32.mrf.mxu0  ;;  %v1752_v63 = vpack.c.bf16 %v950_v44, %v950_v44 }
 0x195   : > { %6223 = vst [vmem:[#allocation55_spill] sm:$0xff] %v4358_v61  ;;  %v975_v53 = vrot.slane %v974_v1, 2  ;;  %v4361_v35 = vadd.f32 %v4232_v49, %v542_v12  ;;  %v4365_v58 = vmax.f32 %v969_v62, %v970_v34  ;;  %v993_v46 = vsel %vm831_vm1, %v656_v43, -inf }
 0x196   : > { %v982_v0 = vrot.slane %v981_v39, 2  ;;  %v1753_v38 = vpack.c.bf16 %v957_v51, %v957_v51  ;;  %v6226_v17 = vpack.c.bf16 %v4262_v16, %v4250_v2  ;;  %v988_v16 = vmax.f32 %v986_v19, %v987_v36 }
 0x197   : > { %6224 = vst [vmem:[#allocation56_spill] sm:$0xff] %v4361_v35  ;;  %v976_v56 = vmax.f32 %v974_v1, %v975_v53  ;;  %v657_v37 = vrot.slane %v4361_v35, 2  ;;  %v658_v47 = vrot.slane %v4361_v35, 4  ;;  %v659_v44 = vrot.slane %v4361_v35, 6 }
 0x198   : > { %3528 = vmatmul.msk.bf16.gmra.mxu0 %vm469_vm0, %v6226_v17  ;;  %v1000_v5 = vsel %vm831_vm1, %v4361_v35, -inf  ;;  %v983_v40 = vmax.f32 %v981_v39, %v982_v0  ;;  %v4384_v53 = vunpack.c.l.b16 %v1752_v63  ;;  %v4386_v2 = vunpack.c.l.b16 %v1753_v38 }
 0x199   : > { %v1001_v4 = vrot.slane %v1000_v5, 4  ;;  %v1007_v55 = vsel %vm831_vm1, %v657_v37, -inf  ;;  %v1014_v62 = vsel %vm831_vm1, %v658_v47, -inf  ;;  %v1021_v51 = vsel %vm831_vm1, %v659_v44, -inf }
 0x19a   : > { %v1008_v34 = vrot.slane %v1007_v55, 4  ;;  %v1015_v1 = vrot.slane %v1014_v62, 4  ;;  %v977_v12 = vrot.slane %v976_v56, 1  ;;  %v1022_v48 = vrot.slane %v1021_v51, 4 }
 0x19b   : > { %v1002_v17 = vmax.f32 %v1000_v5, %v1001_v4  ;;  %v994_v30 = vrot.slane %v993_v46, 4  ;;  %v984_v0 = vrot.slane %v983_v40, 1  ;;  %v989_v63 = vrot.slane %v988_v16, 2 }
 0x19c   : > { %v1009_v33 = vmax.f32 %v1007_v55, %v1008_v34  ;;  %v1016_v43 = vmax.f32 %v1014_v62, %v1015_v1  ;;  %v544_v32 = vpop.f32.mrf.mxu0  ;;  %v1023_v29 = vmax.f32 %v1021_v51, %v1022_v48  ;;  %v4391_v27 = vmax.f32 %v976_v56, %v977_v12 }
 0x19d   : > { %v1003_v37 = vrot.slane %v1002_v17, 2  ;;  %v4389_v39 = vadd.f32 %v4232_v49, %v544_v32  ;;  %v995_v62 = vmax.f32 %v993_v46, %v994_v30  ;;  %v990_v46 = vmax.f32 %v988_v16, %v989_v63 }
 0x19e   : > { %v1010_v47 = vrot.slane %v1009_v33, 2  ;;  %v1017_v44 = vrot.slane %v1016_v43, 2  ;;  %v1024_v4 = vrot.slane %v1023_v29, 2  ;;  %v6229_v16 = vpack.c.bf16 %v4313_v22, %v4279_v9 }
 0x19f   : > { %6227 = vst [vmem:[#allocation58_spill] sm:$0xff] %v4389_v39  ;;  %v1004_v5 = vmax.f32 %v1002_v17, %v1003_v37  ;;  %v660_v36 = vrot.slane %v4389_v39, 2  ;;  %v661_v19 = vrot.slane %v4389_v39, 4  ;;  %v1028_v48 = vsel %vm831_vm1, %v4389_v39, -inf }
 0x1a0   : > { %v1011_v38 = vmax.f32 %v1009_v33, %v1010_v47  ;;  %v1018_v55 = vmax.f32 %v1016_v43, %v1017_v44  ;;  %v1025_v34 = vmax.f32 %v1023_v29, %v1024_v4  ;;  %v1029_v1 = vrot.slane %v1028_v48, 4 }
 0x1a1   : > { %v1005_v32 = vrot.slane %v1004_v5, 1  ;;  %v1035_v51 = vsel %vm831_vm1, %v660_v36, -inf  ;;  %v4398_v17 = vmax.f32 %v983_v40, %v984_v0  ;;  %v1042_v23 = vsel %vm831_vm1, %v661_v19, -inf }
 0x1a2   : > { %v1012_v56 = vrot.slane %v1011_v38, 1  ;;  %v1019_v12 = vrot.slane %v1018_v55, 1  ;;  %v1036_v26 = vrot.slane %v1035_v51, 4  ;;  %v1030_v24 = vmax.f32 %v1028_v48, %v1029_v1 }
 0x1a3   : > { %v1006_v37 = vmax.f32 %v1004_v5, %v1005_v32  ;;  %v1026_v30 = vrot.slane %v1025_v34, 1  ;;  %v996_v40 = vrot.slane %v995_v62, 2  ;;  %v1043_v19 = vrot.slane %v1042_v23, 4 }
 0x1a4   : > { %v1013_v43 = vmax.f32 %v1011_v38, %v1012_v56  ;;  %v4403_v47 = vmax.f32 %v1018_v55, %v1019_v12  ;;  %v547_v29 = vpop.f32.mrf.mxu0  ;;  %v1031_v4 = vrot.slane %v1030_v24, 2  ;;  %v1037_v48 = vmax.f32 %v1035_v51, %v1036_v26 }
 0x1a5   : > { %v4407_v36 = vadd.f32 %v4232_v49, %v547_v29  ;;  %v1760_v0 = vpack.c.bf16 %v1006_v37, %v1006_v37  ;;  %v991_v26 = vrot.slane %v990_v46, 1  ;;  %v4420_v51 = vmax.f32 %v1025_v34, %v1026_v30 }
 0x1a6   : > { %v1761_v5 = vpack.c.bf16 %v1013_v43, %v1013_v43  ;;  %v1032_v38 = vmax.f32 %v1030_v24, %v1031_v4  ;;  %v997_v43 = vmax.f32 %v995_v62, %v996_v40  ;;  %v1038_v40 = vrot.slane %v1037_v48, 2 }
 0x1a7   : > { %6228 = vst [vmem:[#allocation59_spill] sm:$0xff] %v4407_v36  ;;  %v663_v55 = vrot.slane %v4407_v36, 2  ;;  %v664_v1 = vrot.slane %v4407_v36, 4  ;;  %v665_v63 = vrot.slane %v4407_v36, 6  ;;  %v1056_v56 = vsel %vm831_vm1, %v4407_v36, -inf }
 0x1a8   : > { %3529 = vmatmul.msk.bf16.gmra.mxu0 %vm469_vm0, %v6229_v16  ;;  %v1057_v12 = vrot.slane %v1056_v56, 4  ;;  %v1033_v33 = vrot.slane %v1032_v38, 1  ;;  %v4425_v16 = vunpack.c.l.b16 %v1760_v0  ;;  %v4427_v44 = vunpack.c.l.b16 %v1761_v5 }
 0x1a9   : > { %v1063_v24 = vsel %vm831_vm1, %v663_v55, -inf  ;;  %v1070_v37 = vsel %vm831_vm1, %v664_v1, -inf  ;;  %v1077_v32 = vsel %vm831_vm1, %v665_v63, -inf  ;;  %v4429_v20 = vmax.f32 %v990_v46, %v991_v26 }
 0x1aa   : > { %v1064_v29 = vrot.slane %v1063_v24, 4  ;;  %v1071_v4 = vrot.slane %v1070_v37, 4  ;;  %v1058_v22 = vmax.f32 %v1056_v56, %v1057_v12  ;;  %v1078_v9 = vrot.slane %v1077_v32, 4 }
 0x1ab   : > { %v998_v55 = vrot.slane %v997_v43, 1  ;;  %v4434_v0 = vmax.f32 %v1032_v38, %v1033_v33  ;;  %v1044_v5 = vmax.f32 %v1042_v23, %v1043_v19  ;;  %v4445_v38 = vpop.trf.xlu1  ;;  %v1756_v45 = vpack.c.bf16 %v4391_v27, %v4391_v27 }
 0x1ac   : > { %v1065_v21 = vmax.f32 %v1063_v24, %v1064_v29  ;;  %v1072_v34 = vmax.f32 %v1070_v37, %v1071_v4  ;;  %v549_v30 = vpop.f32.mrf.mxu0  ;;  %v1059_v36 = vrot.slane %v1058_v22, 2  ;;  %v1079_v1 = vmax.f32 %v1077_v32, %v1078_v9  ;;  %6231 = vst [vmem:[#allocation61_spill] sm:$0xff] %v4445_v38 }
 0x1ad   : > { %v4432_v62 = vadd.f32 %v4232_v49, %v549_v30  ;;  %v1045_v30 = vrot.slane %v1044_v5, 2  ;;  %v4454_v61 = vmax.f32 %v997_v43, %v998_v55  ;;  %v6233_v43 = vpack.c.bf16 %v4363_v18, %v4339_v25 }
 0x1ae   : > { %v1066_v63 = vrot.slane %v1065_v21, 2  ;;  %v1073_v35 = vrot.slane %v1072_v34, 2  ;;  %v1060_v54 = vmax.f32 %v1058_v22, %v1059_v36  ;;  %v1080_v56 = vrot.slane %v1079_v1, 2 }
 0x1af   : > { %6230 = vst [vmem:[#allocation60_spill] sm:$0xff] %v4432_v62  ;;  %v666_v12 = vrot.slane %v4432_v62, 2  ;;  %v667_v24 = vrot.slane %v4432_v62, 4  ;;  %v668_v37 = vrot.slane %v4432_v62, 6  ;;  %v1084_v9 = vsel %vm831_vm1, %v4432_v62, -inf }
 0x1b0   : > { %v1067_v46 = vmax.f32 %v1065_v21, %v1066_v63  ;;  %v1074_v26 = vmax.f32 %v1072_v34, %v1073_v35  ;;  %v1061_v32 = vrot.slane %v1060_v54, 1  ;;  %v4441_v29 = vmax.f32 %v1079_v1, %v1080_v56 }
 0x1b1   : > { %v1085_v4 = vrot.slane %v1084_v9, 4  ;;  %v1091_v33 = vsel %vm831_vm1, %v666_v12, -inf  ;;  %v1098_v19 = vsel %vm831_vm1, %v667_v24, -inf  ;;  %v4450_v1 = vsel %vm831_vm1, %v668_v37, -inf }
 0x1b2   : > { %v1068_v23 = vrot.slane %v1067_v46, 1  ;;  %v1075_v22 = vrot.slane %v1074_v26, 1  ;;  %v1092_v36 = vrot.slane %v1091_v33, 4  ;;  %v1062_v21 = vmax.f32 %v1060_v54, %v1061_v32 }
 0x1b3   : > { %v1086_v35 = vmax.f32 %v1084_v9, %v1085_v4  ;;  %v1099_v34 = vrot.slane %v1098_v19, 4  ;;  %v1039_v62 = vmax.f32 %v1037_v48, %v1038_v40  ;;  %v1046_v40 = vmax.f32 %v1044_v5, %v1045_v30  ;;  %v4488_v24 = vpop.trf.xlu1 }
 0x1b4   : > { %v1069_v63 = vmax.f32 %v1067_v46, %v1068_v23  ;;  %v4447_v10 = vmax.f32 %v1074_v26, %v1075_v22  ;;  %v552_v56 = vpop.f32.mrf.mxu0  ;;  %v1768_v12 = vpack.c.bf16 %v1062_v21, %v1062_v21  ;;  %v4452_v52 = vmax.f32 %v1091_v33, %v1092_v36  ;;  %6235 = vst [vmem:[#allocation63_spill] sm:$0xff] %v4488_v24 }
 0x1b5   : > { %v1087_v15 = vrot.slane %v1086_v35, 2  ;;  %v4457_v54 = vmax.f32 %v1098_v19, %v1099_v34  ;;  %v4461_v46 = vadd.f32 %v4232_v49, %v552_v56  ;;  %v1040_v33 = vrot.slane %v1039_v62, 1 }
 0x1b6   : > { %v1769_v26 = vpack.c.bf16 %v1069_v63, %v1069_v63  ;;  %v4474_v23 = vunpack.c.l.b16 %v1768_v12  ;;  %v1047_v5 = vrot.slane %v1046_v40, 1  ;;  %v6234_v9 = vrot.slane %v4389_v39, 6 }
 0x1b7   : > { %6232 = vst [vmem:[#allocation62_spill] sm:$0xff] %v4461_v46  ;;  %v4465_v48 = vmax.f32 %v1086_v35, %v1087_v15  ;;  %v669_v55 = vrot.slane %v4461_v46, 2  ;;  %v670_v32 = vrot.slane %v4461_v46, 4  ;;  %v671_v4 = vrot.slane %v4461_v46, 6 }
 0x1b8   : > { %3530 = vmatmul.msk.bf16.gmra.mxu0 %vm469_vm0, %v6233_v43  ;;  %v1112_v15 = vsel %vm831_vm1, %v4461_v46, -inf  ;;  %v4482_v34 = vunpack.c.l.b16 %v1769_v26  ;;  %v1041_v37 = vmax.f32 %v1039_v62, %v1040_v33  ;;  %v1049_v22 = vsel %vm831_vm1, %v6234_v9, -inf }
 0x1b9   : > { %v1113_v36 = vrot.slane %v1112_v15, 4  ;;  %v1119_v19 = vsel %vm831_vm1, %v669_v55, -inf  ;;  %v1126_v21 = vsel %vm831_vm1, %v670_v32, -inf  ;;  %v1133_v35 = vsel %vm831_vm1, %v671_v4, -inf }
 0x1ba   : > { %v1120_v30 = vrot.slane %v1119_v19, 4  ;;  %v1127_v63 = vrot.slane %v1126_v21, 4  ;;  %v1134_v56 = vrot.slane %v1133_v35, 4  ;;  %v1050_v26 = vrot.slane %v1049_v22, 4 }
 0x1bb   : > { %v1114_v43 = vmax.f32 %v1112_v15, %v1113_v36  ;;  %v1048_v46 = vmax.f32 %v1046_v40, %v1047_v5  ;;  %v1757_v62 = vpack.c.bf16 %v4398_v17, %v4398_v17  ;;  %v1763_v40 = vpack.c.bf16 %v4420_v51, %v4420_v51 }
 0x1bc   : > { %v4490_v55 = vpop.f32.mrf.mxu0  ;;  %v1121_v32 = vmax.f32 %v1119_v19, %v1120_v30  ;;  %v1128_v18 = vmax.f32 %v1126_v21, %v1127_v63  ;;  %v1135_v4 = vmax.f32 %v1133_v35, %v1134_v56  ;;  %v1051_v9 = vmax.f32 %v1049_v22, %v1050_v26 }
 0x1bd   : > { %v1115_v25 = vrot.slane %v1114_v43, 2  ;;  %v1758_v19 = vpack.c.bf16 %v4429_v20, %v4429_v20  ;;  %v1759_v21 = vpack.c.bf16 %v4454_v61, %v4454_v61  ;;  %v1765_v22 = vpack.c.bf16 %v1041_v37, %v1041_v37 }
 0x1be   : > { %v1122_v33 = vrot.slane %v1121_v32, 2  ;;  %v1129_v15 = vrot.slane %v1128_v18, 2  ;;  %v1136_v36 = vrot.slane %v1135_v4, 2  ;;  %v1052_v17 = vrot.slane %v1051_v9, 2 }
 0x1bf   : > { %v1116_v12 = vmax.f32 %v1114_v43, %v1115_v25  ;;  %v1764_v25 = vpack.c.bf16 %v4434_v0, %v4434_v0  ;;  %v1766_v63 = vpack.c.bf16 %v1048_v46, %v1048_v46  ;;  %v6236_v51 = vpack.c.bf16 %v4356_v41, %v4356_v41 }
 0x1c0   : > { %v1123_v27 = vmax.f32 %v1121_v32, %v1122_v33  ;;  %v1130_v5 = vmax.f32 %v1128_v18, %v1129_v15  ;;  %v4502_v35 = vmax.f32 %v1135_v4, %v1136_v36  ;;  %v1053_v61 = vmax.f32 %v1051_v9, %v1052_v17 }
 0x1c1   : > { %v1117_v30 = vrot.slane %v1116_v12, 1  ;;  %v1882_v43 = vunpack.c.l.b16 %v6236_v51  ;;  %v6237_v4 = vpack.c.bf16 %v4365_v58, %v4365_v58  ;;  %v1884_v33 = vunpack.c.l.b16 %v1756_v45  ;;  %v4518_v51 = vpop.trf.xlu1 }
 0x1c2   : > { %v1124_v20 = vrot.slane %v1123_v27, 1  ;;  %v1131_v56 = vrot.slane %v1130_v5, 1  ;;  %v1054_v37 = vrot.slane %v1053_v61, 1  ;;  %v1885_v15 = vunpack.c.l.b16 %v1757_v62  ;;  %6239 = vst [vmem:[#allocation64_spill] sm:$0xff] %v4518_v51 }
 0x1c3   : > { %v1118_v18 = vmax.f32 %v1116_v12, %v1117_v30  ;;  %v1883_v26 = vunpack.c.l.b16 %v6237_v4  ;;  %v6238_v36 = vpack.c.bf16 %v4403_v47, %v4403_v47  ;;  %v1886_v17 = vunpack.c.l.b16 %v1758_v19 }
 0x1c4   : > { %v557_v0 = vpop.f32.mrf.mxu0  ;;  %v1125_v46 = vmax.f32 %v1123_v27, %v1124_v20  ;;  %v4516_v41 = vmax.f32 %v1130_v5, %v1131_v56  ;;  %v1887_v30 = vunpack.c.l.b16 %v1759_v21  ;;  %v1055_v58 = vmax.f32 %v1053_v61, %v1054_v37 }
 0x1c5   : > { %v1890_v9 = vunpack.c.l.b16 %v6238_v36  ;;  %v1776_v12 = vpack.c.bf16 %v1118_v18, %v1118_v18  ;;  %v1891_v4 = vunpack.c.l.b16 %v1763_v40  ;;  %v1892_v45 = vunpack.c.l.b16 %v1764_v25 }
 0x1c6   : > { %v1893_v32 = vunpack.c.l.b16 %v1765_v22  ;;  %v1777_v39 = vpack.c.bf16 %v1125_v46, %v1125_v46  ;;  %v1949_v62 = vsel %vm1928_vm2, %v4386_v2, %v4384_v53  ;;  %v1956_v47 = vsel %vm1928_vm2, %v4427_v44, %v4425_v16 }
 0x1c7   : > { %v431_v27 = vpack.c.bf16 %v4488_v24, %v4445_v38  ;;  %v1767_v19 = vpack.c.bf16 %v1055_v58, %v1055_v58  ;;  %v1894_v21 = vunpack.c.l.b16 %v1766_v63  ;;  %v1950_v5 = vsel %vm1930_vm3, %v1882_v43, %v1949_v62 }
 0x1c8   : > { %v1957_v40 = vsel %vm1930_vm3, %v1890_v9, %v1956_v47  ;;  %v1951_v22 = vsel %vm1932_vm4, %v1883_v26, %v1950_v5  ;;  %v4536_v53 = vadd.f32 %v4232_v49, %v4490_v55  ;;  %v4542_v20 = vadd.f32 %v4232_v49, %v557_v0 }
 0x1c9   : > { %v1958_v2 = vsel %vm1932_vm4, %v1891_v4, %v1957_v40  ;;  %3531 = vmatmul.msk.bf16.gmra.mxu0 %vm469_vm0, %v431_v27  ;;  %v1895_v44 = vunpack.c.l.b16 %v1767_v19  ;;  %v1952_v16 = vsel %vm1934_vm5, %v1884_v33, %v1951_v22  ;;  %v4556_v9 = vunpack.c.l.b16 %v1776_v12 }
 0x1ca   : > { %6240 = vst [vmem:[#allocation65_spill] sm:$0xff] %v4536_v53  ;;  %v1959_v63 = vsel %vm1934_vm5, %v1892_v45, %v1958_v2  ;;  %v1953_v56 = vsel %vm1936_vm6, %v1885_v15, %v1952_v16  ;;  %v672_v43 = vrot.slane %v4536_v53, 2  ;;  %v673_v18 = vrot.slane %v4536_v53, 4 }
 0x1cb   : > { %6241 = vst [vmem:[#allocation66_spill] sm:$0xff] %v4542_v20  ;;  %v1960_v61 = vsel %vm1936_vm6, %v1893_v32, %v1959_v63  ;;  %v1954_v26 = vsel %vm1938_vm7, %v1886_v17, %v1953_v56  ;;  %v674_v33 = vrot.slane %v4536_v53, 6  ;;  %v1140_v37 = vsel %vm831_vm1, %v4536_v53, -inf }
 0x1cc   : > { %v559_v55 = vpop.f32.mrf.mxu0  ;;  %v1961_v46 = vsel %vm1938_vm7, %v1894_v21, %v1960_v61  ;;  %v1955_v0 = vsel %vm1940_vm8, %v1887_v30, %v1954_v26  ;;  %v1141_v36 = vrot.slane %v1140_v37, 4  ;;  %v1147_v32 = vsel %vm831_vm1, %v672_v43, -inf  ;;  %v4565_v30 = vpop.trf.xlu1 }
 0x1cd   : > { %v1962_v15 = vsel %vm1940_vm8, %v1895_v44, %v1961_v46  ;;  %v1148_v4 = vrot.slane %v1147_v32, 4  ;;  %v1154_v17 = vsel %vm831_vm1, %v673_v18, -inf  ;;  %v4562_v47 = vsel %vm831_vm1, %v674_v33, -inf  ;;  %6242 = vst [vmem:[#allocation67_spill] sm:$0xff] %v4565_v30 }
 0x1ce   : > { %v4558_v58 = vpack.c.b16 %v1962_v15, %v1955_v0  ;;  %v1142_v45 = vmax.f32 %v1140_v37, %v1141_v36  ;;  %v1155_v62 = vrot.slane %v1154_v17, 4  ;;  %v675_v27 = vrot.slane %v4542_v20, 2 }
 0x1cf   : > { %v4569_v12 = vmax.f32 %v1147_v32, %v1148_v4  ;;  %v676_v19 = vrot.slane %v4542_v20, 4  ;;  %v677_v21 = vrot.slane %v4542_v20, 6  ;;  %v1168_v5 = vsel %vm831_vm1, %v4542_v20, -inf }
 0x1d0   : > { %2275 = vrot.lane.b32.xlu1 %v4558_v58, %s3991_s19  ;;  %v4575_v40 = vunpack.c.l.b16 %v1777_v39  ;;  %v1143_v22 = vrot.slane %v1142_v45, 2  ;;  %v1169_v2 = vrot.slane %v1168_v5, 4  ;;  %v1175_v44 = vsel %vm831_vm1, %v675_v27, -inf }
 0x1d1   : > { %v1176_v16 = vrot.slane %v1175_v44, 4  ;;  %v1182_v63 = vsel %vm831_vm1, %v676_v19, -inf  ;;  %v1189_v56 = vsel %vm831_vm1, %v677_v21, -inf  ;;  %v432_v61 = vpack.c.bf16 %v4565_v30, %v4518_v51 }
 0x1d2   : > { %v1170_v18 = vmax.f32 %v1168_v5, %v1169_v2  ;;  %v1183_v26 = vrot.slane %v1182_v63, 4  ;;  %v1190_v46 = vrot.slane %v1189_v56, 4  ;;  %v4584_v37 = vmax.f32 %v1154_v17, %v1155_v62 }
 0x1d3   : > { %v1177_v0 = vmax.f32 %v1175_v44, %v1176_v16  ;;  %v4587_v15 = vadd.f32 %v4232_v49, %v559_v55  ;;  %v4589_v36 = vmax.f32 %v1142_v45, %v1143_v22  ;;  %v6245_v16 = vrot.slane %v4441_v29, 1 }
 0x1d4   : > { %v562_v33 = vpop.f32.mrf.mxu0  ;;  %v1171_v32 = vrot.slane %v1170_v18, 2  ;;  %v1184_v4 = vmax.f32 %v1182_v63, %v1183_v26  ;;  %v1191_v27 = vmax.f32 %v1189_v56, %v1190_v46 }
 0x1d5   : > { %6243 = vst [vmem:[#allocation68_spill] sm:$0xff] %v4587_v15  ;;  %v1178_v19 = vrot.slane %v1177_v0, 2  ;;  %v678_v21 = vrot.slane %v4587_v15, 2  ;;  %v679_v5 = vrot.slane %v4587_v15, 4  ;;  %v4594_v2 = vadd.f32 %v4232_v49, %v562_v33 }
 0x1d6   : > { %v1172_v25 = vmax.f32 %v1170_v18, %v1171_v32  ;;  %v1185_v17 = vrot.slane %v1184_v4, 2  ;;  %v1192_v62 = vrot.slane %v1191_v27, 2  ;;  %v1196_v55 = vsel %vm831_vm1, %v4587_v15, -inf }
 0x1d7   : > { %6244 = vst [vmem:[#allocation69_spill] sm:$0xff] %v4594_v2  ;;  %v1179_v44 = vmax.f32 %v1177_v0, %v1178_v19  ;;  %v1197_v45 = vrot.slane %v1196_v55, 4  ;;  %v1203_v22 = vsel %vm831_vm1, %v678_v21, -inf  ;;  %v4602_v63 = vmax.f32 %v4441_v29, %v6245_v16 }
 0x1d8   : > { %v1173_v26 = vrot.slane %v1172_v25, 1  ;;  %v4605_v46 = vmax.f32 %v1184_v4, %v1185_v17  ;;  %v4608_v18 = vsel %vm831_vm1, %v679_v5, -inf  ;;  %v1204_v32 = vrot.slane %v1203_v22, 4 }
 0x1d9   : > { %3532 = vmatmul.msk.bf16.gmra.mxu0 %vm469_vm0, %v432_v61  ;;  %v1180_v33 = vrot.slane %v1179_v44, 1  ;;  %v1198_v0 = vmax.f32 %v1196_v55, %v1197_v45  ;;  %v681_v19 = vrot.slane %v4594_v2, 2  ;;  %v4612_v43 = vmax.f32 %v1191_v27, %v1192_v62 }
 0x1da   : > { %v1174_v21 = vmax.f32 %v1172_v25, %v1173_v26  ;;  %v682_v16 = vrot.slane %v4594_v2, 4  ;;  %v683_v17 = vrot.slane %v4594_v2, 6  ;;  %v1224_v61 = vsel %vm831_vm1, %v4594_v2, -inf }
 0x1db   : > { %v4616_v4 = vmax.f32 %v1179_v44, %v1180_v33  ;;  %v1199_v55 = vrot.slane %v1198_v0, 2  ;;  %v1225_v45 = vrot.slane %v1224_v61, 4  ;;  %v1231_v25 = vsel %vm831_vm1, %v681_v19, -inf }
 0x1dc   : > { %v564_v56 = vpop.f32.mrf.mxu0  ;;  %v1238_v27 = vsel %vm831_vm1, %v682_v16, -inf  ;;  %v1187_v62 = vrot.slane %v4605_v46, 1  ;;  %v4625_v26 = vmax.f32 %v1203_v22, %v1204_v32  ;;  %v1232_v39 = vrot.slane %v1231_v25, 4 }
 0x1dd   : > { %v1239_v44 = vrot.slane %v1238_v27, 4  ;;  %v1784_v33 = vpack.c.bf16 %v1174_v21, %v1174_v21  ;;  %v1226_v29 = vmax.f32 %v1224_v61, %v1225_v45  ;;  %v1245_v5 = vsel %vm831_vm1, %v683_v17, -inf }
 0x1de   : > { %v4629_v30 = vadd.f32 %v4232_v49, %v564_v56  ;;  %v1233_v24 = vmax.f32 %v1231_v25, %v1232_v39  ;;  %v1246_v38 = vrot.slane %v1245_v5, 4  ;;  %v4633_v16 = vmax.f32 %v1198_v0, %v1199_v55 }
 0x1df   : > { %v1240_v19 = vmax.f32 %v1238_v27, %v1239_v44  ;;  %v1227_v2 = vrot.slane %v1226_v29, 2  ;;  %v4643_v55 = vunpack.c.l.b16 %v1784_v33  ;;  %v4674_v11 = vmax.f32 %v4605_v46, %v1187_v62 }
 0x1e0   : > { %6246 = vst [vmem:[#allocation70_spill] sm:$0xff] %v4629_v30  ;;  %v684_v22 = vrot.slane %v4629_v30, 2  ;;  %v685_v32 = vrot.slane %v4629_v30, 4  ;;  %v1234_v21 = vrot.slane %v1233_v24, 2  ;;  %v1247_v45 = vmax.f32 %v1245_v5, %v1246_v38 }
 0x1e1   : > { %v1241_v61 = vrot.slane %v1240_v19, 2  ;;  %v1252_v49 = vsel %vm831_vm1, %v4629_v30, -inf  ;;  %v1228_v56 = vmax.f32 %v1226_v29, %v1227_v2  ;;  %v4651_v2 = vld [vmem:[%s6060_s2] ss:$0 sm:$0xff] }
 0x1e2   : > { %v1253_v17 = vrot.slane %v1252_v49, 4  ;;  %v1259_v51 = vsel %vm831_vm1, %v684_v22, -inf  ;;  %v4641_v39 = vsel %vm831_vm1, %v685_v32, -inf  ;;  %v1235_v25 = vmax.f32 %v1233_v24, %v1234_v21 }
 0x1e3   : > { %v4645_v27 = vmax.f32 %v1240_v19, %v1241_v61  ;;  %v1229_v20 = vrot.slane %v1228_v56, 1  ;;  %v1248_v38 = vrot.slane %v1247_v45, 2  ;;  %v1260_v32 = vrot.slane %v1259_v51, 4 }
 0x1e4   : > { %v567_v0 = vpop.f32.mrf.mxu0  ;;  %v1254_v5 = vmax.f32 %v1252_v49, %v1253_v17  ;;  %v1236_v22 = vrot.slane %v1235_v25, 1 }
 0x1e5   : > { %v4654_v29 = vadd.f32 %v4651_v2, %v567_v0  ;;  %v1230_v19 = vmax.f32 %v1228_v56, %v1229_v20  ;;  %v4666_v3 = vmax.f32 %v1247_v45, %v1248_v38  ;;  %v4669_v56 = vmax.f32 %v1259_v51, %v1260_v32 }
 0x1e6   : > { %v4661_v17 = vmax.f32 %v1235_v25, %v1236_v22  ;;  %v1255_v44 = vrot.slane %v1254_v5, 2 }
 0x1e7   : > { %6247 = vst [vmem:[#allocation71_spill] sm:$0xff] %v4654_v29  ;;  %v687_v61 = vrot.slane %v4654_v29, 2  ;;  %v688_v49 = vrot.slane %v4654_v29, 4  ;;  %v689_v53 = vrot.slane %v4654_v29, 6  ;;  %v1280_v0 = vsel %vm831_vm1, %v4654_v29, -inf }
 0x1e8   : > { %v1792_v33 = vpack.c.bf16 %v1230_v19, %v1230_v19  ;;  %v1281_v60 = vrot.slane %v1280_v0, 4  ;;  %v4678_v38 = vmax.f32 %v1254_v5, %v1255_v44 }
 0x1e9   : > { %v1287_v20 = vsel %vm831_vm1, %v687_v61, -inf  ;;  %v1294_v21 = vsel %vm831_vm1, %v688_v49, -inf  ;;  %v1301_v25 = vsel %vm831_vm1, %v689_v53, -inf }
 0x1ea   : > { %v1288_v24 = vrot.slane %v1287_v20, 4  ;;  %v1282_v22 = vmax.f32 %v1280_v0, %v1281_v60  ;;  %v1295_v50 = vrot.slane %v1294_v21, 4  ;;  %v1302_v28 = vrot.slane %v1301_v25, 4 }
 0x1eb   : > { %v4683_v32 = vunpack.c.l.b16 %v1792_v33 }
 0x1ec   : > { %v569_v8 = vpop.f32.mrf.mxu0  ;;  %v1289_v19 = vmax.f32 %v1287_v20, %v1288_v24  ;;  %v1283_v61 = vrot.slane %v1282_v22, 2  ;;  %v1296_v53 = vmax.f32 %v1294_v21, %v1295_v50  ;;  %v1303_v60 = vmax.f32 %v1301_v25, %v1302_v28 }
 0x1ed   : > { %v4681_v51 = vadd.f32 %v4651_v2, %v569_v8 }
 0x1ee   : > { %v1290_v49 = vrot.slane %v1289_v19, 2  ;;  %v1284_v29 = vmax.f32 %v1282_v22, %v1283_v61  ;;  %v1297_v45 = vrot.slane %v1296_v53, 2  ;;  %v1304_v44 = vrot.slane %v1303_v60, 2 }
 0x1ef   : > { %6248 = vst [vmem:[#allocation72_spill] sm:$0xff] %v4681_v51  ;;  %v690_v0 = vrot.slane %v4681_v51, 2  ;;  %v691_v46 = vrot.slane %v4681_v51, 4  ;;  %v692_v62 = vrot.slane %v4681_v51, 6  ;;  %v1308_v5 = vsel %vm831_vm1, %v4681_v51, -inf }
 0x1f0   : > { %v1291_v8 = vmax.f32 %v1289_v19, %v1290_v49  ;;  %v1309_v24 = vrot.slane %v1308_v5, 4  ;;  %v1285_v28 = vrot.slane %v1284_v29, 1  ;;  %v1298_v21 = vmax.f32 %v1296_v53, %v1297_v45 }
 0x1f1   : > { %v1315_v33 = vsel %vm831_vm1, %v690_v0, -inf  ;;  %v1322_v50 = vsel %vm831_vm1, %v691_v46, -inf  ;;  %v4692_v20 = vmax.f32 %v1303_v60, %v1304_v44  ;;  %v1206_v22 = vrot.slane %v4625_v26, 2 }
 0x1f2   : > { %v1316_v25 = vrot.slane %v1315_v33, 4  ;;  %v1292_v31 = vrot.slane %v1291_v8, 1  ;;  %v1310_v42 = vmax.f32 %v1308_v5, %v1309_v24  ;;  %v1323_v59 = vrot.slane %v1322_v50, 4 }
 0x1f3   : > { %6249 = vst [vmem:[#allocation73_spill] sm:$0xff] %v4692_v20  ;;  %v1286_v61 = vmax.f32 %v1284_v29, %v1285_v28  ;;  %v1299_v7 = vrot.slane %v1298_v21, 1  ;;  %v4698_v19 = vsel %vm831_vm1, %v692_v62, -inf  ;;  %v6252_v45 = vrot.slane %v4612_v43, 1 }
 0x1f4   : > { %v4695_v14 = vmax.f32 %v1315_v33, %v1316_v25  ;;  %6251 = vst [vmem:[#allocation75_spill] sm:$0xff] %v4698_v19  ;;  %v572_v49 = vpop.f32.mrf.mxu0  ;;  %v1293_v0 = vmax.f32 %v1291_v8, %v1292_v31  ;;  %v1311_v46 = vrot.slane %v1310_v42, 2  ;;  %v1201_v60 = vrot.slane %v4633_v16, 1 }
 0x1f5   : > { %v4703_v53 = vmax.f32 %v4612_v43, %v6252_v45  ;;  %v4706_v44 = vmax.f32 %v1298_v21, %v1299_v7  ;;  %v2366_v5 = vpack.c.bf16 %v1286_v61, %v1286_v61  ;;  %v4710_v24 = vadd.f32 %v4651_v2, %v572_v49 }
 0x1f6   : > { %6250 = vst [vmem:[#allocation74_spill] sm:$0xff] %v4695_v14  ;;  %v2367_v62 = vpack.c.bf16 %v1293_v0, %v1293_v0  ;;  %v4713_v31 = vmax.f32 %v1322_v50, %v1323_v59  ;;  %v4716_v28 = vmax.f32 %v1310_v42, %v1311_v46  ;;  %v1207_v21 = vmax.f32 %v4625_v26, %v1206_v22 }
 0x1f7   : > { %6253 = vst [vmem:[#allocation76_spill] sm:$0xff] %v4706_v44  ;;  %v693_v43 = vrot.slane %v4710_v24, 2  ;;  %v694_v7 = vrot.slane %v4710_v24, 4  ;;  %v695_v61 = vrot.slane %v4710_v24, 6  ;;  %v1336_v49 = vsel %vm831_vm1, %v4710_v24, -inf }
 0x1f8   : > { %6254 = vst [vmem:[#allocation77_spill] sm:$0xff] %v4710_v24  ;;  %v4727_v59 = vmax.f32 %v4633_v16, %v1201_v60  ;;  %v4729_v50 = vunpack.c.l.b16 %v2366_v5  ;;  %v1337_v42 = vrot.slane %v1336_v49, 4  ;;  %v6258_v25 = vrot.slane %v4608_v18, 4 }
 0x1f9   : > { %6255 = vst [vmem:[#allocation78_spill] sm:$0xff] %v4713_v31  ;;  %v1343_v0 = vsel %vm831_vm1, %v693_v43, -inf  ;;  %v1350_v46 = vsel %vm831_vm1, %v694_v7, -inf  ;;  %v1357_v22 = vsel %vm831_vm1, %v695_v61, -inf  ;;  %v1208_v24 = vrot.slane %v1207_v21, 1 }
 0x1fa   : > { %6256 = vst [vmem:[#allocation79_spill] sm:$0xff] %v4716_v28  ;;  %v1344_v45 = vrot.slane %v1343_v0, 4  ;;  %v1351_v26 = vrot.slane %v1350_v46, 4  ;;  %v1212_v8 = vmax.f32 %v4608_v18, %v6258_v25  ;;  %v1338_v33 = vmax.f32 %v1336_v49, %v1337_v42 }
 0x1fb   : > { %6257 = vst [vmem:[#allocation80_spill] sm:$0xff] %v4729_v50  ;;  %v1358_v29 = vrot.slane %v1357_v22, 4  ;;  %v6259_v16 = vrot.slane %v4587_v15, 6  ;;  %v4740_v7 = vunpack.c.l.b16 %v2367_v62  ;;  %v1209_v20 = vmax.f32 %v1207_v21, %v1208_v24 }
 0x1fc   : > { %v1345_v5 = vmax.f32 %v1343_v0, %v1344_v45  ;;  %v1352_v51 = vmax.f32 %v1350_v46, %v1351_v26  ;;  %v1213_v43 = vrot.slane %v1212_v8, 2  ;;  %v1339_v61 = vrot.slane %v1338_v33, 2 }
 0x1fd   : > { %v1217_v60 = vsel %vm831_vm1, %v6259_v16, -inf  ;;  %6260 = vst [vmem:[#allocation81_spill] sm:$0xff] %v4740_v7  ;;  %v1359_v19 = vmax.f32 %v1357_v22, %v1358_v29  ;;  %v1250_v15 = vrot.slane %v4666_v3, 1  ;;  %v6261_v62 = vrot.slane %v4645_v27, 1 }
 0x1fe   : > { %v1218_v50 = vrot.slane %v1217_v60, 4  ;;  %v1346_v31 = vrot.slane %v1345_v5, 2  ;;  %v1353_v14 = vrot.slane %v1352_v51, 2  ;;  %v1214_v18 = vmax.f32 %v1212_v8, %v1213_v43 }
 0x1ff   : > { %v1340_v49 = vmax.f32 %v1338_v33, %v1339_v61  ;;  %v1360_v42 = vrot.slane %v1359_v19, 2  ;;  %v1244_v44 = vmax.f32 %v4645_v27, %v6261_v62  ;;  %v1257_v29 = vrot.slane %v4678_v38, 1 }
 0x200   : > { %v1219_v25 = vmax.f32 %v1217_v60, %v1218_v50  ;;  %v1347_v16 = vmax.f32 %v1345_v5, %v1346_v31  ;;  %v1354_v0 = vmax.f32 %v1352_v51, %v1353_v14  ;;  %v1215_v46 = vrot.slane %v1214_v18, 1 }
 0x201   : > { %v1341_v26 = vrot.slane %v1340_v49, 1  ;;  %v1262_v22 = vrot.slane %v4669_v56, 2  ;;  %v4749_v33 = vmax.f32 %v1359_v19, %v1360_v42  ;;  %v1251_v14 = vmax.f32 %v4666_v3, %v1250_v15  ;;  %v6301_v15 = vld [vmem:[#allocation41_spill] sm:$0xff] }
 0x202   : > { %v1220_v45 = vrot.slane %v1219_v25, 2  ;;  %v1348_v8 = vrot.slane %v1347_v16, 1  ;;  %v1355_v50 = vrot.slane %v1354_v0, 1  ;;  %v6264_v31 = vrot.slane %v4641_v39, 4 }
 0x203   : > { %6262 = vst [vmem:[#allocation82_spill] sm:$0xff] %v4749_v33  ;;  %v4751_v21 = vmax.f32 %v1340_v49, %v1341_v26  ;;  %v1263_v51 = vmax.f32 %v4669_v56, %v1262_v22  ;;  %v1216_v5 = vmax.f32 %v1214_v18, %v1215_v46  ;;  %v6266_v61 = vrot.slane %v4629_v30, 6 }
 0x204   : > { %v1221_v24 = vmax.f32 %v1219_v25, %v1220_v45  ;;  %v1268_v60 = vmax.f32 %v4641_v39, %v6264_v31  ;;  %v4758_v27 = vmax.f32 %v1347_v16, %v1348_v8  ;;  %v4763_v42 = vmax.f32 %v1354_v0, %v1355_v50 }
 0x205   : > { %6263 = vst [vmem:[#allocation83_spill] sm:$0xff] %v4751_v21  ;;  %v1273_v19 = vsel %vm831_vm1, %v6266_v61, -inf  ;;  %v1264_v25 = vrot.slane %v1263_v51, 1  ;;  %v1258_v39 = vmax.f32 %v4678_v38, %v1257_v29  ;;  %v1786_v0 = vpack.c.bf16 %v4674_v11, %v4674_v11 }
 0x206   : > { %6265 = vst [vmem:[#allocation84_spill] sm:$0xff] %v4758_v27  ;;  %v1222_v43 = vrot.slane %v1221_v24, 1  ;;  %v1269_v49 = vrot.slane %v1268_v60, 2  ;;  %v1274_v45 = vrot.slane %v1273_v19, 4  ;;  %v1787_v62 = vpack.c.bf16 %v4703_v53, %v4703_v53 }
 0x207   : > { %6267 = vst [vmem:[#allocation85_spill] sm:$0xff] %v4763_v42  ;;  %v1265_v16 = vmax.f32 %v1263_v51, %v1264_v25  ;;  %v1788_v22 = vpack.c.bf16 %v4727_v59, %v4727_v59  ;;  %v1789_v8 = vpack.c.bf16 %v1209_v20, %v1209_v20  ;;  %v1794_v51 = vpack.c.bf16 %v1244_v44, %v1244_v44 }
 0x208   : > { %v1223_v56 = vmax.f32 %v1221_v24, %v1222_v43  ;;  %v1270_v46 = vmax.f32 %v1268_v60, %v1269_v49  ;;  %v1275_v26 = vmax.f32 %v1273_v19, %v1274_v45  ;;  %v1790_v24 = vpack.c.bf16 %v1216_v5, %v1216_v5 }
 0x209   : > { %v1795_v60 = vpack.c.bf16 %v1251_v14, %v1251_v14  ;;  %v1796_v43 = vpack.c.bf16 %v1258_v39, %v1258_v39  ;;  %v1797_v11 = vpack.c.bf16 %v1265_v16, %v1265_v16  ;;  %v6268_v53 = vpack.c.bf16 %v4616_v4, %v4616_v4  ;;  %v574_v14 = vpop.f32.mrf.mxu0 }
 0x20a   : > { %v1271_v38 = vrot.slane %v1270_v46, 1  ;;  %v1276_v29 = vrot.slane %v1275_v26, 2  ;;  %v1791_v31 = vpack.c.bf16 %v1223_v56, %v1223_v56  ;;  %v1914_v49 = vunpack.c.l.b16 %v1786_v0 }
 0x20b   : > { %v1913_v25 = vunpack.c.l.b16 %v6268_v53  ;;  %v1915_v59 = vunpack.c.l.b16 %v1787_v62  ;;  %v1916_v20 = vunpack.c.l.b16 %v1788_v22  ;;  %v1917_v45 = vunpack.c.l.b16 %v1789_v8 }
 0x20c   : > { %v1272_v61 = vmax.f32 %v1270_v46, %v1271_v38  ;;  %v1277_v19 = vmax.f32 %v1275_v26, %v1276_v29  ;;  %v1918_v3 = vunpack.c.l.b16 %v1790_v24  ;;  %v6269_v5 = vpack.c.bf16 %v4661_v17, %v4661_v17 }
 0x20d   : > { %v1919_v56 = vunpack.c.l.b16 %v1791_v31  ;;  %v1922_v39 = vunpack.c.l.b16 %v1794_v51  ;;  %v1923_v46 = vunpack.c.l.b16 %v1795_v60  ;;  %v1924_v16 = vunpack.c.l.b16 %v1796_v43 }
 0x20e   : > { %v1278_v18 = vrot.slane %v1277_v19, 1  ;;  %v1798_v50 = vpack.c.bf16 %v1272_v61, %v1272_v61  ;;  %v1921_v44 = vunpack.c.l.b16 %v6269_v5  ;;  %v1925_v38 = vunpack.c.l.b16 %v1797_v11 }
 0x20f   : > { %v1977_v4 = vsel %vm1928_vm2, %v1913_v25, %v4643_v55  ;;  %v4792_v17 = vadd.f32 %v4651_v2, %v574_v14  ;;  %v6271_v31 = vrot.slane %v4452_v52, 2 }
 0x210   : > { %v1279_v26 = vmax.f32 %v1277_v19, %v1278_v18  ;;  %v1984_v0 = vsel %vm1928_vm2, %v1921_v44, %v4683_v32  ;;  %v1926_v62 = vunpack.c.l.b16 %v1798_v50  ;;  %v1978_v22 = vsel %vm1930_vm3, %v1914_v49, %v1977_v4 }
 0x211   : > { %v1985_v8 = vsel %vm1930_vm3, %v1922_v39, %v1984_v0  ;;  %6270 = vst [vmem:[#allocation86_spill] sm:$0xff] %v4792_v17  ;;  %v1979_v24 = vsel %vm1932_vm4, %v1915_v59, %v1978_v22  ;;  %v1095_v55 = vmax.f32 %v4452_v52, %v6271_v31  ;;  %v696_v50 = vrot.slane %v4792_v17, 2 }
 0x212   : > { %v1799_v29 = vpack.c.bf16 %v1279_v26, %v1279_v26  ;;  %v1986_v18 = vsel %vm1932_vm4, %v1923_v46, %v1985_v8  ;;  %v1980_v51 = vsel %vm1934_vm5, %v1916_v20, %v1979_v24  ;;  %v697_v60 = vrot.slane %v4792_v17, 4 }
 0x213   : > { %v1987_v32 = vsel %vm1934_vm5, %v1924_v16, %v1986_v18  ;;  %v1981_v61 = vsel %vm1936_vm6, %v1917_v45, %v1980_v51  ;;  %v698_v11 = vrot.slane %v4792_v17, 6  ;;  %v1364_v52 = vsel %vm831_vm1, %v4792_v17, -inf  ;;  %v577_v51 = vpop.f32.mrf.mxu0 }
 0x214   : > { %v1927_v43 = vunpack.c.l.b16 %v1799_v29  ;;  %v1988_v19 = vsel %vm1936_vm6, %v1925_v38, %v1987_v32  ;;  %v1982_v53 = vsel %vm1938_vm7, %v1918_v3, %v1981_v61  ;;  %v1371_v49 = vsel %vm831_vm1, %v696_v50, -inf }
 0x215   : > { %v1989_v25 = vsel %vm1938_vm7, %v1926_v62, %v1988_v19  ;;  %v1983_v59 = vsel %vm1940_vm8, %v1919_v56, %v1982_v53  ;;  %v1365_v5 = vrot.slane %v1364_v52, 4  ;;  %v1372_v44 = vrot.slane %v1371_v49, 4 }
 0x216   : > { %v1990_v20 = vsel %vm1940_vm8, %v1927_v43, %v1989_v25  ;;  %v1378_v14 = vsel %vm831_vm1, %v697_v60, -inf  ;;  %v4817_v39 = vsel %vm831_vm1, %v698_v11, -inf  ;;  %v1096_v3 = vrot.slane %v1095_v55, 1 }
 0x217   : > { %v4813_v45 = vpack.c.b16 %v1990_v20, %v1983_v59  ;;  %6273 = vst [vmem:[#allocation88_spill] sm:$0xff] %v4817_v39  ;;  %v1366_v46 = vmax.f32 %v1364_v52, %v1365_v5  ;;  %v4819_v16 = vmax.f32 %v1371_v49, %v1372_v44  ;;  %v1379_v26 = vrot.slane %v1378_v14, 4 }
 0x218   : > { %v6275_v38 = vrot.slane %v4465_v48, 1  ;;  %v1097_v0 = vmax.f32 %v1095_v55, %v1096_v3  ;;  %v1101_v62 = vrot.slane %v4457_v54, 2  ;;  %v6276_v22 = vrot.slane %v4450_v1, 4 }
 0x219   : > { %6272 = vst [vmem:[#allocation87_spill] sm:$0xff] %v4813_v45  ;;  %2001 = vrot.lane.b32.xlu2 %v4813_v45, %s3992_s23  ;;  %v1367_v29 = vrot.slane %v1366_v46, 2  ;;  %v4832_v18 = vmax.f32 %v1378_v14, %v1379_v26  ;;  %v6279_v55 = vrot.slane %v4569_v12, 2  ;;  %v1157_v43 = vrot.slane %v4584_v37, 2 }
 0x21a   : > { %6274 = vst [vmem:[#allocation89_spill] sm:$0xff] %v4819_v16  ;;  %v1090_v56 = vmax.f32 %v4465_v48, %v6275_v38  ;;  %v1107_v8 = vmax.f32 %v4450_v1, %v6276_v22  ;;  %v6278_v48 = vrot.slane %v4502_v35, 1  ;;  %v1102_v32 = vmax.f32 %v4457_v54, %v1101_v62 }
 0x21b   : > { %6277 = vst [vmem:[#allocation90_spill] sm:$0xff] %v4832_v18  ;;  %v1151_v60 = vmax.f32 %v4569_v12, %v6279_v55  ;;  %v4842_v1 = vmax.f32 %v1366_v46, %v1367_v29  ;;  %v6281_v61 = vrot.slane %v4589_v36, 1  ;;  %v6282_v11 = vrot.slane %v4562_v47, 4 }
 0x21c   : > { %v1139_v31 = vmax.f32 %v4502_v35, %v6278_v48  ;;  %v1108_v50 = vrot.slane %v1107_v8, 2  ;;  %v1771_v54 = vpack.c.bf16 %v4602_v63, %v4602_v63  ;;  %v1103_v53 = vrot.slane %v1102_v32, 1 }
 0x21d   : > { %6280 = vst [vmem:[#allocation91_spill] sm:$0xff] %v4842_v1  ;;  %v1146_v19 = vmax.f32 %v4589_v36, %v6281_v61  ;;  %v1163_v35 = vmax.f32 %v4562_v47, %v6282_v11  ;;  %v1152_v52 = vrot.slane %v1151_v60, 1  ;;  %v1158_v12 = vmax.f32 %v4584_v37, %v1157_v43  ;;  %v579_v11 = vpop.f32.mrf.mxu0 }
 0x21e   : > { %v1109_v25 = vmax.f32 %v1107_v8, %v1108_v50  ;;  %v1772_v20 = vpack.c.bf16 %v1090_v56, %v1090_v56  ;;  %v1773_v5 = vpack.c.bf16 %v1097_v0, %v1097_v0  ;;  %v1104_v44 = vmax.f32 %v1102_v32, %v1103_v53 }
 0x21f   : > { %v1164_v59 = vrot.slane %v1163_v35, 2  ;;  %v1153_v36 = vmax.f32 %v1151_v60, %v1152_v52  ;;  %v1159_v3 = vrot.slane %v1158_v12, 1  ;;  %v1779_v26 = vpack.c.bf16 %v1139_v31, %v1139_v31 }
 0x220   : > { %v1110_v14 = vrot.slane %v1109_v25, 1  ;;  %v1780_v47 = vpack.c.bf16 %v1146_v19, %v1146_v19  ;;  %v6283_v63 = vpack.c.bf16 %v4447_v10, %v4447_v10  ;;  %v1774_v8 = vpack.c.bf16 %v1104_v44, %v1104_v44 }
 0x221   : > { %v1165_v46 = vmax.f32 %v1163_v35, %v1164_v59  ;;  %v1160_v22 = vmax.f32 %v1158_v12, %v1159_v3  ;;  %v1781_v37 = vpack.c.bf16 %v1153_v36, %v1153_v36  ;;  %v1899_v48 = vunpack.c.l.b16 %v1771_v54 }
 0x222   : > { %v1898_v38 = vunpack.c.l.b16 %v6283_v63  ;;  %v1111_v62 = vmax.f32 %v1109_v25, %v1110_v14  ;;  %v1900_v50 = vunpack.c.l.b16 %v1772_v20  ;;  %v6284_v56 = vpack.c.bf16 %v4516_v41, %v4516_v41 }
 0x223   : > { %v1166_v29 = vrot.slane %v1165_v46, 1  ;;  %v1782_v55 = vpack.c.bf16 %v1160_v22, %v1160_v22  ;;  %v1901_v60 = vunpack.c.l.b16 %v1773_v5  ;;  %v1902_v31 = vunpack.c.l.b16 %v1774_v8 }
 0x224   : > { %v1906_v0 = vunpack.c.l.b16 %v6284_v56  ;;  %v1775_v32 = vpack.c.bf16 %v1111_v62, %v1111_v62  ;;  %v1907_v61 = vunpack.c.l.b16 %v1779_v26  ;;  %v1908_v19 = vunpack.c.l.b16 %v1780_v47 }
 0x225   : > { %v1167_v43 = vmax.f32 %v1165_v46, %v1166_v29  ;;  %v1963_v10 = vsel %vm1928_vm2, %v4482_v34, %v4474_v23  ;;  %v1909_v35 = vunpack.c.l.b16 %v1781_v37  ;;  %v1910_v53 = vunpack.c.l.b16 %v1782_v55 }
 0x226   : > { %v1964_v54 = vsel %vm1930_vm3, %v1898_v38, %v1963_v10  ;;  %v1970_v41 = vsel %vm1928_vm2, %v4575_v40, %v4556_v9  ;;  %v4870_v59 = vadd.f32 %v4651_v2, %v577_v51  ;;  %v1903_v20 = vunpack.c.l.b16 %v1775_v32 }
 0x227   : > { %v1783_v25 = vpack.c.bf16 %v1167_v43, %v1167_v43  ;;  %v1965_v52 = vsel %vm1932_vm4, %v1899_v48, %v1964_v54  ;;  %v1971_v12 = vsel %vm1930_vm3, %v1906_v0, %v1970_v41  ;;  %v4875_v5 = vadd.f32 %v4651_v2, %v579_v11 }
 0x228   : > { %6285 = vst [vmem:[#allocation92_spill] sm:$0xff] %v4870_v59  ;;  %v1966_v23 = vsel %vm1934_vm5, %v1900_v50, %v1965_v52  ;;  %v1972_v34 = vsel %vm1932_vm4, %v1907_v61, %v1971_v12  ;;  %v699_v40 = vrot.slane %v4870_v59, 2  ;;  %v700_v3 = vrot.slane %v4870_v59, 4  ;;  %v4906_v12 = vpop.f32.mrf.mxu0 }
 0x229   : > { %6286 = vst [vmem:[#allocation93_spill] sm:$0xff] %v4875_v5  ;;  %v1911_v44 = vunpack.c.l.b16 %v1783_v25  ;;  %v1967_v14 = vsel %vm1936_vm6, %v1901_v60, %v1966_v23  ;;  %v1973_v9 = vsel %vm1934_vm5, %v1908_v19, %v1972_v34  ;;  %v701_v46 = vrot.slane %v4870_v59, 6 }
 0x22a   : > { %v1968_v36 = vsel %vm1938_vm7, %v1902_v31, %v1967_v14  ;;  %v1974_v51 = vsel %vm1936_vm6, %v1909_v35, %v1973_v9  ;;  %v1392_v63 = vsel %vm831_vm1, %v4870_v59, -inf  ;;  %v1399_v38 = vsel %vm831_vm1, %v699_v40, -inf }
 0x22b   : > { %v1969_v26 = vsel %vm1940_vm8, %v1903_v20, %v1968_v36  ;;  %v1975_v47 = vsel %vm1938_vm7, %v1910_v53, %v1974_v51  ;;  %v1393_v22 = vrot.slane %v1392_v63, 4  ;;  %v1400_v8 = vrot.slane %v1399_v38, 4 }
 0x22c   : > { %v1976_v62 = vsel %vm1940_vm8, %v1911_v44, %v1975_v47  ;;  %v1406_v37 = vsel %vm831_vm1, %v700_v3, -inf  ;;  %v1413_v50 = vsel %vm831_vm1, %v701_v46, -inf  ;;  %v702_v56 = vrot.slane %v4875_v5, 2 }
 0x22d   : > { %v4891_v29 = vpack.c.b16 %v1976_v62, %v1969_v26  ;;  %v1407_v48 = vrot.slane %v1406_v37, 4  ;;  %v1394_v0 = vmax.f32 %v1392_v63, %v1393_v22  ;;  %v1401_v32 = vmax.f32 %v1399_v38, %v1400_v8 }
 0x22e   : > { %v1414_v55 = vrot.slane %v1413_v50, 4  ;;  %v703_v60 = vrot.slane %v4875_v5, 4  ;;  %v704_v43 = vrot.slane %v4875_v5, 6  ;;  %v1420_v61 = vsel %vm831_vm1, %v4875_v5, -inf }
 0x22f   : > { %6287 = vst [vmem:[#allocation94_spill] sm:$0xff] %v4891_v29  ;;  %1999 = vrot.lane.b32.xlu2 %v4891_v29, %s3992_s23  ;;  %v1408_v31 = vmax.f32 %v1406_v37, %v1407_v48  ;;  %v1427_v19 = vsel %vm831_vm1, %v702_v56, -inf  ;;  %v1395_v10 = vrot.slane %v1394_v0, 2  ;;  %v1402_v11 = vrot.slane %v1401_v32, 2 }
 0x230   : > { %v1415_v35 = vmax.f32 %v1413_v50, %v1414_v55  ;;  %v1421_v53 = vrot.slane %v1420_v61, 4  ;;  %v1428_v41 = vrot.slane %v1427_v19, 4  ;;  %v1434_v25 = vsel %vm831_vm1, %v703_v60, -inf }
 0x231   : > { %v1409_v54 = vrot.slane %v1408_v31, 2  ;;  %v4904_v52 = vsel %vm831_vm1, %v704_v43, -inf  ;;  %v1396_v20 = vmax.f32 %v1394_v0, %v1395_v10  ;;  %v1403_v23 = vmax.f32 %v1401_v32, %v1402_v11  ;;  %v6289_v32 = vld [vmem:[#allocation42_spill] sm:$0xff] }
 0x232   : > { %v1416_v34 = vrot.slane %v1415_v35, 2  ;;  %v1422_v44 = vmax.f32 %v1420_v61, %v1421_v53  ;;  %v4908_v9 = vmax.f32 %v1427_v19, %v1428_v41  ;;  %v1435_v40 = vrot.slane %v1434_v25, 4  ;;  %v6291_v19 = vld [vmem:[#allocation36_spill] sm:$0xff] }
 0x233   : > { %v1410_v14 = vmax.f32 %v1408_v31, %v1409_v54  ;;  %v6288_v36 = vrot.slane %v4281_v13, 1  ;;  %v1397_v3 = vrot.slane %v1396_v20, 1  ;;  %v1404_v46 = vrot.slane %v1403_v23, 1 }
 0x234   : > { %v4913_v26 = vmax.f32 %v1415_v35, %v1416_v34  ;;  %v1423_v47 = vrot.slane %v1422_v44, 2  ;;  %v865_v22 = vrot.slane %v4306_v6, 1  ;;  %v4922_v50 = vmax.f32 %v1434_v25, %v1435_v40 }
 0x235   : > { %v859_v51 = vmax.f32 %v4281_v13, %v6288_v36  ;;  %v1411_v63 = vrot.slane %v1410_v14, 1  ;;  %v1398_v8 = vmax.f32 %v1396_v20, %v1397_v3  ;;  %v4918_v37 = vmax.f32 %v1403_v23, %v1404_v46  ;;  %v6293_v20 = vld [vmem:[#allocation43_spill] sm:$0xff]  ;;  %v6296_v46 = vld [vmem:[#allocation50_spill] sm:$0xff] }
 0x236   : > { %v4920_v48 = vmax.f32 %v1422_v44, %v1423_v47  ;;  %v870_v0 = vrot.slane %v4298_v57, 2  ;;  %v6290_v55 = vrot.slane %v6289_v32, 4  ;;  %v866_v61 = vmax.f32 %v4306_v6, %v865_v22  ;;  %v6295_v6 = vld [vmem:[#allocation54_spill] sm:$0xff] }
 0x237   : > { %v4924_v13 = vmax.f32 %v1410_v14, %v1411_v63  ;;  %1997 = vrot.lane.b32.xlu2 %v4558_v58, %s3992_s23  ;;  %v2382_v31 = vpack.c.bf16 %v1398_v8, %v1398_v8  ;;  %v2383_v43 = vpack.c.bf16 %v4918_v37, %v4918_v37  ;;  %v6292_v10 = vrot.slane %v6291_v19, 6  ;;  %v4949_v14 = vpop.f32.mrf.mxu0  ;;  %v6297_v63 = vld [vmem:[#allocation48_spill] sm:$0xff]  ;;  %v6299_v37 = vld [vmem:[#allocation39_spill] sm:$0xff] }
 0x238   : > { %v876_v60 = vmax.f32 %v6289_v32, %v6290_v55  ;;  %v871_v58 = vmax.f32 %v4298_v57, %v870_v0  ;;  %v6294_v23 = vrot.slane %v6293_v20, 1  ;;  %v921_v44 = vrot.slane %v6295_v6, 1 }
 0x239   : > { %v881_v11 = vsel %vm831_vm1, %v6292_v10, -inf  ;;  %v4943_v25 = vunpack.c.l.b16 %v2382_v31  ;;  %v926_v57 = vrot.slane %v6296_v46, 2  ;;  %v6298_v22 = vrot.slane %v6297_v63, 4 }
 0x23a   : > { %v877_v53 = vrot.slane %v876_v60, 2  ;;  %v882_v54 = vrot.slane %v881_v11, 4  ;;  %v915_v34 = vmax.f32 %v6293_v20, %v6294_v23  ;;  %v872_v40 = vrot.slane %v871_v58, 1 }
 0x23b   : > { %v922_v47 = vmax.f32 %v6295_v6, %v921_v44  ;;  %v932_v8 = vmax.f32 %v6297_v63, %v6298_v22  ;;  %v6300_v0 = vrot.slane %v6299_v37, 6  ;;  %v1739_v55 = vpack.c.bf16 %v859_v51, %v859_v51 }
 0x23c   : > { %v878_v36 = vmax.f32 %v876_v60, %v877_v53  ;;  %v883_v3 = vmax.f32 %v881_v11, %v882_v54  ;;  %v873_v31 = vmax.f32 %v871_v58, %v872_v40  ;;  %v927_v23 = vmax.f32 %v6296_v46, %v926_v57 }
 0x23d   : > { %v937_v32 = vsel %vm831_vm1, %v6300_v0, -inf  ;;  %v933_v60 = vrot.slane %v932_v8, 2  ;;  %v1740_v53 = vpack.c.bf16 %v866_v61, %v866_v61  ;;  %v1747_v54 = vpack.c.bf16 %v915_v34, %v915_v34 }
 0x23e   : > { %v879_v10 = vrot.slane %v878_v36, 1  ;;  %v884_v20 = vrot.slane %v883_v3, 2  ;;  %v938_v11 = vrot.slane %v937_v32, 4  ;;  %v928_v44 = vrot.slane %v927_v23, 1 }
 0x23f   : > { %v1741_v24 = vpack.c.bf16 %v873_v31, %v873_v31  ;;  %v934_v49 = vmax.f32 %v932_v8, %v933_v60  ;;  %v1748_v22 = vpack.c.bf16 %v922_v47, %v922_v47  ;;  %v6302_v0 = vpack.c.bf16 %v6301_v15, %v6301_v15  ;;  %v587_v34 = vpop.f32.mrf.mxu0  ;;  %v6303_v31 = vld [vmem:[#allocation49_spill] sm:$0xff] }
 0x240   : > { %v880_v4 = vmax.f32 %v878_v36, %v879_v10  ;;  %v885_v6 = vmax.f32 %v883_v3, %v884_v20  ;;  %v939_v63 = vmax.f32 %v937_v32, %v938_v11  ;;  %v929_v40 = vmax.f32 %v927_v23, %v928_v44 }
 0x241   : > { %v1866_v51 = vunpack.c.l.b16 %v6302_v0  ;;  %v1867_v62 = vunpack.c.l.b16 %v1739_v55  ;;  %v935_v46 = vrot.slane %v934_v49, 1  ;;  %v1868_v38 = vunpack.c.l.b16 %v1740_v53  ;;  %v6306_v55 = vld [vmem:[#allocation47_spill] sm:$0xff]  ;;  %v6307_v53 = vld [vmem:[#allocation53_spill] sm:$0xff] }
 0x242   : > { %v886_v58 = vrot.slane %v885_v6, 1  ;;  %v1742_v41 = vpack.c.bf16 %v880_v4, %v880_v4  ;;  %v940_v57 = vrot.slane %v939_v63, 2  ;;  %v1869_v61 = vunpack.c.l.b16 %v1741_v24  ;;  %v6305_v4 = vld [vmem:[#allocation44_spill] sm:$0xff]  ;;  %v6308_v24 = vld [vmem:[#allocation55_spill] sm:$0xff] }
 0x243   : > { %v1749_v3 = vpack.c.bf16 %v929_v40, %v929_v40  ;;  %v6304_v8 = vpack.c.bf16 %v6303_v31, %v6303_v31  ;;  %v936_v32 = vmax.f32 %v934_v49, %v935_v46  ;;  %v1875_v15 = vunpack.c.l.b16 %v1747_v54 }
 0x244   : > { %v887_v36 = vmax.f32 %v885_v6, %v886_v58  ;;  %v1870_v10 = vunpack.c.l.b16 %v1742_v41  ;;  %v941_v20 = vmax.f32 %v939_v63, %v940_v57  ;;  %v1876_v60 = vunpack.c.l.b16 %v1748_v22 }
 0x245   : > { %v1874_v47 = vunpack.c.l.b16 %v6304_v8  ;;  %v1877_v23 = vunpack.c.l.b16 %v1749_v3  ;;  %v1929_v44 = vsel %vm1928_vm2, %v6306_v55, %v6305_v4  ;;  %v1942_v6 = vsel %vm1928_vm2, %v6308_v24, %v6307_v53 }
 0x246   : > { %v1743_v11 = vpack.c.bf16 %v887_v36, %v887_v36  ;;  %v942_v0 = vrot.slane %v941_v20, 1  ;;  %v1750_v41 = vpack.c.bf16 %v936_v32, %v936_v32  ;;  %v1931_v58 = vsel %vm1930_vm3, %v1866_v51, %v1929_v44 }
 0x247   : > { %v1943_v40 = vsel %vm1930_vm3, %v1874_v47, %v1942_v6  ;;  %v4974_v49 = vunpack.c.l.b16 %v2383_v43  ;;  %v1933_v54 = vsel %vm1932_vm4, %v1867_v62, %v1931_v58  ;;  %v4980_v22 = vadd.f32 %v4651_v2, %v4906_v12 }
 0x248   : > { %v1944_v63 = vsel %vm1932_vm4, %v1875_v15, %v1943_v40  ;;  %v943_v46 = vmax.f32 %v941_v20, %v942_v0  ;;  %v1878_v57 = vunpack.c.l.b16 %v1750_v41  ;;  %v1935_v36 = vsel %vm1934_vm5, %v1868_v38, %v1933_v54  ;;  %v589_v20 = vpop.f32.mrf.mxu0 }
 0x249   : > { %6309 = vst [vmem:[#allocation42_spill] sm:$0xff] %v4974_v49  ;;  %v1945_v3 = vsel %vm1934_vm5, %v1876_v60, %v1944_v63  ;;  %v1937_v51 = vsel %vm1936_vm6, %v1869_v61, %v1935_v36  ;;  %v705_v43 = vrot.slane %v4980_v22, 2  ;;  %v706_v62 = vrot.slane %v4980_v22, 4 }
 0x24a   : > { %6310 = vst [vmem:[#allocation36_spill] sm:$0xff] %v4980_v22  ;;  %v1946_v31 = vsel %vm1936_vm6, %v1877_v23, %v1945_v3  ;;  %v1751_v8 = vpack.c.bf16 %v943_v46, %v943_v46  ;;  %v1871_v47 = vunpack.c.l.b16 %v1743_v11  ;;  %v1939_v32 = vsel %vm1938_vm7, %v1870_v10, %v1937_v51 }
 0x24b   : > { %v707_v12 = vrot.slane %v4980_v22, 6  ;;  %v1947_v15 = vsel %vm1938_vm7, %v1878_v57, %v1946_v31  ;;  %v1448_v38 = vsel %vm831_vm1, %v4980_v22, -inf  ;;  %v1455_v61 = vsel %vm831_vm1, %v705_v43, -inf }
 0x24c   : > { %v1462_v60 = vsel %vm831_vm1, %v706_v62, -inf  ;;  %v1879_v23 = vunpack.c.l.b16 %v1751_v8  ;;  %v1449_v4 = vrot.slane %v1448_v38, 4  ;;  %v1456_v55 = vrot.slane %v1455_v61, 4 }
 0x24d   : > { %v1463_v44 = vrot.slane %v1462_v60, 4  ;;  %v1941_v11 = vsel %vm1940_vm8, %v1871_v47, %v1939_v32  ;;  %v1469_v10 = vsel %vm831_vm1, %v707_v12, -inf  ;;  %v4999_v53 = vadd.f32 %v4651_v2, %v4949_v14 }
 0x24e   : > { %v5002_v24 = vadd.f32 %v4651_v2, %v587_v34  ;;  %v1948_v6 = vsel %vm1940_vm8, %v1879_v23, %v1947_v15  ;;  %v1450_v0 = vmax.f32 %v1448_v38, %v1449_v4  ;;  %v1457_v41 = vmax.f32 %v1455_v61, %v1456_v55 }
 0x24f   : > { %6311 = vst [vmem:[#allocation43_spill] sm:$0xff] %v4999_v53  ;;  %v1464_v58 = vmax.f32 %v1462_v60, %v1463_v44  ;;  %v5005_v40 = vpack.c.b16 %v1948_v6, %v1941_v11  ;;  %v1470_v54 = vrot.slane %v1469_v10, 4  ;;  %v708_v63 = vrot.slane %v4999_v53, 2 }
 0x250   : > { %6312 = vst [vmem:[#allocation54_spill] sm:$0xff] %v5002_v24  ;;  %v709_v46 = vrot.slane %v4999_v53, 4  ;;  %v1451_v57 = vrot.slane %v1450_v0, 2  ;;  %v1458_v36 = vrot.slane %v1457_v41, 2  ;;  %v710_v14 = vrot.slane %v4999_v53, 6  ;;  %v5016_v12 = vpop.f32.mrf.mxu0 }
 0x251   : > { %6313 = vst [vmem:[#allocation50_spill] sm:$0xff] %v5005_v40  ;;  %v1465_v3 = vrot.slane %v1464_v58, 2  ;;  %1995 = vrot.lane.b32.xlu2 %v5005_v40, %s3992_s23  ;;  %v1471_v34 = vmax.f32 %v1469_v10, %v1470_v54  ;;  %v1476_v51 = vsel %vm831_vm1, %v4999_v53, -inf  ;;  %v1483_v31 = vsel %vm831_vm1, %v708_v63, -inf }
 0x252   : > { %v1490_v43 = vsel %vm831_vm1, %v709_v46, -inf  ;;  %v1452_v62 = vmax.f32 %v1450_v0, %v1451_v57  ;;  %v1459_v8 = vmax.f32 %v1457_v41, %v1458_v36  ;;  %v1477_v32 = vrot.slane %v1476_v51, 4 }
 0x253   : > { %v1466_v47 = vmax.f32 %v1464_v58, %v1465_v3  ;;  %v1472_v15 = vrot.slane %v1471_v34, 2  ;;  %v1484_v38 = vrot.slane %v1483_v31, 4  ;;  %v1491_v61 = vrot.slane %v1490_v43, 4 }
 0x254   : > { %v5019_v60 = vsel %vm831_vm1, %v710_v14, -inf  ;;  %v1453_v23 = vrot.slane %v1452_v62, 1  ;;  %v1460_v4 = vrot.slane %v1459_v8, 1  ;;  %v1478_v44 = vmax.f32 %v1476_v51, %v1477_v32 }
 0x255   : > { %v1467_v55 = vrot.slane %v1466_v47, 1  ;;  %v5021_v11 = vmax.f32 %v1471_v34, %v1472_v15  ;;  %v5023_v10 = vmax.f32 %v1483_v31, %v1484_v38  ;;  %v5025_v6 = vmax.f32 %v1490_v43, %v1491_v61 }
 0x256   : > { %v5028_v0 = vadd.f32 %v4651_v2, %v589_v20  ;;  %v1454_v41 = vmax.f32 %v1452_v62, %v1453_v23  ;;  %v1461_v58 = vmax.f32 %v1459_v8, %v1460_v4  ;;  %v1479_v63 = vrot.slane %v1478_v44, 2 }
 0x257   : > { %v5030_v54 = vmax.f32 %v1466_v47, %v1467_v55  ;;  %v711_v36 = vrot.slane %v5002_v24, 2  ;;  %v712_v3 = vrot.slane %v5002_v24, 4  ;;  %v713_v20 = vrot.slane %v5002_v24, 6 }
 0x258   : > { %6314 = vst [vmem:[#allocation48_spill] sm:$0xff] %v5028_v0  ;;  %v2390_v14 = vpack.c.bf16 %v1454_v41, %v1454_v41  ;;  %v2391_v34 = vpack.c.bf16 %v1461_v58, %v1461_v58  ;;  %v1504_v31 = vsel %vm831_vm1, %v5002_v24, -inf  ;;  %v5048_v32 = vmax.f32 %v1478_v44, %v1479_v63  ;;  %v594_v38 = vpop.f32.mrf.mxu0 }
 0x259   : > { %v1511_v43 = vsel %vm831_vm1, %v711_v36, -inf  ;;  %v1518_v62 = vsel %vm831_vm1, %v712_v3, -inf  ;;  %v1505_v15 = vrot.slane %v1504_v31, 4  ;;  %v1525_v4 = vsel %vm831_vm1, %v713_v20, -inf }
 0x25a   : > { %v5044_v8 = vunpack.c.l.b16 %v2390_v14  ;;  %v5046_v47 = vunpack.c.l.b16 %v2391_v34  ;;  %v1512_v61 = vrot.slane %v1511_v43, 4  ;;  %v1519_v23 = vrot.slane %v1518_v62, 4 }
 0x25b   : > { %v714_v55 = vrot.slane %v5028_v0, 2  ;;  %v1506_v41 = vmax.f32 %v1504_v31, %v1505_v15  ;;  %v1526_v58 = vrot.slane %v1525_v4, 4  ;;  %v715_v36 = vrot.slane %v5028_v0, 4 }
 0x25c   : > { %6315 = vst [vmem:[#allocation41_spill] sm:$0xff] %v5044_v8  ;;  %v716_v3 = vrot.slane %v5028_v0, 6  ;;  %v1513_v14 = vmax.f32 %v1511_v43, %v1512_v61  ;;  %v1520_v51 = vmax.f32 %v1518_v62, %v1519_v23  ;;  %v1532_v44 = vsel %vm831_vm1, %v5028_v0, -inf }
 0x25d   : > { %6316 = vst [vmem:[#allocation49_spill] sm:$0xff] %v5046_v47  ;;  %v1539_v63 = vsel %vm831_vm1, %v714_v55, -inf  ;;  %v1507_v34 = vrot.slane %v1506_v41, 2  ;;  %v1527_v57 = vmax.f32 %v1525_v4, %v1526_v58  ;;  %v1533_v2 = vrot.slane %v1532_v44, 4 }
 0x25e   : > { %v1540_v46 = vrot.slane %v1539_v63, 4  ;;  %v1514_v20 = vrot.slane %v1513_v14, 2  ;;  %v1521_v35 = vrot.slane %v1520_v51, 2  ;;  %v1546_v31 = vsel %vm831_vm1, %v715_v36, -inf }
 0x25f   : > { %v5059_v15 = vsel %vm831_vm1, %v716_v3, -inf  ;;  %v1508_v56 = vmax.f32 %v1506_v41, %v1507_v34  ;;  %v1528_v24 = vrot.slane %v1527_v57, 2  ;;  %v1534_v43 = vmax.f32 %v1532_v44, %v1533_v2 }
 0x260   : > { %v5061_v62 = vmax.f32 %v1539_v63, %v1540_v46  ;;  %v1515_v23 = vmax.f32 %v1513_v14, %v1514_v20  ;;  %v1522_v55 = vmax.f32 %v1520_v51, %v1521_v35  ;;  %v1547_v0 = vrot.slane %v1546_v31, 4  ;;  %v5067_v36 = vpop.f32.mrf.mxu0  ;;  %v5073_v46 = vld [vmem:[%s6060_s2] ss:$0 sm:$0xff] }
 0x261   : > { %v1509_v4 = vrot.slane %v1508_v56, 1  ;;  %v5064_v58 = vmax.f32 %v1527_v57, %v1528_v24  ;;  %v1535_v53 = vrot.slane %v1534_v43, 2  ;;  %v5077_v35 = vadd.f32 %v5073_v46, %v5016_v12 }
 0x262   : > { %v1516_v3 = vrot.slane %v1515_v23, 1  ;;  %v1523_v5 = vrot.slane %v1522_v55, 1  ;;  %v5082_v2 = vmax.f32 %v1546_v31, %v1547_v0 }
 0x263   : > { %6317 = vst [vmem:[#allocation44_spill] sm:$0xff] %v5077_v35  ;;  %v1510_v24 = vmax.f32 %v1508_v56, %v1509_v4  ;;  %v5080_v51 = vmax.f32 %v1534_v43, %v1535_v53  ;;  %v717_v63 = vrot.slane %v5077_v35, 2  ;;  %v718_v34 = vrot.slane %v5077_v35, 4 }
 0x264   : > { %v1517_v14 = vmax.f32 %v1515_v23, %v1516_v3  ;;  %v5084_v44 = vmax.f32 %v1522_v55, %v1523_v5  ;;  %v719_v61 = vrot.slane %v5077_v35, 6  ;;  %v1560_v12 = vsel %vm831_vm1, %v5077_v35, -inf }
 0x265   : > { %v2398_v20 = vpack.c.bf16 %v1510_v24, %v1510_v24  ;;  %v5092_v56 = vadd.f32 %v5073_v46, %v594_v38  ;;  %v1561_v31 = vrot.slane %v1560_v12, 4  ;;  %v1567_v5 = vsel %vm831_vm1, %v717_v63, -inf }
 0x266   : > { %v2399_v53 = vpack.c.bf16 %v1517_v14, %v1517_v14  ;;  %v1568_v23 = vrot.slane %v1567_v5, 4  ;;  %v1574_v55 = vsel %vm831_vm1, %v718_v34, -inf  ;;  %v1581_v4 = vsel %vm831_vm1, %v719_v61, -inf }
 0x267   : > { %6318 = vst [vmem:[#allocation47_spill] sm:$0xff] %v5092_v56  ;;  %v5100_v3 = vunpack.c.l.b16 %v2398_v20  ;;  %v1562_v24 = vmax.f32 %v1560_v12, %v1561_v31  ;;  %v1575_v22 = vrot.slane %v1574_v55, 4  ;;  %v1582_v38 = vrot.slane %v1581_v4, 4 }
 0x268   : > { %v1569_v41 = vmax.f32 %v1567_v5, %v1568_v23  ;;  %v720_v14 = vrot.slane %v5092_v56, 2  ;;  %v721_v0 = vrot.slane %v5092_v56, 4  ;;  %v722_v63 = vrot.slane %v5092_v56, 6  ;;  %v599_v57 = vpop.f32.mrf.mxu0 }
 0x269   : > { %v1563_v35 = vrot.slane %v1562_v24, 2  ;;  %v1576_v43 = vmax.f32 %v1574_v55, %v1575_v22  ;;  %v1583_v59 = vmax.f32 %v1581_v4, %v1582_v38  ;;  %v1588_v34 = vsel %vm831_vm1, %v5092_v56, -inf }
 0x26a   : > { %v1570_v61 = vrot.slane %v1569_v41, 2  ;;  %v1589_v20 = vrot.slane %v1588_v34, 4  ;;  %v1595_v12 = vsel %vm831_vm1, %v720_v14, -inf  ;;  %v1602_v31 = vsel %vm831_vm1, %v721_v0, -inf }
 0x26b   : > { %v1564_v5 = vmax.f32 %v1562_v24, %v1563_v35  ;;  %v1577_v23 = vrot.slane %v1576_v43, 2  ;;  %v1584_v40 = vrot.slane %v1583_v59, 2  ;;  %v1596_v17 = vrot.slane %v1595_v12, 4 }
 0x26c   : > { %v1571_v30 = vmax.f32 %v1569_v41, %v1570_v61  ;;  %v1590_v29 = vmax.f32 %v1588_v34, %v1589_v20  ;;  %v1603_v45 = vrot.slane %v1602_v31, 4  ;;  %v5110_v7 = vsel %vm831_vm1, %v722_v63, -inf }
 0x26d   : > { %v1565_v22 = vrot.slane %v1564_v5, 1  ;;  %v1578_v55 = vmax.f32 %v1576_v43, %v1577_v23  ;;  %v5112_v4 = vmax.f32 %v1583_v59, %v1584_v40  ;;  %v5114_v38 = vmax.f32 %v1595_v12, %v1596_v17 }
 0x26e   : > { %v5116_v56 = vunpack.c.l.b16 %v2399_v53  ;;  %v1572_v14 = vrot.slane %v1571_v30, 1  ;;  %v1591_v0 = vrot.slane %v1590_v29, 2  ;;  %v5118_v35 = vmax.f32 %v1602_v31, %v1603_v45 }
 0x26f   : > { %v1566_v24 = vmax.f32 %v1564_v5, %v1565_v22  ;;  %v1579_v42 = vrot.slane %v1578_v55, 1  ;;  %v5127_v17 = vadd.f32 %v5073_v46, %v5067_v36  ;;  %v5132_v43 = vadd.f32 %v5073_v46, %v599_v57 }
 0x270   : > { %v1573_v63 = vmax.f32 %v1571_v30, %v1572_v14  ;;  %v5122_v61 = vmax.f32 %v1590_v29, %v1591_v0  ;;  %v602_v40 = vpop.f32.mrf.mxu0 }
 0x271   : > { %6319 = vst [vmem:[#allocation53_spill] sm:$0xff] %v5127_v17  ;;  %v5129_v53 = vmax.f32 %v1578_v55, %v1579_v42  ;;  %v2406_v45 = vpack.c.bf16 %v1566_v24, %v1566_v24  ;;  %v5135_v20 = vadd.f32 %v5073_v46, %v602_v40  ;;  %v723_v29 = vrot.slane %v5127_v17, 2 }
 0x272   : > { %6320 = vst [vmem:[#allocation55_spill] sm:$0xff] %v5132_v43  ;;  %v2407_v12 = vpack.c.bf16 %v1573_v63, %v1573_v63  ;;  %v724_v31 = vrot.slane %v5127_v17, 4  ;;  %v725_v5 = vrot.slane %v5127_v17, 6  ;;  %v1616_v57 = vsel %vm831_vm1, %v5127_v17, -inf }
 0x273   : > { %6321 = vst [vmem:[#allocation95_spill] sm:$0xff] %v5135_v20  ;;  %v5142_v42 = vunpack.c.l.b16 %v2406_v45  ;;  %v1617_v22 = vrot.slane %v1616_v57, 4  ;;  %v1623_v55 = vsel %vm831_vm1, %v723_v29, -inf  ;;  %v726_v40 = vrot.slane %v5132_v43, 2 }
 0x274   : > { %v5147_v23 = vunpack.c.l.b16 %v2407_v12  ;;  %v1630_v14 = vsel %vm831_vm1, %v724_v31, -inf  ;;  %v1624_v0 = vrot.slane %v1623_v55, 4  ;;  %v1637_v63 = vsel %vm831_vm1, %v725_v5, -inf }
 0x275   : > { %v1631_v24 = vrot.slane %v1630_v14, 4  ;;  %v1618_v45 = vmax.f32 %v1616_v57, %v1617_v22  ;;  %v1638_v36 = vrot.slane %v1637_v63, 4  ;;  %v727_v34 = vrot.slane %v5132_v43, 4 }
 0x276   : > { %v728_v59 = vrot.slane %v5132_v43, 6  ;;  %v1625_v30 = vmax.f32 %v1623_v55, %v1624_v0  ;;  %v1644_v41 = vsel %vm831_vm1, %v5132_v43, -inf  ;;  %v1651_v29 = vsel %vm831_vm1, %v726_v40, -inf  ;;  %v2002_v0 = vpop.permute.xlu2 %2001 }
 0x277   : > { %v1632_v12 = vmax.f32 %v1630_v14, %v1631_v24  ;;  %v1619_v31 = vrot.slane %v1618_v45, 2  ;;  %v1639_v17 = vmax.f32 %v1637_v63, %v1638_v36  ;;  %v1645_v27 = vrot.slane %v1644_v41, 4 }
 0x278   : > { %v1652_v33 = vrot.slane %v1651_v29, 4  ;;  %v1626_v5 = vrot.slane %v1625_v30, 2  ;;  %v1658_v57 = vsel %vm831_vm1, %v727_v34, -inf  ;;  %v5160_v22 = vsel %vm831_vm1, %v728_v59, -inf }
 0x279   : > { %v1633_v39 = vrot.slane %v1632_v12, 2  ;;  %v1620_v18 = vmax.f32 %v1618_v45, %v1619_v31  ;;  %v1640_v16 = vrot.slane %v1639_v17, 2  ;;  %v1646_v55 = vmax.f32 %v1644_v41, %v1645_v27 }
 0x27a   : > { %v5162_v14 = vmax.f32 %v1651_v29, %v1652_v33  ;;  %v1627_v24 = vmax.f32 %v1625_v30, %v1626_v5  ;;  %v1659_v40 = vrot.slane %v1658_v57, 4  ;;  %v2038_v27 = vsel %vm2003_vm9, %v2002_v0, 0 }
 0x27b   : > { %v1634_v43 = vmax.f32 %v1632_v12, %v1633_v39  ;;  %v1621_v63 = vrot.slane %v1620_v18, 1  ;;  %v5165_v1 = vmax.f32 %v1639_v17, %v1640_v16  ;;  %v1647_v21 = vrot.slane %v1646_v55, 2  ;;  %2044 = vmatpush.bf16.xpose.msra.mxu3 %v2038_v27 }
 0x27c   : > { %v1628_v28 = vrot.slane %v1627_v24, 1  ;;  %v5168_v37 = vmax.f32 %v1658_v57, %v1659_v40  ;;  %v729_v39 = vrot.slane %v5135_v20, 2  ;;  %v730_v17 = vrot.slane %v5135_v20, 4 }
 0x27d   : > { %v1635_v59 = vrot.slane %v1634_v43, 1  ;;  %v1622_v33 = vmax.f32 %v1620_v18, %v1621_v63  ;;  %v5172_v30 = vmax.f32 %v1646_v55, %v1647_v21  ;;  %v731_v12 = vrot.slane %v5135_v20, 6 }
 0x27e   : > { %v1629_v45 = vmax.f32 %v1627_v24, %v1628_v28  ;;  %v1672_v18 = vsel %vm831_vm1, %v5135_v20, -inf  ;;  %v1679_v5 = vsel %vm831_vm1, %v729_v39, -inf  ;;  %v1686_v0 = vsel %vm831_vm1, %v730_v17, -inf }
 0x27f   : > { %v5175_v16 = vmax.f32 %v1634_v43, %v1635_v59  ;;  %v2414_v29 = vpack.c.bf16 %v1622_v33, %v1622_v33  ;;  %v1673_v55 = vrot.slane %v1672_v18, 4  ;;  %v1680_v28 = vrot.slane %v1679_v5, 4 }
 0x280   : > { %v2415_v21 = vpack.c.bf16 %v1629_v45, %v1629_v45  ;;  %v1693_v24 = vsel %vm831_vm1, %v731_v12, -inf  ;;  %v6322_v40 = vrot.slane %v5064_v58, 1  ;;  %v1687_v39 = vrot.slane %v1686_v0, 4 }
 0x281   : > { %v5185_v43 = vunpack.c.l.b16 %v2414_v29  ;;  %v1674_v27 = vmax.f32 %v1672_v18, %v1673_v55  ;;  %v1681_v33 = vmax.f32 %v1679_v5, %v1680_v28  ;;  %v1694_v45 = vrot.slane %v1693_v24, 4 }
 0x282   : > { %v5192_v63 = vmax.f32 %v5064_v58, %v6322_v40  ;;  %v5194_v59 = vunpack.c.l.b16 %v2415_v21  ;;  %v6323_v57 = vrot.slane %v5080_v51, 1  ;;  %v6324_v36 = vrot.slane %v5061_v62, 2 }
 0x283   : > { %v1549_v12 = vrot.slane %v5082_v2, 2  ;;  %v1675_v34 = vrot.slane %v1674_v27, 2  ;;  %v1682_v31 = vrot.slane %v1681_v33, 2  ;;  %v1688_v58 = vmax.f32 %v1686_v0, %v1687_v39 }
 0x284   : > { %v1538_v29 = vmax.f32 %v5080_v51, %v6323_v57  ;;  %v1543_v17 = vmax.f32 %v5061_v62, %v6324_v36  ;;  %v6325_v21 = vrot.slane %v5059_v15, 4  ;;  %v1695_v5 = vmax.f32 %v1693_v24, %v1694_v45 }
 0x285   : > { %v1550_v28 = vmax.f32 %v5082_v2, %v1549_v12  ;;  %v6326_v40 = vrot.slane %v5112_v4, 1  ;;  %v1676_v57 = vmax.f32 %v1674_v27, %v1675_v34  ;;  %v1683_v41 = vmax.f32 %v1681_v33, %v1682_v31 }
 0x286   : > { %v1555_v18 = vmax.f32 %v5059_v15, %v6325_v21  ;;  %v1544_v55 = vrot.slane %v1543_v17, 1  ;;  %v1689_v62 = vrot.slane %v1688_v58, 2  ;;  %v1696_v20 = vrot.slane %v1695_v5, 2 }
 0x287   : > { %v1587_v51 = vmax.f32 %v5112_v4, %v6326_v40  ;;  %v1551_v8 = vrot.slane %v1550_v28, 1  ;;  %v6327_v0 = vrot.slane %v5122_v61, 1  ;;  %v1677_v15 = vrot.slane %v1676_v57, 1 }
 0x288   : > { %v1556_v36 = vrot.slane %v1555_v18, 2  ;;  %v1545_v47 = vmax.f32 %v1543_v17, %v1544_v55  ;;  %v1684_v24 = vrot.slane %v1683_v41, 1  ;;  %v1690_v45 = vmax.f32 %v1688_v58, %v1689_v62 }
 0x289   : > { %v1594_v39 = vmax.f32 %v5122_v61, %v6327_v0  ;;  %v5213_v2 = vmax.f32 %v1695_v5, %v1696_v20  ;;  %v1552_v12 = vmax.f32 %v1550_v28, %v1551_v8  ;;  %v6328_v4 = vrot.slane %v5114_v38, 2  ;;  %v2000_v27 = vpop.permute.xlu2 %1999 }
 0x28a   : > { %v1557_v21 = vmax.f32 %v1555_v18, %v1556_v36  ;;  %v1605_v31 = vrot.slane %v5118_v35, 2  ;;  %v1678_v33 = vmax.f32 %v1676_v57, %v1677_v15  ;;  %v1685_v17 = vmax.f32 %v1683_v41, %v1684_v24 }
 0x28b   : > { %v1599_v34 = vmax.f32 %v5114_v38, %v6328_v4  ;;  %v1691_v55 = vrot.slane %v1690_v45, 1  ;;  %v6329_v20 = vrot.slane %v5110_v7, 4  ;;  %v2401_v41 = vpack.c.bf16 %v5192_v63, %v5192_v63 }
 0x28c   : > { %v1558_v40 = vrot.slane %v1557_v21, 1  ;;  %v1606_v58 = vmax.f32 %v5118_v35, %v1605_v31  ;;  %v2422_v5 = vpack.c.bf16 %v1678_v33, %v1678_v33  ;;  %v2423_v38 = vpack.c.bf16 %v1685_v17, %v1685_v17 }
 0x28d   : > { %v1600_v0 = vrot.slane %v1599_v34, 1  ;;  %v1611_v8 = vmax.f32 %v5110_v7, %v6329_v20  ;;  %v5224_v18 = vmax.f32 %v1690_v45, %v1691_v55  ;;  %v2402_v4 = vpack.c.bf16 %v1538_v29, %v1538_v29 }
 0x28e   : > { %v1559_v28 = vmax.f32 %v1557_v21, %v1558_v40  ;;  %v1607_v36 = vrot.slane %v1606_v58, 1  ;;  %v5230_v24 = vunpack.c.l.b16 %v2422_v5  ;;  %v5232_v35 = vunpack.c.l.b16 %v2423_v38 }
 0x28f   : > { %v1601_v62 = vmax.f32 %v1599_v34, %v1600_v0  ;;  %v1612_v57 = vrot.slane %v1611_v8, 2  ;;  %v2403_v31 = vpack.c.bf16 %v1545_v47, %v1545_v47  ;;  %v2404_v33 = vpack.c.bf16 %v1552_v12, %v1552_v12 }
 0x290   : > { %v1608_v7 = vmax.f32 %v1606_v58, %v1607_v36  ;;  %v2405_v17 = vpack.c.bf16 %v1559_v28, %v1559_v28  ;;  %v2409_v21 = vpack.c.bf16 %v1587_v51, %v1587_v51  ;;  %v2410_v34 = vpack.c.bf16 %v1594_v39, %v1594_v39  ;;  %v604_v39 = vpop.f32.mrf.mxu0 }
 0x291   : > { %v1613_v45 = vmax.f32 %v1611_v8, %v1612_v57  ;;  %v2411_v55 = vpack.c.bf16 %v1601_v62, %v1601_v62  ;;  %v6330_v63 = vpack.c.bf16 %v5084_v44, %v5084_v44  ;;  %v2529_v15 = vunpack.c.l.b16 %v2401_v41  ;;  %v1998_v8 = vpop.permute.xlu2 %1997 }
 0x292   : > { %v2412_v0 = vpack.c.bf16 %v1608_v7, %v1608_v7  ;;  %v2530_v5 = vunpack.c.l.b16 %v2402_v4  ;;  %v2531_v61 = vunpack.c.l.b16 %v2403_v31  ;;  %v2532_v38 = vunpack.c.l.b16 %v2404_v33  ;;  %v6332_v33 = vld [vmem:[#allocation33_spill] sm:$0xff] }
 0x293   : > { %v1614_v40 = vrot.slane %v1613_v45, 1  ;;  %v2528_v20 = vunpack.c.l.b16 %v6330_v63  ;;  %v2533_v49 = vunpack.c.l.b16 %v2405_v17  ;;  %v6331_v47 = vpack.c.bf16 %v5129_v53, %v5129_v53 }
 0x294   : > { %v2537_v58 = vunpack.c.l.b16 %v2409_v21  ;;  %v2538_v51 = vunpack.c.l.b16 %v2410_v34  ;;  %v2539_v28 = vunpack.c.l.b16 %v2411_v55  ;;  %v2540_v62 = vunpack.c.l.b16 %v2412_v0 }
 0x295   : > { %v1615_v29 = vmax.f32 %v1613_v45, %v1614_v40  ;;  %v2536_v12 = vunpack.c.l.b16 %v6331_v47  ;;  %v2586_v44 = vsel %vm1928_vm2, %v5116_v56, %v5100_v3  ;;  %v2593_v36 = vsel %vm1928_vm2, %v5147_v23, %v5142_v42 }
 0x296   : > { %v2587_v41 = vsel %vm1930_vm3, %v2528_v20, %v2586_v44  ;;  %v2035_v4 = vsel %vm2003_vm9, %v2000_v27, 0  ;;  %v5252_v31 = vadd.f32 %v5073_v46, %v604_v39  ;;  %v2032_v56 = vsel %vm2003_vm9, %v1998_v8, 0 }
 0x297   : > { %v2413_v57 = vpack.c.bf16 %v1615_v29, %v1615_v29  ;;  %v2594_v53 = vsel %vm1930_vm3, %v2536_v12, %v2593_v36  ;;  %v2588_v7 = vsel %vm1932_vm4, %v2529_v15, %v2587_v41  ;;  %2045 = vmatpush.bf16.xpose.msra.mxu3 %v2035_v4  ;;  %v1728_v17 = vpack.c.bf16 %v6291_v19, %v6332_v33 }
 0x298   : > { %v2595_v45 = vsel %vm1932_vm4, %v2537_v58, %v2594_v53  ;;  %v2589_v42 = vsel %vm1934_vm5, %v2530_v5, %v2588_v7  ;;  %v732_v21 = vrot.slane %v5252_v31, 2  ;;  %v733_v34 = vrot.slane %v5252_v31, 4 }
 0x299   : > { %v2541_v3 = vunpack.c.l.b16 %v2413_v57  ;;  %v2596_v23 = vsel %vm1934_vm5, %v2538_v51, %v2595_v45  ;;  %v2590_v27 = vsel %vm1936_vm6, %v2531_v61, %v2589_v42  ;;  %v734_v40 = vrot.slane %v5252_v31, 6 }
 0x29a   : > { %v2597_v15 = vsel %vm1936_vm6, %v2539_v28, %v2596_v23  ;;  %v2591_v46 = vsel %vm1938_vm7, %v2532_v38, %v2590_v27  ;;  %v1700_v0 = vsel %vm831_vm1, %v5252_v31, -inf  ;;  %v1707_v5 = vsel %vm831_vm1, %v732_v21, -inf }
 0x29b   : > { %v2598_v55 = vsel %vm1938_vm7, %v2540_v62, %v2597_v15  ;;  %v2592_v63 = vsel %vm1940_vm8, %v2533_v49, %v2591_v46  ;;  %v1701_v61 = vrot.slane %v1700_v0, 4  ;;  %v1708_v47 = vrot.slane %v1707_v5, 4 }
 0x29c   : > { %v2599_v20 = vsel %vm1940_vm8, %v2541_v3, %v2598_v55  ;;  %v1714_v12 = vsel %vm831_vm1, %v733_v34, -inf  ;;  %v1721_v38 = vsel %vm831_vm1, %v734_v40, -inf  ;;  %v6333_v8 = vrot.slane %v5165_v1, 1 }
 0x29d   : > { %v5271_v29 = vpack.c.b16 %v2599_v20, %v2592_v63  ;;  %v1702_v58 = vmax.f32 %v1700_v0, %v1701_v61  ;;  %v1715_v51 = vrot.slane %v1714_v12, 4  ;;  %v1722_v39 = vrot.slane %v1721_v38, 4 }
 0x29e   : > { %v1643_v28 = vmax.f32 %v5165_v1, %v6333_v8  ;;  %v1709_v49 = vmax.f32 %v1707_v5, %v1708_v47  ;;  %v6334_v62 = vrot.slane %v5172_v30, 1  ;;  %v6335_v36 = vrot.slane %v5162_v14, 2 }
 0x29f   : > { %2622 = vrot.lane.b32.xlu2 %v5271_v29, %s3992_s23  ;;  %v1661_v41 = vrot.slane %v5168_v37, 2  ;;  %v1703_v53 = vrot.slane %v1702_v58, 2  ;;  %v1716_v4 = vmax.f32 %v1714_v12, %v1715_v51  ;;  %2046 = vmatpush.bf16.xpose.msra.mxu3 %v2032_v56  ;;  %v6336_v7 = vrot.slane %v5160_v22, 4 }
 0x2a0   : > { %v1650_v44 = vmax.f32 %v5172_v30, %v6334_v62  ;;  %v1655_v57 = vmax.f32 %v5162_v14, %v6335_v36  ;;  %v6337_v45 = vrot.slane %v5213_v2, 1  ;;  %v1710_v42 = vrot.slane %v1709_v49, 2 }
 0x2a1   : > { %v1667_v1 = vmax.f32 %v5160_v22, %v6336_v7  ;;  %v1662_v30 = vmax.f32 %v5168_v37, %v1661_v41  ;;  %v1723_v27 = vmax.f32 %v1721_v38, %v1722_v39  ;;  %v1704_v15 = vmax.f32 %v1702_v58, %v1703_v53 }
 0x2a2   : > { %v1699_v3 = vmax.f32 %v5213_v2, %v6337_v45  ;;  %v1656_v23 = vrot.slane %v1655_v57, 1  ;;  %v1717_v21 = vrot.slane %v1716_v4, 2  ;;  %v2417_v34 = vpack.c.bf16 %v1643_v28, %v1643_v28 }
 0x2a3   : > { %v1668_v14 = vrot.slane %v1667_v1, 2  ;;  %v1663_v55 = vrot.slane %v1662_v30, 1  ;;  %v1711_v56 = vmax.f32 %v1709_v49, %v1710_v42  ;;  %v1724_v40 = vrot.slane %v1723_v27, 2 }
 0x2a4   : > { %v1657_v46 = vmax.f32 %v1655_v57, %v1656_v23  ;;  %v1705_v0 = vrot.slane %v1704_v15, 1  ;;  %v1718_v22 = vmax.f32 %v1716_v4, %v1717_v21  ;;  %v2418_v20 = vpack.c.bf16 %v1650_v44, %v1650_v44 }
 0x2a5   : > { %v1669_v63 = vmax.f32 %v1667_v1, %v1668_v14  ;;  %v1664_v61 = vmax.f32 %v1662_v30, %v1663_v55  ;;  %v1712_v5 = vrot.slane %v1711_v56, 1  ;;  %v1725_v2 = vmax.f32 %v1723_v27, %v1724_v40 }
 0x2a6   : > { %v2419_v47 = vpack.c.bf16 %v1657_v46, %v1657_v46  ;;  %v1706_v51 = vmax.f32 %v1704_v15, %v1705_v0  ;;  %v1719_v37 = vrot.slane %v1718_v22, 1  ;;  %v2425_v38 = vpack.c.bf16 %v1699_v3, %v1699_v3 }
 0x2a7   : > { %v1670_v12 = vrot.slane %v1669_v63, 1  ;;  %v1713_v58 = vmax.f32 %v1711_v56, %v1712_v5  ;;  %v1726_v39 = vrot.slane %v1725_v2, 1  ;;  %v2420_v8 = vpack.c.bf16 %v1664_v61, %v1664_v61 }
 0x2a8   : > { %v6338_v28 = vpack.c.bf16 %v5175_v16, %v5175_v16  ;;  %v1720_v36 = vmax.f32 %v1718_v22, %v1719_v37  ;;  %v2426_v57 = vpack.c.bf16 %v1706_v51, %v1706_v51  ;;  %v2545_v41 = vunpack.c.l.b16 %v2417_v34 }
 0x2a9   : > { %v1671_v62 = vmax.f32 %v1669_v63, %v1670_v12  ;;  %v1727_v44 = vmax.f32 %v1725_v2, %v1726_v39  ;;  %v2427_v53 = vpack.c.bf16 %v1713_v58, %v1713_v58  ;;  %v2546_v4 = vunpack.c.l.b16 %v2418_v20 }
 0x2aa   : > { %v2544_v49 = vunpack.c.l.b16 %v6338_v28  ;;  %v2547_v7 = vunpack.c.l.b16 %v2419_v47  ;;  %v2428_v42 = vpack.c.bf16 %v1720_v36, %v1720_v36  ;;  %v2548_v23 = vunpack.c.l.b16 %v2420_v8 }
 0x2ab   : > { %v1996_v1 = vpop.permute.xlu2 %1995  ;;  %v2421_v45 = vpack.c.bf16 %v1671_v62, %v1671_v62  ;;  %v6339_v3 = vpack.c.bf16 %v5224_v18, %v5224_v18  ;;  %v2429_v16 = vpack.c.bf16 %v1727_v44, %v1727_v44  ;;  %v2553_v15 = vunpack.c.l.b16 %v2425_v38 }
 0x2ac   : > { %v2029_v27 = vsel %vm2003_vm9, %v1996_v1, 0  ;;  %v2554_v14 = vunpack.c.l.b16 %v2426_v57  ;;  %v2555_v34 = vunpack.c.l.b16 %v2427_v53  ;;  %v2556_v46 = vunpack.c.l.b16 %v2428_v42 }
 0x2ad   : > { %v2552_v30 = vunpack.c.l.b16 %v6339_v3  ;;  %2047 = vmatpush.bf16.xpose.msra.mxu3 %v2029_v27  ;;  %v2549_v21 = vunpack.c.l.b16 %v2421_v45  ;;  %v2600_v55 = vsel %vm1928_vm2, %v5194_v59, %v5185_v43  ;;  %v2557_v56 = vunpack.c.l.b16 %v2429_v16 }
 0x2ae   : > { %v2601_v40 = vsel %vm1930_vm3, %v2544_v49, %v2600_v55  ;;  %v2607_v18 = vsel %vm1928_vm2, %v5232_v35, %v5230_v24  ;;  %v6340_v0 = vrot.slane %v4913_v26, 1  ;;  %v6341_v61 = vrot.slane %v4920_v48, 1 }
 0x2af   : > { %v2602_v22 = vsel %vm1932_vm4, %v2545_v41, %v2601_v40  ;;  %v2608_v20 = vsel %vm1930_vm3, %v2552_v30, %v2607_v18  ;;  %v6342_v43 = vrot.slane %v4908_v9, 2  ;;  %v1437_v35 = vrot.slane %v4922_v50, 2 }
 0x2b0   : > { %v1419_v63 = vmax.f32 %v4913_v26, %v6340_v0  ;;  %v1426_v5 = vmax.f32 %v4920_v48, %v6341_v61  ;;  %v2603_v2 = vsel %vm1934_vm5, %v2546_v4, %v2602_v22  ;;  %v2609_v24 = vsel %vm1932_vm4, %v2553_v15, %v2608_v20 }
 0x2b1   : > { %v1431_v59 = vmax.f32 %v4908_v9, %v6342_v43  ;;  %v6343_v26 = vrot.slane %v4904_v52, 4  ;;  %v2604_v12 = vsel %vm1936_vm6, %v2547_v7, %v2603_v2  ;;  %v2610_v51 = vsel %vm1934_vm5, %v2554_v14, %v2609_v24 }
 0x2b2   : > { %v6344_v48 = vrot.slane %v5021_v11, 1  ;;  %v2605_v9 = vsel %vm1938_vm7, %v2548_v23, %v2604_v12  ;;  %v2611_v58 = vsel %vm1936_vm6, %v2555_v34, %v2610_v51  ;;  %v1438_v39 = vmax.f32 %v4922_v50, %v1437_v35 }
 0x2b3   : > { %v1443_v47 = vmax.f32 %v4904_v52, %v6343_v26  ;;  %v1432_v37 = vrot.slane %v1431_v59, 1  ;;  %v2606_v28 = vsel %vm1940_vm8, %v2549_v21, %v2605_v9  ;;  %v2612_v52 = vsel %vm1938_vm7, %v2556_v46, %v2611_v58  ;;  %v6351_v26 = vld [vmem:[#allocation41_spill] sm:$0xff] }
 0x2b4   : > { %v1475_v38 = vmax.f32 %v5021_v11, %v6344_v48  ;;  %v6345_v62 = vrot.slane %v5048_v32, 1  ;;  %3533 = vmatmul.msk.bf16.vlgmr.msra.gmra.mxu3 %vm2003_vm9, %v1728_v17  ;;  %v2613_v11 = vsel %vm1940_vm8, %v2557_v56, %v2612_v52  ;;  %v1439_v57 = vrot.slane %v1438_v39, 1  ;;  %v6354_v48 = vld [vmem:[#allocation39_spill] sm:$0xff]  ;;  %v6355_v9 = vld [vmem:[#allocation73_spill] sm:$0xff] }
 0x2b5   : > { %v1444_v8 = vrot.slane %v1443_v47, 2  ;;  %v1433_v49 = vmax.f32 %v1431_v59, %v1432_v37  ;;  %v6346_v50 = vrot.slane %v5023_v10, 2  ;;  %v5346_v53 = vpack.c.b16 %v2613_v11, %v2606_v28 }
 0x2b6   : > { %v1482_v36 = vmax.f32 %v5048_v32, %v6345_v62  ;;  %v1493_v4 = vrot.slane %v5025_v6, 2  ;;  %v6347_v7 = vrot.slane %v5019_v60, 4  ;;  %v2385_v1 = vpack.c.bf16 %v1419_v63, %v1419_v63 }
 0x2b7   : > { %v1445_v41 = vmax.f32 %v1443_v47, %v1444_v8  ;;  %v1487_v44 = vmax.f32 %v5023_v10, %v6346_v50  ;;  %v1440_v19 = vmax.f32 %v1438_v39, %v1439_v57  ;;  %v2386_v45 = vpack.c.bf16 %v1426_v5, %v1426_v5  ;;  %2624 = vrot.lane.b32.xlu2 %v5346_v53, %s3992_s23  ;;  %v6352_v47 = vld [vmem:[#allocation49_spill] sm:$0xff] }
 0x2b8   : > { %v1499_v32 = vmax.f32 %v5019_v60, %v6347_v7  ;;  %v1494_v42 = vmax.f32 %v5025_v6, %v1493_v4  ;;  %v2387_v10 = vpack.c.bf16 %v1433_v49, %v1433_v49  ;;  %v2393_v3 = vpack.c.bf16 %v1475_v38, %v1475_v38 }
 0x2b9   : > { %v1446_v33 = vrot.slane %v1445_v41, 1  ;;  %v1488_v17 = vrot.slane %v1487_v44, 1  ;;  %v2388_v16 = vpack.c.bf16 %v1440_v19, %v1440_v19  ;;  %v2394_v15 = vpack.c.bf16 %v1482_v36, %v1482_v36  ;;  %v6357_v36 = vld [vmem:[#allocation79_spill] sm:$0xff] }
 0x2ba   : > { %v1500_v23 = vrot.slane %v1499_v32, 2  ;;  %v1495_v14 = vrot.slane %v1494_v42, 1  ;;  %v6348_v60 = vpack.c.bf16 %v4924_v13, %v4924_v13  ;;  %v2513_v46 = vunpack.c.l.b16 %v2385_v1  ;;  %v6350_v13 = vld [vmem:[#allocation42_spill] sm:$0xff] }
 0x2bb   : > { %v1447_v30 = vmax.f32 %v1445_v41, %v1446_v33  ;;  %v1489_v27 = vmax.f32 %v1487_v44, %v1488_v17  ;;  %v2514_v40 = vunpack.c.l.b16 %v2386_v45  ;;  %v2515_v18 = vunpack.c.l.b16 %v2387_v10  ;;  %v6359_v41 = vld [vmem:[#allocation74_spill] sm:$0xff] }
 0x2bc   : > { %v1501_v21 = vmax.f32 %v1499_v32, %v1500_v23  ;;  %v2512_v34 = vunpack.c.l.b16 %v6348_v60  ;;  %v1496_v0 = vmax.f32 %v1494_v42, %v1495_v14  ;;  %v2516_v63 = vunpack.c.l.b16 %v2388_v16  ;;  %v6361_v1 = vld [vmem:[#allocation78_spill] sm:$0xff]  ;;  %v6362_v42 = vld [vmem:[#allocation75_spill] sm:$0xff] }
 0x2bd   : > { %v2389_v55 = vpack.c.bf16 %v1447_v30, %v1447_v30  ;;  %v2395_v56 = vpack.c.bf16 %v1489_v27, %v1489_v27  ;;  %v6349_v22 = vpack.c.bf16 %v5030_v54, %v5030_v54  ;;  %v2521_v5 = vunpack.c.l.b16 %v2393_v3  ;;  %v6353_v54 = vld [vmem:[#allocation37_spill] sm:$0xff]  ;;  %v6364_v3 = vld [vmem:[#allocation83_spill] sm:$0xff] }
 0x2be   : > { %v1502_v6 = vrot.slane %v1501_v21, 1  ;;  %v2522_v43 = vunpack.c.l.b16 %v2394_v15  ;;  %v2396_v24 = vpack.c.bf16 %v1496_v0, %v1496_v0  ;;  %v2572_v35 = vsel %vm1928_vm2, %v6350_v13, %v4943_v25 }
 0x2bf   : > { %v2520_v20 = vunpack.c.l.b16 %v6349_v22  ;;  %v2517_v61 = vunpack.c.l.b16 %v2389_v55  ;;  %v2523_v59 = vunpack.c.l.b16 %v2395_v56  ;;  %v2579_v12 = vsel %vm1928_vm2, %v6352_v47, %v6351_v26 }
 0x2c0   : > { %v1503_v2 = vmax.f32 %v1501_v21, %v1502_v6  ;;  %v2573_v51 = vsel %vm1930_vm3, %v2512_v34, %v2572_v35  ;;  %v1729_v38 = vpack.c.bf16 %v6354_v48, %v6353_v54  ;;  %v6356_v58 = vrot.slane %v6355_v9, 1 }
 0x2c1   : > { %v2580_v37 = vsel %vm1930_vm3, %v2520_v20, %v2579_v12  ;;  %v2524_v28 = vunpack.c.l.b16 %v2396_v24  ;;  %v2574_v52 = vsel %vm1932_vm4, %v2513_v46, %v2573_v51  ;;  %v6358_v11 = vrot.slane %v6357_v36, 1  ;;  %v6366_v46 = vld [vmem:[#allocation91_spill] sm:$0xff]  ;;  %v6371_v20 = vld [vmem:[#allocation88_spill] sm:$0xff] }
 0x2c2   : > { %v1307_v39 = vmax.f32 %v6355_v9, %v6356_v58  ;;  %v2397_v8 = vpack.c.bf16 %v1503_v2, %v1503_v2  ;;  %v2581_v25 = vsel %vm1932_vm4, %v2521_v5, %v2580_v37  ;;  %v2575_v49 = vsel %vm1934_vm5, %v2514_v40, %v2574_v52  ;;  %v6375_v37 = vld [vmem:[#allocation84_spill] sm:$0xff] }
 0x2c3   : > { %v2582_v62 = vsel %vm1934_vm5, %v2522_v43, %v2581_v25  ;;  %v1314_v57 = vmax.f32 %v6357_v36, %v6358_v11  ;;  %v6360_v50 = vrot.slane %v6359_v41, 2  ;;  %v2576_v7 = vsel %vm1936_vm6, %v2515_v18, %v2575_v49  ;;  %v6368_v18 = vld [vmem:[#allocation89_spill] sm:$0xff] }
 0x2c4   : > { %v2525_v4 = vunpack.c.l.b16 %v2397_v8  ;;  %v2583_v32 = vsel %vm1936_vm6, %v2523_v59, %v2582_v62  ;;  %v1325_v19 = vrot.slane %v6361_v1, 2  ;;  %v2577_v33 = vsel %vm1938_vm7, %v2516_v63, %v2576_v7  ;;  %3534 = vmatmul.msk.bf16.gmra.mxu3 %vm2003_vm9, %v1729_v38  ;;  %v6370_v63 = vld [vmem:[#allocation90_spill] sm:$0xff] }
 0x2c5   : > { %v1319_v44 = vmax.f32 %v6359_v41, %v6360_v50  ;;  %v2584_v17 = vsel %vm1938_vm7, %v2524_v28, %v2583_v32  ;;  %v6363_v23 = vrot.slane %v6362_v42, 4  ;;  %v6365_v30 = vpack.c.bf16 %v6364_v3, %v6364_v3  ;;  %v6373_v59 = vld [vmem:[#allocation82_spill] sm:$0xff]  ;;  %v6382_v3 = vld [vmem:[#allocation81_spill] sm:$0xff] }
 0x2c6   : > { %v2578_v16 = vsel %vm1940_vm8, %v2517_v61, %v2577_v33  ;;  %v2585_v15 = vsel %vm1940_vm8, %v2525_v4, %v2584_v17  ;;  %v1326_v14 = vmax.f32 %v6361_v1, %v1325_v19  ;;  %v6367_v55 = vrot.slane %v6366_v46, 1  ;;  %v6379_v19 = vld [vmem:[#allocation85_spill] sm:$0xff] }
 0x2c7   : > { %v1320_v45 = vrot.slane %v1319_v44, 1  ;;  %v1331_v10 = vmax.f32 %v6362_v42, %v6363_v23  ;;  %v2502_v27 = vunpack.c.l.b16 %v6365_v30  ;;  %v5398_v21 = vpack.c.b16 %v2585_v15, %v2578_v16 }
 0x2c8   : > { %v1370_v56 = vmax.f32 %v6366_v46, %v6367_v55  ;;  %v1327_v40 = vrot.slane %v1326_v14, 1  ;;  %v6369_v0 = vrot.slane %v6368_v18, 2  ;;  %v1381_v22 = vrot.slane %v6370_v63, 2 }
 0x2c9   : > { %v1321_v60 = vmax.f32 %v1319_v44, %v1320_v45  ;;  %v1332_v34 = vrot.slane %v1331_v10, 2  ;;  %v6372_v61 = vrot.slane %v6371_v20, 4  ;;  %2620 = vrot.lane.b32.xlu2 %v5398_v21, %s3992_s23  ;;  %v6374_v2 = vrot.slane %v6373_v59, 1 }
 0x2ca   : > { %v1375_v6 = vmax.f32 %v6368_v18, %v6369_v0  ;;  %v2369_v13 = vpack.c.bf16 %v1307_v39, %v1307_v39  ;;  %v2370_v35 = vpack.c.bf16 %v1314_v57, %v1314_v57  ;;  %v1328_v26 = vmax.f32 %v1326_v14, %v1327_v40  ;;  %v6377_v39 = vld [vmem:[#allocation76_spill] sm:$0xff] }
 0x2cb   : > { %v1387_v5 = vmax.f32 %v6371_v20, %v6372_v61  ;;  %v1333_v43 = vmax.f32 %v1331_v10, %v1332_v34  ;;  %v1363_v24 = vmax.f32 %v6373_v59, %v6374_v2  ;;  %v1382_v12 = vmax.f32 %v6370_v63, %v1381_v22  ;;  %v6381_v10 = vld [vmem:[#allocation80_spill] sm:$0xff]  ;;  %v6383_v61 = vld [vmem:[#allocation45_spill] sm:$0xff] }
 0x2cc   : > { %v1376_v47 = vrot.slane %v1375_v6, 1  ;;  %v6376_v54 = vpack.c.bf16 %v6375_v37, %v6375_v37  ;;  %v2371_v9 = vpack.c.bf16 %v1321_v60, %v1321_v60  ;;  %v2378_v58 = vpack.c.bf16 %v1370_v56, %v1370_v56  ;;  %v6389_v37 = vld [vmem:[#allocation59_spill] sm:$0xff] }
 0x2cd   : > { %v1388_v51 = vrot.slane %v1387_v5, 2  ;;  %v1334_v38 = vrot.slane %v1333_v43, 1  ;;  %v1383_v28 = vrot.slane %v1382_v12, 1  ;;  %v2372_v25 = vpack.c.bf16 %v1328_v26, %v1328_v26  ;;  %v6386_v26 = vld [vmem:[#allocation56_spill] sm:$0xff] }
 0x2ce   : > { %v2503_v48 = vunpack.c.l.b16 %v6376_v54  ;;  %v1377_v8 = vmax.f32 %v1375_v6, %v1376_v47  ;;  %v2377_v62 = vpack.c.bf16 %v1363_v24, %v1363_v24  ;;  %v6378_v36 = vpack.c.bf16 %v6377_v39, %v6377_v39  ;;  %v6387_v47 = vld [vmem:[#allocation58_spill] sm:$0xff]  ;;  %v6390_v54 = vld [vmem:[#allocation60_spill] sm:$0xff] }
 0x2cf   : > { %v1389_v52 = vmax.f32 %v1387_v5, %v1388_v51  ;;  %v1335_v49 = vmax.f32 %v1333_v43, %v1334_v38  ;;  %v2497_v57 = vunpack.c.l.b16 %v2369_v13  ;;  %v1384_v41 = vmax.f32 %v1382_v12, %v1383_v28  ;;  %v6384_v5 = vld [vmem:[#allocation51_spill] sm:$0xff]  ;;  %v6388_v51 = vld [vmem:[#allocation94_spill] sm:$0xff] }
 0x2d0   : > { %v2496_v11 = vunpack.c.l.b16 %v6378_v36  ;;  %v2379_v44 = vpack.c.bf16 %v1377_v8, %v1377_v8  ;;  %v2498_v4 = vunpack.c.l.b16 %v2370_v35  ;;  %v2499_v32 = vunpack.c.l.b16 %v2371_v9  ;;  %v6385_v35 = vld [vmem:[#allocation87_spill] sm:$0xff]  ;;  %v6391_v38 = vld [vmem:[#allocation62_spill] sm:$0xff]  ;;  %v6392_v9 = vld [vmem:[#allocation65_spill] sm:$0xff] }
 0x2d1   : > { %v1390_v50 = vrot.slane %v1389_v52, 1  ;;  %v2373_v7 = vpack.c.bf16 %v1335_v49, %v1335_v49  ;;  %v2500_v1 = vunpack.c.l.b16 %v2372_v25  ;;  %v6380_v33 = vpack.c.bf16 %v6379_v19, %v6379_v19  ;;  %v6394_v25 = vld [vmem:[#allocation68_spill] sm:$0xff] }
 0x2d2   : > { %v2380_v42 = vpack.c.bf16 %v1384_v41, %v1384_v41  ;;  %v2506_v23 = vunpack.c.l.b16 %v2378_v58  ;;  %v2558_v30 = vsel %vm1928_vm2, %v6382_v3, %v6381_v10  ;;  %v2505_v16 = vunpack.c.l.b16 %v2377_v62  ;;  %v2276_v10 = vpop.permute.xlu1 %2275 }
 0x2d3   : > { %v2504_v17 = vunpack.c.l.b16 %v6380_v33  ;;  %v1391_v45 = vmax.f32 %v1389_v52, %v1390_v50  ;;  %v2507_v15 = vunpack.c.l.b16 %v2379_v44  ;;  %v2559_v14 = vsel %vm1930_vm3, %v2496_v11, %v2558_v30  ;;  %v6393_v52 = vld [vmem:[#allocation66_spill] sm:$0xff]  ;;  %v6395_v11 = vld [vmem:[#allocation69_spill] sm:$0xff] }
 0x2d4   : > { %v2565_v60 = vsel %vm1928_vm2, %v2503_v48, %v2502_v27  ;;  %v2508_v46 = vunpack.c.l.b16 %v2380_v42  ;;  %v2560_v55 = vsel %vm1932_vm4, %v2497_v57, %v2559_v14  ;;  %v2501_v0 = vunpack.c.l.b16 %v2373_v7  ;;  %v6396_v57 = vld [vmem:[#allocation70_spill] sm:$0xff]  ;;  %v6399_v30 = vld [vmem:[#allocation77_spill] sm:$0xff] }
 0x2d5   : > { %v2381_v34 = vpack.c.bf16 %v1391_v45, %v1391_v45  ;;  %v2566_v56 = vsel %vm1930_vm3, %v2504_v17, %v2565_v60  ;;  %v2561_v40 = vsel %vm1934_vm5, %v2498_v4, %v2560_v55  ;;  %v1730_v43 = vpack.c.bf16 %v6384_v5, %v6383_v61  ;;  %v6401_v60 = vld [vmem:[#allocation50_spill] sm:$0xff] }
 0x2d6   : > { %v2567_v18 = vsel %vm1932_vm4, %v2505_v16, %v2566_v56  ;;  %v2562_v6 = vsel %vm1936_vm6, %v2499_v32, %v2561_v40  ;;  %v1731_v12 = vpack.c.bf16 %v6387_v47, %v6386_v26  ;;  %v1732_v48 = vpack.c.bf16 %v6390_v54, %v6389_v37  ;;  %v6397_v32 = vld [vmem:[#allocation71_spill] sm:$0xff]  ;;  %v6400_v16 = vld [vmem:[#allocation86_spill] sm:$0xff]  ;;  %v6402_v56 = vld [vmem:[#allocation92_spill] sm:$0xff] }
 0x2d7   : > { %v2568_v63 = vsel %vm1934_vm5, %v2506_v23, %v2567_v18  ;;  %v2509_v22 = vunpack.c.l.b16 %v2381_v34  ;;  %v2563_v20 = vsel %vm1938_vm7, %v2500_v1, %v2562_v6  ;;  %3535 = vmatmul.msk.bf16.gmra.mxu3 %vm2003_vm9, %v1730_v43  ;;  %v1733_v58 = vpack.c.bf16 %v6392_v9, %v6391_v38  ;;  %v6398_v1 = vld [vmem:[#allocation72_spill] sm:$0xff]  ;;  %v6403_v40 = vld [vmem:[#allocation93_spill] sm:$0xff] }
 0x2d8   : > { %v2569_v27 = vsel %vm1936_vm6, %v2507_v15, %v2568_v63  ;;  %v2564_v2 = vsel %vm1940_vm8, %v2501_v0, %v2563_v20  ;;  %v1734_v49 = vpack.c.bf16 %v6394_v25, %v6393_v52  ;;  %v1735_v41 = vpack.c.bf16 %v6396_v57, %v6395_v11  ;;  %v6404_v20 = vld [vmem:[#allocation36_spill] sm:$0xff]  ;;  %v6410_v52 = vld [vmem:[#allocation53_spill] sm:$0xff]  ;;  %v6411_v25 = vld [vmem:[#allocation55_spill] sm:$0xff] }
 0x2d9   : > { %v2570_v59 = vsel %vm1938_vm7, %v2508_v46, %v2569_v27  ;;  %v2358_v19 = vpack.c.bf16 %v6398_v1, %v6397_v32  ;;  %v2359_v15 = vpack.c.bf16 %v6400_v16, %v6399_v30  ;;  %v2360_v18 = vpack.c.bf16 %v6403_v40, %v6402_v56  ;;  %v6405_v27 = vld [vmem:[#allocation43_spill] sm:$0xff]  ;;  %v6408_v54 = vld [vmem:[#allocation44_spill] sm:$0xff] }
 0x2da   : > { %v2571_v24 = vsel %vm1940_vm8, %v2509_v22, %v2570_v59  ;;  %v2361_v61 = vpack.c.bf16 %v6405_v27, %v6404_v20  ;;  %v6412_v57 = vld [vmem:[#allocation95_spill] sm:$0xff] }
 0x2db   : > { %v5445_v13 = vpack.c.b16 %v2571_v24, %v2564_v2  ;;  %v6406_v24 = vld [vmem:[#allocation54_spill] sm:$0xff] }
 0x2dd   : > { %2618 = vrot.lane.b32.xlu2 %v5445_v13, %s3992_s23  ;;  %s3384_s23 = sshll.u32 %s5991_s12, 4  ;;  %s3385_s23 = int_to_ptr.vmem [resolvable:$true] %s3384_s23 }
 0x2e5   : > { %2279 = vrot.lane.b32.xlu2 %v6385_v35, %s3991_s19  ;;  %v6407_v35 = vld [vmem:[#allocation48_spill] sm:$0xff] }
 0x2e6   : > { %v2362_v26 = vpack.c.bf16 %v6407_v35, %v6406_v24 }
 0x2e7   : > { %3536 = vmatmul.msk.bf16.gmra.mxu3 %vm2003_vm9, %v1731_v12 }
 0x2ed   : > { %2277 = vrot.lane.b32.xlu2 %v6388_v51, %s3991_s19 }
 0x2f7   : > { %3537 = vmatmul.msk.bf16.gmra.mxu3 %vm2003_vm9, %v1732_v48  ;;  %v6409_v48 = vld [vmem:[#allocation47_spill] sm:$0xff] }
 0x2f8   : > { %v2363_v38 = vpack.c.bf16 %v6409_v48, %v6408_v54 }
 0x2f9   : > { %v2623_v8 = vpop.permute.xlu2 %2622 }
 0x2fa   : > { %v2657_v39 = vsel %vm2003_vm9, %v2623_v8, 0 }
 0x307   : > { %3538 = vmatmul.msk.bf16.gmra.mxu3 %vm2003_vm9, %v1733_v58 }
 0x311   : > { %v2625_v28 = vpop.permute.xlu2 %2624 }
 0x312   : > { %v2660_v62 = vsel %vm2003_vm9, %v2625_v28, 0 }
 0x313   : > { %2666 = vmatpush.bf16.xpose.msrb.mxu3 %v2660_v62 }
 0x317   : > { %3539 = vmatmul.msk.bf16.gmra.mxu3 %vm2003_vm9, %v1734_v49  ;;  %v2364_v49 = vpack.c.bf16 %v6411_v25, %v6410_v52 }
 0x31b   : > { %2667 = vmatpush.bf16.xpose.msrb.mxu3 %v2657_v39 }
 0x323   : > { %v2621_v36 = vpop.permute.xlu2 %2620 }
 0x324   : > { %v2654_v50 = vsel %vm2003_vm9, %v2621_v36, 0 }
 0x325   : > { %2668 = vmatpush.bf16.xpose.msrb.mxu3 %v2654_v50 }
 0x327   : > { %3540 = vmatmul.msk.bf16.gmra.mxu3 %vm2003_vm9, %v1735_v41  ;;  %v2365_v41 = vpack.c.bf16 %v5252_v31, %v6412_v57 }
 0x337   : > { %v2619_v44 = vpop.permute.xlu2 %2618  ;;  %v5472_v7 = vpop.f32.mrf.mxu3 }
 0x338   : > { %v2651_v4 = vsel %vm2003_vm9, %v2619_v44, 0  ;;  %v2089_v33 = vsel %vm469_vm0, %v5472_v7, -inf }
 0x339   : > { %2669 = vmatpush.bf16.xpose.msrb.mxu3 %v2651_v4  ;;  %2090 = vmax.xlane.f32.xlu0 %v2089_v33 }
 0x33f   : > { %v2280_v17 = vpop.permute.xlu2 %2279  ;;  %v5479_v45 = vpop.f32.mrf.mxu3 }
 0x340   : > { %2313 = vmatpush.bf16.msra.mxu2 %v2280_v17  ;;  %3549 = vmatmul.msk.bf16.vlgmr.msrb.gmra.mxu3 %vm2003_vm9, %v2358_v19  ;;  %v2092_v42 = vsel %vm469_vm0, %v5479_v45, -inf }
 0x341   : > { %2093 = vmax.xlane.f32.xlu1 %v2092_v42 }
 0x347   : > { %v2278_v23 = vpop.permute.xlu2 %2277  ;;  %v5483_v3 = vpop.f32.mrf.mxu3 }
 0x348   : > { %2314 = vmatpush.bf16.msra.mxu2 %v2278_v23  ;;  %v2095_v14 = vsel %vm469_vm0, %v5483_v3, -inf }
 0x349   : > { %2096 = vmax.xlane.f32.xlu2 %v2095_v14 }
 0x34c   : > { %2315 = vmatpush.bf16.msra.mxu2 %v2276_v10 }
 0x34d   : > { %2273 = vrot.lane.b32.xlu0 %v6401_v60, %s3991_s19 }
 0x34f   : > { %v5492_v34 = vpop.f32.mrf.mxu3 }
 0x350   : > { %3550 = vmatmul.msk.bf16.gmra.mxu3 %vm2003_vm9, %v2359_v15  ;;  %v2098_v46 = vsel %vm469_vm0, %v5492_v34, -inf }
 0x351   : > { %2099 = vmax.xlane.f32.xlu2 %v2098_v46 }
 0x35a   : > { %v5496_v55 = vpop.f32.mrf.mxu3 }
 0x35b   : > { %v2101_v0 = vsel %vm469_vm0, %v5496_v55, -inf }
 0x35c   : > { %2102 = vmax.xlane.f32.xlu2 %v2101_v0 }
 0x360   : > { %3551 = vmatmul.msk.bf16.gmra.mxu3 %vm2003_vm9, %v2360_v18 }
 0x362   : > { %v5503_v6 = vpop.f32.mrf.mxu3 }
 0x363   : > { %v2104_v63 = vsel %vm469_vm0, %v5503_v6, -inf }
 0x364   : > { %2105 = vmax.xlane.f32.xlu2 %v2104_v63 }
 0x36a   : > { %v5507_v22 = vpop.f32.mrf.mxu3 }
 0x36b   : > { %v2107_v5 = vsel %vm469_vm0, %v5507_v22, -inf }
 0x36c   : > { %2108 = vmax.xlane.f32.xlu2 %v2107_v5 }
 0x370   : > { %3552 = vmatmul.msk.bf16.gmra.mxu3 %vm2003_vm9, %v2361_v61 }
 0x372   : > { %v5514_v43 = vpop.f32.mrf.mxu3 }
 0x373   : > { %v2110_v59 = vsel %vm469_vm0, %v5514_v43, -inf }
 0x374   : > { %2111 = vmax.xlane.f32.xlu2 %v2110_v59 }
 0x37a   : > { %v5518_v2 = vpop.f32.mrf.mxu3 }
 0x37b   : > { %v2113_v47 = vsel %vm469_vm0, %v5518_v2, -inf }
 0x37c   : > { %2114 = vmax.xlane.f32.xlu2 %v2113_v47 }
 0x380   : > { %3553 = vmatmul.msk.bf16.gmra.mxu3 %vm2003_vm9, %v2362_v26 }
 0x382   : > { %v5525_v12 = vpop.f32.mrf.mxu3 }
 0x383   : > { %v2116_v51 = vsel %vm469_vm0, %v5525_v12, -inf }
 0x384   : > { %2117 = vmax.xlane.f32.xlu1 %v2116_v51 }
 0x38a   : > { %v5529_v37 = vpop.f32.mrf.mxu3 }
 0x38b   : > { %v2119_v9 = vsel %vm469_vm0, %v5529_v37, -inf }
 0x38c   : > { %2120 = vmax.xlane.f32.xlu1 %v2119_v9 }
 0x390   : > { %3554 = vmatmul.msk.bf16.gmra.mxu3 %vm2003_vm9, %v2363_v38 }
 0x392   : > { %v5536_v58 = vpop.f32.mrf.mxu3 }
 0x393   : > { %v2122_v8 = vsel %vm469_vm0, %v5536_v58, -inf }
 0x394   : > { %2123 = vmax.xlane.f32.xlu2 %v2122_v8 }
 0x39a   : > { %v5540_v28 = vpop.f32.mrf.mxu3 }
 0x39b   : > { %v2125_v62 = vsel %vm469_vm0, %v5540_v28, -inf }
 0x39c   : > { %2126 = vmax.xlane.f32.xlu0 %v2125_v62 }
 0x3a0   : > { %3555 = vmatmul.msk.bf16.gmra.mxu3 %vm2003_vm9, %v2364_v49 }
 0x3a2   : > { %v5547_v39 = vpop.f32.mrf.mxu3 }
 0x3a3   : > { %v2128_v36 = vsel %vm469_vm0, %v5547_v39, -inf }
 0x3a4   : > { %2129 = vmax.xlane.f32.xlu1 %v2128_v36 }
 0x3aa   : > { %v5551_v11 = vpop.f32.mrf.mxu3 }
 0x3ab   : > { %v2131_v50 = vsel %vm469_vm0, %v5551_v11, -inf }
 0x3ac   : > { %2132 = vmax.xlane.f32.xlu1 %v2131_v50  ;;  %v2091_v44 = vpop.xlane.xlu0 %2090 }
 0x3ad   : > { %v2137_v4 = vsub.f32 %v5472_v7, %v2091_v44 }
 0x3af   : > { %v2153_v32 = vmul.f32 1.442695, %v2137_v4 }
 0x3b0   : > { %3556 = vmatmul.msk.bf16.gmra.mxu3 %vm2003_vm9, %v2365_v41 }
 0x3b1   : > { %3693 = vpow2.f32 %v2153_v32 }
 0x3b2   : > { %v5559_v1 = vpop.f32.mrf.mxu3 }
 0x3b3   : > { %v2134_v19 = vsel %vm469_vm0, %v5559_v1, -inf }
 0x3b4   : > { %2135 = vmax.xlane.f32.xlu2 %v2134_v19  ;;  %v2094_v33 = vpop.xlane.xlu1 %2093 }
 0x3b5   : > { %v2138_v31 = vsub.f32 %v5479_v45, %v2094_v33 }
 0x3b7   : > { %v5564_v17 = vpop.eup %3693  ;;  %v2155_v42 = vmul.f32 1.442695, %v2138_v31 }
 0x3b8   : > { %v2185_v23 = vsel %vm469_vm0, %v5564_v17, 0.0 }
 0x3b9   : > { %3695 = vpow2.f32 %v2155_v42 }
 0x3bc   : > { %2186 = vadd.xlane.f32.xlu2 %v2185_v23  ;;  %v2097_v7 = vpop.xlane.xlu2 %2096 }
 0x3bd   : > { %v2139_v30 = vsub.f32 %v5483_v3, %v2097_v7 }
 0x3bf   : > { %v5571_v16 = vpop.eup %3695  ;;  %v2157_v15 = vmul.f32 1.442695, %v2139_v30  ;;  %v2274_v14 = vpop.permute.xlu0 %2273 }
 0x3c0   : > { %2316 = vmatpush.bf16.msra.mxu2 %v2274_v14  ;;  %v2188_v45 = vsel %vm469_vm0, %v5571_v16, 0.0 }
 0x3c1   : > { %3697 = vpow2.f32 %v2157_v15 }
 0x3c3   : > { %v5568_v10 = vpop.f32.mrf.mxu3 }
 0x3c4   : > { %2189 = vadd.xlane.f32.xlu2 %v2188_v45  ;;  %v2100_v60 = vpop.xlane.xlu2 %2099  ;;  %v2711_v3 = vsel %vm469_vm0, %v5568_v10, -inf }
 0x3c5   : > { %v2140_v56 = vsub.f32 %v5492_v34, %v2100_v60 }
 0x3c7   : > { %v5578_v40 = vpop.eup %3697  ;;  %v2159_v18 = vmul.f32 1.442695, %v2140_v56 }
 0x3c8   : > { %v2191_v0 = vsel %vm469_vm0, %v5578_v40, 0.0 }
 0x3c9   : > { %3699 = vpow2.f32 %v2159_v18  ;;  %2192 = vadd.xlane.f32.xlu0 %v2191_v0 }
 0x3cb   : > { %v5575_v46 = vpop.f32.mrf.mxu3 }
 0x3cc   : > { %2712 = vmax.xlane.f32.xlu2 %v2711_v3  ;;  %v2714_v5 = vsel %vm469_vm0, %v5575_v46, -inf }
 0x3cf   : > { %v2103_v63 = vpop.xlane.xlu2 %2102  ;;  %v5587_v61 = vpop.eup %3699 }
 0x3d0   : > { %v2141_v27 = vsub.f32 %v5496_v55, %v2103_v63  ;;  %v2194_v59 = vsel %vm469_vm0, %v5587_v61, 0.0 }
 0x3d1   : > { %2715 = vmax.xlane.f32.xlu0 %v2714_v5 }
 0x3d2   : > { %v2161_v34 = vmul.f32 1.442695, %v2141_v27 }
 0x3d3   : > { %v5584_v20 = vpop.f32.mrf.mxu3 }
 0x3d4   : > { %2195 = vadd.xlane.f32.xlu2 %v2194_v59  ;;  %3701 = vpow2.f32 %v2161_v34  ;;  %v2717_v51 = vsel %vm469_vm0, %v5584_v20, -inf }
 0x3d7   : > { %v2106_v24 = vpop.xlane.xlu2 %2105 }
 0x3d8   : > { %v2142_v26 = vsub.f32 %v5503_v6, %v2106_v24 }
 0x3d9   : > { %2718 = vmax.xlane.f32.xlu0 %v2717_v51 }
 0x3da   : > { %v2163_v47 = vmul.f32 1.442695, %v2142_v26  ;;  %v5600_v54 = vpop.eup %3701 }
 0x3db   : > { %v5593_v35 = vpop.f32.mrf.mxu3  ;;  %v2197_v48 = vsel %vm469_vm0, %v5600_v54, 0.0 }
 0x3dc   : > { %v2720_v55 = vsel %vm469_vm0, %v5593_v35, -inf  ;;  %3703 = vpow2.f32 %v2163_v47 }
 0x3dd   : > { %2721 = vmax.xlane.f32.xlu1 %v2720_v55 }
 0x3df   : > { %v2109_v38 = vpop.xlane.xlu2 %2108 }
 0x3e0   : > { %v2143_v6 = vsub.f32 %v5507_v22, %v2109_v38 }
 0x3e2   : > { %v5606_v8 = vpop.eup %3703  ;;  %v2165_v25 = vmul.f32 1.442695, %v2143_v6 }
 0x3e3   : > { %v5604_v9 = vpop.f32.mrf.mxu3  ;;  %v2200_v52 = vsel %vm469_vm0, %v5606_v8, 0.0 }
 0x3e4   : > { %2201 = vadd.xlane.f32.xlu2 %v2200_v52  ;;  %3705 = vpow2.f32 %v2165_v25 }
 0x3e5   : > { %2198 = vadd.xlane.f32.xlu1 %v2197_v48 }
 0x3e7   : > { %v2112_v49 = vpop.xlane.xlu2 %2111 }
 0x3e8   : > { %v2144_v36 = vsub.f32 %v5514_v43, %v2112_v49 }
 0x3ea   : > { %v2167_v57 = vmul.f32 1.442695, %v2144_v36  ;;  %v5616_v44 = vpop.eup %3705 }
 0x3eb   : > { %v5611_v62 = vpop.f32.mrf.mxu3  ;;  %v2203_v19 = vsel %vm469_vm0, %v5616_v44, 0.0 }
 0x3ec   : > { %v2726_v41 = vsel %vm469_vm0, %v5611_v62, -inf  ;;  %3707 = vpow2.f32 %v2167_v57 }
 0x3ed   : > { %2727 = vmax.xlane.f32.xlu2 %v2726_v41 }
 0x3ef   : > { %v2115_v50 = vpop.xlane.xlu2 %2114 }
 0x3f0   : > { %v2145_v32 = vsub.f32 %v5518_v2, %v2115_v50 }
 0x3f2   : > { %v5620_v4 = vpop.eup %3707  ;;  %v2169_v33 = vmul.f32 1.442695, %v2145_v32 }
 0x3f3   : > { %v5618_v22 = vpop.f32.mrf.mxu3  ;;  %v2206_v43 = vsel %vm469_vm0, %v5620_v4, 0.0 }
 0x3f4   : > { %2207 = vadd.xlane.f32.xlu0 %v2206_v43  ;;  %3709 = vpow2.f32 %v2169_v33  ;;  %v2729_v42 = vsel %vm469_vm0, %v5618_v22, -inf }
 0x3f5   : > { %2204 = vadd.xlane.f32.xlu2 %v2203_v19 }
 0x3f7   : > { %v2118_v30 = vpop.xlane.xlu1 %2117 }
 0x3f8   : > { %v2146_v5 = vsub.f32 %v5525_v12, %v2118_v30  ;;  %v2723_v12 = vsel %vm469_vm0, %v5604_v9, -inf }
 0x3fa   : > { %v5635_v23 = vpop.eup %3709 }
 0x3fb   : > { %v5627_v31 = vpop.f32.mrf.mxu3  ;;  %v2209_v7 = vsel %vm469_vm0, %v5635_v23, 0.0 }
 0x3fc   : > { %v2732_v2 = vsel %vm469_vm0, %v5627_v31, -inf }
 0x3fd   : > { %2730 = vmax.xlane.f32.xlu2 %v2729_v42  ;;  %2733 = vmax.xlane.f32.xlu0 %v2732_v2 }
 0x3fe   : > { %2901 = vrot.lane.b32.xlu1 %v5346_v53, %s3991_s19 }
 0x3ff   : > { %v2121_v53 = vpop.xlane.xlu1 %2120 }
 0x405   : > { %2210 = vadd.xlane.f32.xlu0 %v2209_v7 }
 0x407   : > { %v2124_v15 = vpop.xlane.xlu2 %2123 }
 0x408   : > { %v2148_v14 = vsub.f32 %v5536_v58, %v2124_v15 }
 0x40a   : > { %v2175_v45 = vmul.f32 1.442695, %v2148_v14 }
 0x40c   : > { %3711 = vpow2.f32 %v2175_v45 }
 0x40f   : > { %v2127_v60 = vpop.xlane.xlu0 %2126 }
 0x410   : > { %v2149_v56 = vsub.f32 %v5540_v28, %v2127_v60  ;;  %v2171_v28 = vmul.f32 1.442695, %v2146_v5 }
 0x412   : > { %v5641_v18 = vpop.eup %3711  ;;  %v2177_v3 = vmul.f32 1.442695, %v2149_v56 }
 0x413   : > { %v2218_v0 = vsel %vm469_vm0, %v5641_v18, 0.0 }
 0x414   : > { %3713 = vpow2.f32 %v2177_v3  ;;  %2219 = vadd.xlane.f32.xlu2 %v2218_v0 }
 0x417   : > { %v2130_v63 = vpop.xlane.xlu1 %2129 }
 0x418   : > { %v2150_v27 = vsub.f32 %v5547_v39, %v2130_v63  ;;  %v2147_v39 = vsub.f32 %v5529_v37, %v2121_v53 }
 0x41a   : > { %v5646_v34 = vpop.eup %3713  ;;  %v2179_v58 = vmul.f32 1.442695, %v2150_v27  ;;  %v2173_v48 = vmul.f32 1.442695, %v2147_v39 }
 0x41b   : > { %v2221_v59 = vsel %vm469_vm0, %v5646_v34, 0.0 }
 0x41c   : > { %3715 = vpow2.f32 %v2179_v58  ;;  %2222 = vadd.xlane.f32.xlu2 %v2221_v59  ;;  %v5692_v58 = vpop.f32.mrf.mxu3 }
 0x41d   : > { %3717 = vpow2.f32 %v2171_v28 }
 0x41f   : > { %v2133_v24 = vpop.xlane.xlu1 %2132 }
 0x420   : > { %v2151_v26 = vsub.f32 %v5551_v11, %v2133_v24 }
 0x422   : > { %v5652_v55 = vpop.eup %3715  ;;  %v2181_v47 = vmul.f32 1.442695, %v2151_v26 }
 0x423   : > { %v2224_v51 = vsel %vm469_vm0, %v5652_v55, 0.0  ;;  %v5659_v6 = vpop.eup %3717 }
 0x424   : > { %3719 = vpow2.f32 %v2181_v47  ;;  %2225 = vadd.xlane.f32.xlu0 %v2224_v51  ;;  %v2212_v25 = vsel %vm469_vm0, %v5659_v6, 0.0 }
 0x425   : > { %3721 = vpow2.f32 %v2173_v48 }
 0x427   : > { %v2136_v38 = vpop.xlane.xlu2 %2135 }
 0x428   : > { %2724 = vmax.xlane.f32.xlu1 %v2723_v12  ;;  %v2152_v52 = vsub.f32 %v5559_v1, %v2136_v38  ;;  %v5701_v12 = vpop.f32.mrf.mxu3 }
 0x42a   : > { %v5661_v11 = vpop.eup %3719  ;;  %v2183_v49 = vmul.f32 1.442695, %v2152_v52 }
 0x42b   : > { %v2227_v37 = vsel %vm469_vm0, %v5661_v11, 0.0  ;;  %v5668_v57 = vpop.eup %3721 }
 0x42c   : > { %2228 = vadd.xlane.f32.xlu0 %v2227_v37  ;;  %3723 = vpow2.f32 %v2183_v49  ;;  %v2215_v41 = vsel %vm469_vm0, %v5668_v57, 0.0 }
 0x42f   : > { %v2187_v36 = vpop.xlane.xlu2 %2186 }
 0x430   : > { %2213 = vadd.xlane.f32.xlu1 %v2212_v25  ;;  %3725 = vrcp.f32 %v2187_v36 }
 0x432   : > { %v5674_v50 = vpop.eup %3723 }
 0x433   : > { %v2230_v19 = vsel %vm469_vm0, %v5674_v50, 0.0 }
 0x434   : > { %2899 = vrot.lane.b32.xlu2 %v5271_v29, %s3991_s19 }
 0x436   : > { %v3726_v32 = vpop.eup %3725 }
 0x437   : > { %v2190_v1 = vpop.xlane.xlu2 %2189  ;;  %v2249_v2 = vmul.f32 %v3726_v32, %v5564_v17 }
 0x438   : > { %2216 = vadd.xlane.f32.xlu1 %v2215_v41  ;;  %3727 = vrcp.f32 %v2190_v1 }
 0x43c   : > { %v2193_v33 = vpop.xlane.xlu0 %2192 }
 0x43d   : > { %3729 = vrcp.f32 %v2193_v33 }
 0x43e   : > { %v3728_v43 = vpop.eup %3727 }
 0x43f   : > { %v2713_v42 = vpop.xlane.xlu2 %2712  ;;  %v2250_v7 = vmul.f32 %v3728_v43, %v5571_v16 }
 0x440   : > { %2231 = vadd.xlane.f32.xlu1 %v2230_v19  ;;  %v2759_v53 = vsub.f32 %v5568_v10, %v2713_v42 }
 0x441   : > { %v2265_v30 = vpack.c.bf16 %v2250_v7, %v2249_v2 }
 0x442   : > { %v2775_v0 = vmul.f32 1.442695, %v2759_v53 }
 0x443   : > { %3541 = vmatmul.msk.bf16.vlgmr.msra.gmra.mxu2 %vm469_vm0, %v2265_v30  ;;  %v3730_v60 = vpop.eup %3729 }
 0x444   : > { %v2716_v29 = vpop.xlane.xlu0 %2715  ;;  %v2251_v17 = vmul.f32 %v3730_v60, %v5578_v40 }
 0x445   : > { %v2760_v14 = vsub.f32 %v5575_v46, %v2716_v29 }
 0x447   : > { %v2196_v15 = vpop.xlane.xlu2 %2195  ;;  %v2777_v45 = vmul.f32 1.442695, %v2760_v14 }
 0x448   : > { %3731 = vrcp.f32 %v2196_v15 }
 0x449   : > { %3733 = vpow2.f32 %v2777_v45 }
 0x44a   : > { %3735 = vpow2.f32 %v2775_v0 }
 0x44c   : > { %v2719_v47 = vpop.xlane.xlu0 %2718 }
 0x44d   : > { %v2761_v49 = vsub.f32 %v5584_v20, %v2719_v47 }
 0x44e   : > { %v3732_v3 = vpop.eup %3731 }
 0x44f   : > { %v2252_v16 = vmul.f32 %v3732_v3, %v5587_v61  ;;  %v5685_v27 = vpop.eup %3733  ;;  %v2779_v32 = vmul.f32 1.442695, %v2761_v49 }
 0x450   : > { %v2722_v56 = vpop.xlane.xlu1 %2721  ;;  %v2810_v46 = vsel %vm469_vm0, %v5685_v27, 0.0  ;;  %v5694_v61 = vpop.eup %3735 }
 0x451   : > { %v2266_v63 = vpack.c.bf16 %v2252_v16, %v2251_v17  ;;  %2811 = vadd.xlane.f32.xlu0 %v2810_v46  ;;  %v2762_v5 = vsub.f32 %v5593_v35, %v2722_v56  ;;  %v2807_v28 = vsel %vm469_vm0, %v5694_v61, 0.0  ;;  %v2738_v35 = vsel %vm469_vm0, %v5701_v12, -inf }
 0x453   : > { %3542 = vmatmul.msk.bf16.gmra.mxu2 %vm469_vm0, %v2266_v63  ;;  %v2781_v26 = vmul.f32 1.442695, %v2762_v5 }
 0x457   : > { %v2202_v40 = vpop.xlane.xlu2 %2201 }
 0x458   : > { %v2199_v10 = vpop.xlane.xlu1 %2198 }
 0x459   : > { %3737 = vrcp.f32 %v2199_v10  ;;  %2895 = vrot.lane.b32.xlu1 %v5445_v13, %s3991_s19 }
 0x45a   : > { %3739 = vrcp.f32 %v2202_v40 }
 0x45b   : > { %3741 = vpow2.f32 %v2781_v26 }
 0x45d   : > { %2808 = vadd.xlane.f32.xlu2 %v2807_v28 }
 0x45f   : > { %v3738_v59 = vpop.eup %3737 }
 0x460   : > { %v3740_v24 = vpop.eup %3739  ;;  %v2728_v39 = vpop.xlane.xlu2 %2727  ;;  %v2253_v51 = vmul.f32 %v3738_v59, %v5600_v54 }
 0x461   : > { %v2254_v13 = vmul.f32 %v3740_v24, %v5606_v8  ;;  %v5708_v37 = vpop.eup %3741  ;;  %v2764_v45 = vsub.f32 %v5611_v62, %v2728_v39 }
 0x462   : > { %v2816_v54 = vsel %vm469_vm0, %v5708_v37, 0.0 }
 0x463   : > { %v2267_v48 = vpack.c.bf16 %v2254_v13, %v2253_v51  ;;  %v2785_v60 = vmul.f32 1.442695, %v2764_v45 }
 0x465   : > { %3543 = vmatmul.msk.bf16.gmra.mxu2 %vm469_vm0, %v2267_v48  ;;  %2739 = vmax.xlane.f32.xlu2 %v2738_v35 }
 0x466   : > { %2897 = vrot.lane.b32.xlu0 %v5398_v21, %s3991_s19  ;;  %v5716_v21 = vpop.f32.mrf.mxu3 }
 0x467   : > { %v2208_v38 = vpop.xlane.xlu0 %2207  ;;  %v2741_v16 = vsel %vm469_vm0, %v5716_v21, -inf }
 0x468   : > { %v2205_v52 = vpop.xlane.xlu2 %2204  ;;  %3743 = vrcp.f32 %v2208_v38 }
 0x469   : > { %3745 = vrcp.f32 %v2205_v52 }
 0x46a   : > { %3747 = vpow2.f32 %v2779_v32 }
 0x46d   : > { %2817 = vadd.xlane.f32.xlu2 %v2816_v54 }
 0x46e   : > { %v3744_v25 = vpop.eup %3743  ;;  %v5722_v20 = vpop.f32.mrf.mxu3 }
 0x46f   : > { %v3746_v36 = vpop.eup %3745  ;;  %v2256_v41 = vmul.f32 %v3744_v25, %v5620_v4 }
 0x470   : > { %v2902_v8 = vpop.permute.xlu1 %2901  ;;  %v2255_v1 = vmul.f32 %v3746_v36, %v5616_v44  ;;  %v5718_v43 = vpop.eup %3747  ;;  %v2744_v44 = vsel %vm469_vm0, %v5722_v20, -inf }
 0x471   : > { %2935 = vmatpush.bf16.msrb.mxu2 %v2902_v8  ;;  %v2731_v33 = vpop.xlane.xlu2 %2730  ;;  %v2813_v42 = vsel %vm469_vm0, %v5718_v43, 0.0  ;;  %v2734_v2 = vpop.xlane.xlu0 %2733  ;;  %v3610_v8 = vld [vmem:[#allocation7 + $0x8] sm:$0xff] }
 0x472   : > { %v2268_v19 = vpack.c.bf16 %v2256_v41, %v2255_v1  ;;  %v2766_v4 = vsub.f32 %v5627_v31, %v2734_v2  ;;  %v2735_v31 = vsel %vm469_vm0, %v5692_v58, -inf  ;;  %v2765_v0 = vsub.f32 %v5618_v22, %v2731_v33  ;;  %3070 = vmatpush.bf16.msra.mxu1 %v3610_v8 }
 0x474   : > { %v2789_v30 = vmul.f32 1.442695, %v2766_v4  ;;  %v2787_v10 = vmul.f32 1.442695, %v2765_v0 }
 0x475   : > { %3544 = vmatmul.msk.bf16.gmra.mxu2 %vm469_vm0, %v2268_v19 }
 0x476   : > { %v5727_v29 = vpop.f32.mrf.mxu3  ;;  %3749 = vpow2.f32 %v2789_v30 }
 0x477   : > { %v2747_v15 = vsel %vm469_vm0, %v5727_v29, -inf  ;;  %3751 = vpow2.f32 %v2785_v60 }
 0x479   : > { %v2211_v40 = vpop.xlane.xlu0 %2210 }
 0x47c   : > { %v5736_v53 = vpop.eup %3749 }
 0x47d   : > { %v2828_v56 = vsel %vm469_vm0, %v5736_v53, 0.0  ;;  %v5746_v5 = vpop.eup %3751 }
 0x47e   : > { %v5744_v63 = vpop.f32.mrf.mxu3  ;;  %v2822_v59 = vsel %vm469_vm0, %v5746_v5, 0.0 }
 0x47f   : > { %v2750_v52 = vsel %vm469_vm0, %v5744_v63, -inf }
 0x483   : > { %2814 = vadd.xlane.f32.xlu1 %v2813_v42 }
 0x486   : > { %v5752_v28 = vpop.f32.mrf.mxu3 }
 0x487   : > { %v2220_v7 = vpop.xlane.xlu2 %2219  ;;  %v2753_v49 = vsel %vm469_vm0, %v5752_v28, -inf }
 0x48b   : > { %2745 = vmax.xlane.f32.xlu1 %v2744_v44 }
 0x48e   : > { %v5765_v54 = vpop.f32.mrf.mxu3 }
 0x48f   : > { %v5731_v14 = vpop.xlane.xlu2 %2222 }
 0x490   : > { %2736 = vmax.xlane.f32.xlu0 %v2735_v31 }
 0x493   : > { %2748 = vmax.xlane.f32.xlu1 %v2747_v15 }
 0x497   : > { %v2900_v3 = vpop.permute.xlu2 %2899  ;;  %v2226_v32 = vpop.xlane.xlu0 %2225 }
 0x498   : > { %2936 = vmatpush.bf16.msrb.mxu2 %v2900_v3  ;;  %2742 = vmax.xlane.f32.xlu0 %v2741_v16 }
 0x49b   : > { %v2725_v17 = vpop.xlane.xlu1 %2724  ;;  %2829 = vadd.xlane.f32.xlu1 %v2828_v56 }
 0x49c   : > { %v2763_v62 = vsub.f32 %v5604_v9, %v2725_v17 }
 0x49e   : > { %v2783_v46 = vmul.f32 1.442695, %v2763_v62 }
 0x4a0   : > { %3753 = vpow2.f32 %v2783_v46  ;;  %2823 = vadd.xlane.f32.xlu0 %v2822_v59 }
 0x4a1   : > { %3755 = vrcp.f32 %v2211_v40 }
 0x4a2   : > { %3757 = vpow2.f32 %v2787_v10 }
 0x4a3   : > { %v2214_v22 = vpop.xlane.xlu1 %2213 }
 0x4a4   : > { %3759 = vrcp.f32 %v2214_v22 }
 0x4a6   : > { %v5750_v9 = vpop.eup %3753 }
 0x4a7   : > { %v2819_v24 = vsel %vm469_vm0, %v5750_v9, 0.0  ;;  %v3756_v26 = vpop.eup %3755 }
 0x4a8   : > { %2820 = vadd.xlane.f32.xlu2 %v2819_v24  ;;  %v5756_v47 = vpop.eup %3757  ;;  %v2257_v51 = vmul.f32 %v3756_v26, %v5635_v23  ;;  %v2756_v23 = vsel %vm469_vm0, %v5765_v54, -inf }
 0x4a9   : > { %v2825_v48 = vsel %vm469_vm0, %v5756_v47, 0.0 }
 0x4aa   : > { %v3760_v39 = vpop.eup %3759  ;;  %2826 = vadd.xlane.f32.xlu0 %v2825_v48 }
 0x4ab   : > { %v2258_v13 = vmul.f32 %v3760_v39, %v5659_v6  ;;  %v2217_v35 = vpop.xlane.xlu1 %2216  ;;  %v3609_v6 = vld [vmem:[#allocation7] sm:$0xff] }
 0x4ac   : > { %3761 = vrcp.f32 %v2217_v35  ;;  %3071 = vmatpush.bf16.msra.mxu1 %v3609_v6 }
 0x4ad   : > { %v2269_v38 = vpack.c.bf16 %v2258_v13, %v2257_v51  ;;  %3763 = vrcp.f32 %v2220_v7  ;;  %v2229_v7 = vpop.xlane.xlu0 %2228 }
 0x4ae   : > { %3765 = vrcp.f32 %v2226_v32 }
 0x4af   : > { %3545 = vmatmul.msk.bf16.gmra.mxu2 %vm469_vm0, %v2269_v38  ;;  %3767 = vrcp.f32 %v5731_v14 }
 0x4b0   : > { %2751 = vmax.xlane.f32.xlu2 %v2750_v52 }
 0x4b2   : > { %2757 = vmax.xlane.f32.xlu0 %v2756_v23  ;;  %v3762_v25 = vpop.eup %3761 }
 0x4b3   : > { %v3764_v36 = vpop.eup %3763  ;;  %v2259_v41 = vmul.f32 %v3762_v25, %v5668_v57  ;;  %v2232_v30 = vpop.xlane.xlu1 %2231 }
 0x4b4   : > { %v2260_v1 = vmul.f32 %v3764_v36, %v5641_v18  ;;  %v3766_v33 = vpop.eup %3765  ;;  %3769 = vrcp.f32 %v2232_v30 }
 0x4b5   : > { %v3768_v42 = vpop.eup %3767  ;;  %v2262_v4 = vmul.f32 %v3766_v33, %v5652_v55  ;;  %3771 = vrcp.f32 %v2229_v7 }
 0x4b6   : > { %v2270_v19 = vpack.c.bf16 %v2260_v1, %v2259_v41  ;;  %v2261_v44 = vmul.f32 %v3768_v42, %v5646_v34 }
 0x4b8   : > { %2754 = vmax.xlane.f32.xlu2 %v2753_v49  ;;  %v2271_v15 = vpack.c.bf16 %v2262_v4, %v2261_v44 }
 0x4ba   : > { %v3770_v31 = vpop.eup %3769 }
 0x4bb   : > { %v3772_v60 = vpop.eup %3771  ;;  %v2264_v55 = vmul.f32 %v3770_v31, %v5674_v50 }
 0x4bc   : > { %v2263_v34 = vmul.f32 %v3772_v60, %v5661_v11 }
 0x4be   : > { %v2272_v17 = vpack.c.bf16 %v2264_v55, %v2263_v34 }
 0x4bf   : > { %3546 = vmatmul.msk.bf16.gmra.mxu2 %vm469_vm0, %v2270_v19 }
 0x4c4   : > { %v2812_v14 = vpop.xlane.xlu0 %2811 }
 0x4c6   : > { %v2318_v2 = vpop.f32.mrf.mxu2 }
 0x4cb   : > { %v2896_v46 = vpop.permute.xlu1 %2895 }
 0x4ce   : > { %v2320_v18 = vpop.f32.mrf.mxu2 }
 0x4cf   : > { %3547 = vmatmul.msk.bf16.gmra.mxu2 %vm469_vm0, %v2271_v15  ;;  %v2980_v57 = vpack.c.bf16 %v2320_v18, %v2318_v2 }
 0x4d0   : > { %v2809_v45 = vpop.xlane.xlu2 %2808 }
 0x4d1   : > { %3573 = vmatmul.msk.bf16.vlgmr.msra.gmra.mxu1 %vm2003_vm9, %v2980_v57  ;;  %3773 = vrcp.f32 %v2809_v45 }
 0x4d6   : > { %v2323_v56 = vpop.f32.mrf.mxu2 }
 0x4d7   : > { %v3774_v50 = vpop.eup %3773 }
 0x4d8   : > { %v2740_v3 = vpop.xlane.xlu2 %2739  ;;  %v2898_v62 = vpop.permute.xlu0 %2897  ;;  %v2871_v59 = vmul.f32 %v3774_v50, %v5694_v61 }
 0x4d9   : > { %v2768_v0 = vsub.f32 %v5701_v12, %v2740_v3  ;;  %2937 = vmatpush.bf16.msrb.mxu2 %v2898_v62 }
 0x4db   : > { %v2793_v16 = vmul.f32 1.442695, %v2768_v0 }
 0x4dd   : > { %3775 = vpow2.f32 %v2793_v16  ;;  %2938 = vmatpush.bf16.msrb.mxu2 %v2896_v46 }
 0x4de   : > { %v2325_v10 = vpop.f32.mrf.mxu2  ;;  %3777 = vrcp.f32 %v2812_v14 }
 0x4df   : > { %3548 = vmatmul.msk.bf16.gmra.mxu2 %vm469_vm0, %v2272_v17  ;;  %v2981_v40 = vpack.c.bf16 %v2325_v10, %v2323_v56 }
 0x4e0   : > { %v2818_v13 = vpop.xlane.xlu2 %2817 }
 0x4e1   : > { %3574 = vmatmul.msk.bf16.gmra.mxu1 %vm2003_vm9, %v2981_v40  ;;  %3779 = vrcp.f32 %v2818_v13 }
 0x4e3   : > { %v5784_v11 = vpop.eup %3775 }
 0x4e4   : > { %v2834_v12 = vsel %vm469_vm0, %v5784_v11, 0.0  ;;  %v3778_v22 = vpop.eup %3777 }
 0x4e5   : > { %2835 = vadd.xlane.f32.xlu2 %v2834_v12  ;;  %v2872_v26 = vmul.f32 %v3778_v22, %v5685_v27 }
 0x4e7   : > { %v2887_v39 = vpack.c.bf16 %v2872_v26, %v2871_v59  ;;  %v3780_v52 = vpop.eup %3779 }
 0x4e8   : > { %v2328_v24 = vpop.f32.mrf.mxu2  ;;  %v2874_v6 = vmul.f32 %v3780_v52, %v5708_v37 }
 0x4ef   : > { %3557 = vmatmul.msk.bf16.vlgmr.msrb.gmra.mxu2 %vm469_vm0, %v2887_v39 }
 0x4f0   : > { %v2330_v51 = vpop.f32.mrf.mxu2 }
 0x4f1   : > { %v2982_v48 = vpack.c.bf16 %v2330_v51, %v2328_v24 }
 0x4f3   : > { %3575 = vmatmul.msk.bf16.gmra.mxu1 %vm2003_vm9, %v2982_v48 }
 0x4f6   : > { %v2815_v35 = vpop.xlane.xlu1 %2814 }
 0x4f7   : > { %3781 = vrcp.f32 %v2815_v35 }
 0x4f8   : > { %v2333_v38 = vpop.f32.mrf.mxu2 }
 0x4fd   : > { %v3782_v8 = vpop.eup %3781 }
 0x4fe   : > { %v2746_v23 = vpop.xlane.xlu1 %2745  ;;  %v2873_v61 = vmul.f32 %v3782_v8, %v5718_v43 }
 0x4ff   : > { %v2770_v33 = vsub.f32 %v5722_v20, %v2746_v23 }
 0x500   : > { %v2888_v27 = vpack.c.bf16 %v2874_v6, %v2873_v61  ;;  %v2335_v25 = vpop.f32.mrf.mxu2  ;;  %v5848_v61 = vld [vmem:[%s6063_s5] ss:$0 sm:$0xff] }
 0x501   : > { %v2983_v49 = vpack.c.bf16 %v2335_v25, %v2333_v38  ;;  %v2797_v37 = vmul.f32 1.442695, %v2770_v33  ;;  %v5842_v38 = vld [vmem:[%s6062_s4] ss:$0 sm:$0xff] }
 0x502   : > { %3558 = vmatmul.msk.bf16.gmra.mxu2 %vm469_vm0, %v2888_v27  ;;  %v5853_v27 = vld [vmem:[%s6064_s6] ss:$0 sm:$0xff] }
 0x503   : > { %3576 = vmatmul.msk.bf16.gmra.mxu1 %vm2003_vm9, %v2983_v49  ;;  %v2737_v1 = vpop.xlane.xlu0 %2736 }
 0x504   : > { %v2767_v19 = vsub.f32 %v5692_v58, %v2737_v1 }
 0x506   : > { %v2749_v36 = vpop.xlane.xlu1 %2748  ;;  %v2791_v43 = vmul.f32 1.442695, %v2767_v19 }
 0x507   : > { %v2771_v41 = vsub.f32 %v5727_v29, %v2749_v36 }
 0x509   : > { %v2799_v32 = vmul.f32 1.442695, %v2771_v41 }
 0x50b   : > { %3783 = vpow2.f32 %v2799_v32  ;;  %v2743_v42 = vpop.xlane.xlu0 %2742  ;;  %v6413_v32 = vld [vmem:[#allocation12_spill] sm:$0xff] }
 0x50c   : > { %3785 = vpow2.f32 %v2791_v43  ;;  %v2769_v4 = vsub.f32 %v5716_v21, %v2743_v42 }
 0x50d   : > { %3787 = vpow2.f32 %v2797_v37 }
 0x50e   : > { %v2795_v29 = vmul.f32 1.442695, %v2769_v4  ;;  %v2830_v17 = vpop.xlane.xlu1 %2829 }
 0x510   : > { %3789 = vpow2.f32 %v2795_v29 }
 0x511   : > { %v5799_v2 = vpop.eup %3783 }
 0x512   : > { %v2843_v44 = vsel %vm469_vm0, %v5799_v2, 0.0  ;;  %v5804_v7 = vpop.eup %3785 }
 0x513   : > { %2844 = vadd.xlane.f32.xlu2 %v2843_v44  ;;  %v2831_v58 = vsel %vm469_vm0, %v5804_v7, 0.0  ;;  %v2824_v20 = vpop.xlane.xlu0 %2823  ;;  %v5808_v30 = vpop.eup %3787 }
 0x514   : > { %2832 = vadd.xlane.f32.xlu1 %v2831_v58  ;;  %3791 = vrcp.f32 %v2824_v20  ;;  %v2840_v18 = vsel %vm469_vm0, %v5808_v30, 0.0  ;;  %v6414_v58 = vld [vmem:[#allocation13_spill] sm:$0xff] }
 0x516   : > { %v5810_v15 = vpop.eup %3789 }
 0x517   : > { %v2837_v57 = vsel %vm469_vm0, %v5810_v15, 0.0 }
 0x518   : > { %2838 = vadd.xlane.f32.xlu0 %v2837_v57 }
 0x51a   : > { %v3792_v45 = vpop.eup %3791 }
 0x51b   : > { %v2821_v21 = vpop.xlane.xlu2 %2820  ;;  %v2876_v31 = vmul.f32 %v3792_v45, %v5746_v5 }
 0x51c   : > { %3793 = vrcp.f32 %v2821_v21  ;;  %2841 = vadd.xlane.f32.xlu1 %v2840_v18 }
 0x51d   : > { %v2827_v14 = vpop.xlane.xlu0 %2826 }
 0x51e   : > { %3795 = vrcp.f32 %v2827_v14  ;;  %v6415_v14 = vld [vmem:[#allocation14_spill] sm:$0xff] }
 0x522   : > { %v3794_v60 = vpop.eup %3793 }
 0x523   : > { %v2752_v56 = vpop.xlane.xlu2 %2751  ;;  %v2875_v55 = vmul.f32 %v3794_v60, %v5750_v9 }
 0x524   : > { %v2772_v34 = vsub.f32 %v5744_v63, %v2752_v56  ;;  %v3796_v40 = vpop.eup %3795 }
 0x525   : > { %v2889_v3 = vpack.c.bf16 %v2876_v31, %v2875_v55  ;;  %v2758_v62 = vpop.xlane.xlu0 %2757  ;;  %v2877_v22 = vmul.f32 %v3796_v40, %v5756_v47 }
 0x526   : > { %v2801_v0 = vmul.f32 1.442695, %v2772_v34  ;;  %v2774_v16 = vsub.f32 %v5765_v54, %v2758_v62 }
 0x527   : > { %3559 = vmatmul.msk.bf16.gmra.mxu2 %vm469_vm0, %v2889_v3 }
 0x528   : > { %3797 = vpow2.f32 %v2801_v0  ;;  %v2805_v10 = vmul.f32 1.442695, %v2774_v16 }
 0x529   : > { %3799 = vrcp.f32 %v2830_v17 }
 0x52a   : > { %3801 = vpow2.f32 %v2805_v10 }
 0x52b   : > { %v2755_v46 = vpop.xlane.xlu2 %2754 }
 0x52c   : > { %v2773_v5 = vsub.f32 %v5752_v28, %v2755_v46  ;;  %v6416_v46 = vld [vmem:[#allocation15_spill] sm:$0xff] }
 0x52e   : > { %v5822_v9 = vpop.eup %3797  ;;  %v2803_v63 = vmul.f32 1.442695, %v2773_v5 }
 0x52f   : > { %v2846_v50 = vsel %vm469_vm0, %v5822_v9, 0.0  ;;  %v3800_v12 = vpop.eup %3799 }
 0x530   : > { %3803 = vpow2.f32 %v2803_v63  ;;  %2847 = vadd.xlane.f32.xlu0 %v2846_v50  ;;  %v5827_v54 = vpop.eup %3801  ;;  %v2878_v24 = vmul.f32 %v3800_v12, %v5736_v53  ;;  %v6417_v12 = vld [vmem:[#allocation16_spill] sm:$0xff] }
 0x531   : > { %v2852_v28 = vsel %vm469_vm0, %v5827_v54, 0.0 }
 0x532   : > { %v2338_v59 = vpop.f32.mrf.mxu2  ;;  %v2890_v26 = vpack.c.bf16 %v2878_v24, %v2877_v22  ;;  %2853 = vadd.xlane.f32.xlu2 %v2852_v28 }
 0x536   : > { %v5832_v39 = vpop.eup %3803 }
 0x537   : > { %v2849_v51 = vsel %vm469_vm0, %v5832_v39, 0.0  ;;  %3560 = vmatmul.msk.bf16.gmra.mxu2 %vm469_vm0, %v2890_v26 }
 0x538   : > { %2850 = vadd.xlane.f32.xlu1 %v2849_v51 }
 0x53a   : > { %v2340_v13 = vpop.f32.mrf.mxu2 }
 0x53b   : > { %v2984_v47 = vpack.c.bf16 %v2340_v13, %v2338_v59 }
 0x53d   : > { %3577 = vmatmul.msk.bf16.gmra.mxu1 %vm2003_vm9, %v2984_v47 }
 0x542   : > { %v2343_v48 = vpop.f32.mrf.mxu2 }
 0x54a   : > { %v2345_v35 = vpop.f32.mrf.mxu2 }
 0x54b   : > { %v2985_v53 = vpack.c.bf16 %v2345_v35, %v2343_v48  ;;  %v6418_v48 = vld [vmem:[#allocation17_spill] sm:$0xff] }
 0x54d   : > { %3578 = vmatmul.msk.bf16.gmra.mxu1 %vm2003_vm9, %v2985_v53 }
 0x54e   : > { %v3073_v52 = vpop.f32.mrf.mxu1 }
 0x54f   : > { %v3074_v23 = vadd.f32 %v5842_v38, %v3073_v52 }
 0x551   : > { %v3154_v6 = vmul.f32 0.999995, %v3074_v23 }
 0x552   : > { %v2348_v8 = vpop.f32.mrf.mxu2 }
 0x553   : > { %v3189_v25 = vmul.f32 %v5848_v61, %v3154_v6 }
 0x555   : > { %v3225_v49 = vadd.f32 %v5853_v27, %v3189_v25 }
 0x556   : > { %v3075_v36 = vpop.f32.mrf.mxu1 }
 0x557   : > { %v3076_v1 = vadd.f32 %v5842_v38, %v3075_v36  ;;  %v3257_v19 = vadd.f32 %v3225_v49, %v6413_v32 }
 0x558   : > { %v2836_v52 = vpop.xlane.xlu2 %2835 }
 0x559   : > { %v3155_v43 = vmul.f32 0.999995, %v3076_v1  ;;  %3273 = vxpose.xlu0.b32.start [1/16] (narrow) %v3257_v19, 64  ;;  %3805 = vrcp.f32 %v2836_v52 }
 0x55a   : > { %v2350_v41 = vpop.f32.mrf.mxu2 }
 0x55b   : > { %v2986_v33 = vpack.c.bf16 %v2350_v41, %v2348_v8  ;;  %v3190_v37 = vmul.f32 %v5848_v61, %v3155_v43  ;;  %v6419_v41 = vld [vmem:[#allocation18_spill] sm:$0xff] }
 0x55d   : > { %3579 = vmatmul.msk.bf16.gmra.mxu1 %vm2003_vm9, %v2986_v33  ;;  %v3226_v42 = vadd.f32 %v5853_v27, %v3190_v37 }
 0x55e   : > { %v3078_v4 = vpop.f32.mrf.mxu1 }
 0x55f   : > { %v3079_v29 = vadd.f32 %v5842_v38, %v3078_v4  ;;  %v3258_v20 = vadd.f32 %v3226_v42, %v6414_v58  ;;  %v3806_v19 = vpop.eup %3805 }
 0x561   : > { %v3156_v21 = vmul.f32 0.999995, %v3079_v29  ;;  %3274 = vxpose.xlu0.b32.cont [2/16] (narrow) %v3258_v20, 64 }
 0x562   : > { %v2353_v44 = vpop.f32.mrf.mxu2 }
 0x563   : > { %v3191_v18 = vmul.f32 %v5848_v61, %v3156_v21 }
 0x565   : > { %v3227_v57 = vadd.f32 %v5853_v27, %v3191_v18 }
 0x566   : > { %v3080_v45 = vpop.f32.mrf.mxu1 }
 0x567   : > { %v3259_v31 = vadd.f32 %v3227_v57, %v6415_v14  ;;  %v3081_v56 = vadd.f32 %v5842_v38, %v3080_v45  ;;  %v6420_v57 = vld [vmem:[#allocation19_spill] sm:$0xff] }
 0x569   : > { %v3157_v34 = vmul.f32 0.999995, %v3081_v56  ;;  %3275 = vxpose.xlu0.b32.cont [3/16] (narrow) %v3259_v31, 64 }
 0x56a   : > { %v2355_v60 = vpop.f32.mrf.mxu2 }
 0x56b   : > { %v2987_v55 = vpack.c.bf16 %v2355_v60, %v2353_v44  ;;  %v3192_v3 = vmul.f32 %v5848_v61, %v3157_v34  ;;  %v2880_v44 = vmul.f32 %v3806_v19, %v5784_v11 }
 0x56d   : > { %3580 = vmatmul.msk.bf16.gmra.mxu1 %vm2003_vm9, %v2987_v55  ;;  %v3228_v0 = vadd.f32 %v5853_v27, %v3192_v3 }
 0x56f   : > { %v3260_v10 = vadd.f32 %v3228_v0, %v6416_v46 }
 0x570   : > { %v3083_v17 = vpop.f32.mrf.mxu1 }
 0x571   : > { %v3084_v16 = vadd.f32 %v5842_v38, %v3083_v17  ;;  %3276 = vxpose.xlu0.b32.cont [4/16] (narrow) %v3260_v10, 64 }
 0x572   : > { %v2940_v62 = vpop.f32.mrf.mxu2 }
 0x573   : > { %v3158_v5 = vmul.f32 0.999995, %v3084_v16 }
 0x575   : > { %v3193_v40 = vmul.f32 %v5848_v61, %v3158_v5 }
 0x577   : > { %v3229_v63 = vadd.f32 %v5853_v27, %v3193_v40 }
 0x578   : > { %v3085_v50 = vpop.f32.mrf.mxu1 }
 0x579   : > { %v3261_v22 = vadd.f32 %v3229_v63, %v6417_v12  ;;  %v3086_v24 = vadd.f32 %v5842_v38, %v3085_v50 }
 0x57a   : > { %v2942_v59 = vpop.f32.mrf.mxu2 }
 0x57b   : > { %v2988_v28 = vpack.c.bf16 %v2942_v59, %v2940_v62  ;;  %v3159_v26 = vmul.f32 0.999995, %v3086_v24  ;;  %3277 = vxpose.xlu0.b32.cont [5/16] (narrow) %v3261_v22, 64 }
 0x57d   : > { %3581 = vmatmul.msk.bf16.gmra.mxu1 %vm2003_vm9, %v2988_v28  ;;  %v3194_v51 = vmul.f32 %v5848_v61, %v3159_v26 }
 0x57f   : > { %v3230_v13 = vadd.f32 %v5853_v27, %v3194_v51 }
 0x580   : > { %v3088_v47 = vpop.f32.mrf.mxu1 }
 0x581   : > { %v3262_v35 = vadd.f32 %v3230_v13, %v6418_v48  ;;  %v3089_v53 = vadd.f32 %v5842_v38, %v3088_v47  ;;  %v6421_v13 = vld [vmem:[#allocation20_spill] sm:$0xff] }
 0x583   : > { %3278 = vxpose.xlu0.b32.cont [6/16] (narrow) %v3262_v35, 64  ;;  %v3160_v23 = vmul.f32 0.999995, %v3089_v53 }
 0x585   : > { %v2945_v8 = vpop.f32.mrf.mxu2  ;;  %v3195_v6 = vmul.f32 %v5848_v61, %v3160_v23 }
 0x586   : > { %v2845_v55 = vpop.xlane.xlu2 %2844 }
 0x587   : > { %v2833_v25 = vpop.xlane.xlu1 %2832  ;;  %v3231_v49 = vadd.f32 %v5853_v27, %v3195_v6 }
 0x588   : > { %3807 = vrcp.f32 %v2833_v25  ;;  %v3090_v36 = vpop.f32.mrf.mxu1 }
 0x589   : > { %v3263_v1 = vadd.f32 %v3231_v49, %v6419_v41  ;;  %v3091_v32 = vadd.f32 %v5842_v38, %v3090_v36 }
 0x58b   : > { %v3161_v43 = vmul.f32 0.999995, %v3091_v32  ;;  %3279 = vxpose.xlu0.b32.cont [7/16] (narrow) %v3263_v1, 64  ;;  %v2839_v21 = vpop.xlane.xlu0 %2838  ;;  %v6423_v1 = vld [vmem:[#allocation22_spill] sm:$0xff] }
 0x58d   : > { %v2947_v33 = vpop.f32.mrf.mxu2  ;;  %v3196_v4 = vmul.f32 %v5848_v61, %v3161_v43 }
 0x58e   : > { %v2989_v37 = vpack.c.bf16 %v2947_v33, %v2945_v8  ;;  %v3808_v42 = vpop.eup %3807  ;;  %v6422_v8 = vld [vmem:[#allocation21_spill] sm:$0xff] }
 0x58f   : > { %v2879_v29 = vmul.f32 %v3808_v42, %v5804_v7  ;;  %v3232_v58 = vadd.f32 %v5853_v27, %v3196_v4  ;;  %v2842_v20 = vpop.xlane.xlu1 %2841  ;;  %v6424_v4 = vld [vmem:[#allocation23_spill] sm:$0xff] }
 0x590   : > { %3582 = vmatmul.msk.bf16.gmra.mxu1 %vm2003_vm9, %v2989_v37  ;;  %3809 = vrcp.f32 %v2842_v20 }
 0x591   : > { %v2891_v18 = vpack.c.bf16 %v2880_v44, %v2879_v29  ;;  %v3264_v45 = vadd.f32 %v3232_v58, %v6420_v57  ;;  %3811 = vrcp.f32 %v2839_v21  ;;  %v6425_v57 = vld [vmem:[#allocation25_spill] sm:$0xff] }
 0x593   : > { %3561 = vmatmul.msk.bf16.gmra.mxu2 %vm469_vm0, %v2891_v18  ;;  %3280 = vxpose.xlu0.b32.cont [8/16] (narrow) %v3264_v45, 64 }
 0x596   : > { %v3810_v14 = vpop.eup %3809 }
 0x597   : > { %v3812_v31 = vpop.eup %3811  ;;  %v2882_v11 = vmul.f32 %v3810_v14, %v5808_v30 }
 0x598   : > { %v2881_v7 = vmul.f32 %v3812_v31, %v5810_v15 }
 0x59a   : > { %v2892_v60 = vpack.c.bf16 %v2882_v11, %v2881_v7 }
 0x5a3   : > { %v2848_v56 = vpop.xlane.xlu0 %2847  ;;  %3562 = vmatmul.msk.bf16.gmra.mxu2 %vm469_vm0, %v2892_v60 }
 0x5a4   : > { %3813 = vrcp.f32 %v2848_v56  ;;  %v6426_v56 = vld [vmem:[#allocation27_spill] sm:$0xff] }
 0x5a5   : > { %3815 = vrcp.f32 %v2845_v55  ;;  %v2854_v16 = vpop.xlane.xlu2 %2853 }
 0x5a6   : > { %3817 = vrcp.f32 %v2854_v16  ;;  %v6427_v16 = vld [vmem:[#allocation29_spill] sm:$0xff] }
 0x5aa   : > { %v2950_v34 = vpop.f32.mrf.mxu2  ;;  %v3814_v3 = vpop.eup %3813 }
 0x5ab   : > { %v3816_v0 = vpop.eup %3815  ;;  %v2884_v17 = vmul.f32 %v3814_v3, %v5822_v9  ;;  %v2851_v5 = vpop.xlane.xlu1 %2850 }
 0x5ac   : > { %v2883_v62 = vmul.f32 %v3816_v0, %v5799_v2  ;;  %3819 = vrcp.f32 %v2851_v5  ;;  %v3818_v63 = vpop.eup %3817 }
 0x5ad   : > { %v2886_v2 = vmul.f32 %v3818_v63, %v5827_v54  ;;  %v6428_v63 = vld [vmem:[#allocation30_spill] sm:$0xff] }
 0x5ae   : > { %v2893_v10 = vpack.c.bf16 %v2884_v17, %v2883_v62 }
 0x5b2   : > { %v2952_v46 = vpop.f32.mrf.mxu2  ;;  %v3820_v12 = vpop.eup %3819 }
 0x5b3   : > { %v2990_v30 = vpack.c.bf16 %v2952_v46, %v2950_v34  ;;  %3563 = vmatmul.msk.bf16.gmra.mxu2 %vm469_vm0, %v2893_v10  ;;  %v2885_v59 = vmul.f32 %v3820_v12, %v5832_v39 }
 0x5b5   : > { %3583 = vmatmul.msk.bf16.gmra.mxu1 %vm2003_vm9, %v2990_v30  ;;  %v2894_v51 = vpack.c.bf16 %v2886_v2, %v2885_v59 }
 0x5ba   : > { %v3093_v15 = vpop.f32.mrf.mxu1  ;;  %v2955_v40 = vpop.f32.mrf.mxu2 }
 0x5bb   : > { %v3094_v50 = vadd.f32 %v5842_v38, %v3093_v15 }
 0x5bd   : > { %v3162_v9 = vmul.f32 0.999995, %v3094_v50 }
 0x5bf   : > { %v3197_v22 = vmul.f32 %v5848_v61, %v3162_v9 }
 0x5c1   : > { %v3233_v24 = vadd.f32 %v5853_v27, %v3197_v22 }
 0x5c2   : > { %v3095_v28 = vpop.f32.mrf.mxu1  ;;  %v2957_v26 = vpop.f32.mrf.mxu2 }
 0x5c3   : > { %v3265_v47 = vadd.f32 %v3233_v24, %v6421_v13  ;;  %v3096_v48 = vadd.f32 %v5842_v38, %v3095_v28  ;;  %v2991_v35 = vpack.c.bf16 %v2957_v26, %v2955_v40  ;;  %3564 = vmatmul.msk.bf16.gmra.mxu2 %vm469_vm0, %v2894_v51  ;;  %v6429_v28 = vld [vmem:[#allocation24_spill] sm:$0xff] }
 0x5c5   : > { %v3163_v53 = vmul.f32 0.999995, %v3096_v48  ;;  %3281 = vxpose.xlu0.b32.cont [9/16] (narrow) %v3265_v47, 64  ;;  %3584 = vmatmul.msk.bf16.gmra.mxu1 %vm2003_vm9, %v2991_v35  ;;  %v6430_v48 = vld [vmem:[#allocation26_spill] sm:$0xff] }
 0x5c7   : > { %v3198_v54 = vmul.f32 %v5848_v61, %v3163_v53 }
 0x5c9   : > { %v3234_v39 = vadd.f32 %v5853_v27, %v3198_v54 }
 0x5ca   : > { %v3098_v52 = vpop.f32.mrf.mxu1 }
 0x5cb   : > { %v3266_v23 = vadd.f32 %v3234_v39, %v6422_v8  ;;  %v3099_v6 = vadd.f32 %v5842_v38, %v3098_v52 }
 0x5cd   : > { %v3164_v25 = vmul.f32 0.999995, %v3099_v6  ;;  %3282 = vxpose.xlu0.b32.cont [10/16] (narrow) %v3266_v23, 64  ;;  %v6431_v6 = vld [vmem:[#allocation28_spill] sm:$0xff] }
 0x5cf   : > { %v3199_v49 = vmul.f32 %v5848_v61, %v3164_v25 }
 0x5d1   : > { %v3235_v36 = vadd.f32 %v5853_v27, %v3199_v49 }
 0x5d2   : > { %v3100_v41 = vpop.f32.mrf.mxu1 }
 0x5d3   : > { %v3267_v32 = vadd.f32 %v3235_v36, %v6423_v1  ;;  %v3101_v19 = vadd.f32 %v5842_v38, %v3100_v41 }
 0x5d5   : > { %v3165_v33 = vmul.f32 0.999995, %v3101_v19  ;;  %3283 = vxpose.xlu0.b32.cont [11/16] (narrow) %v3267_v32, 64  ;;  %v6432_v19 = vld [vmem:[#allocation31_spill] sm:$0xff] }
 0x5d7   : > { %v3200_v43 = vmul.f32 %v5848_v61, %v3165_v33 }
 0x5d9   : > { %v3236_v37 = vadd.f32 %v5853_v27, %v3200_v43 }
 0x5da   : > { %v3103_v42 = vpop.f32.mrf.mxu1 }
 0x5db   : > { %v3268_v44 = vadd.f32 %v3236_v37, %v6424_v4  ;;  %v3104_v29 = vadd.f32 %v5842_v38, %v3103_v42 }
 0x5dd   : > { %v3166_v58 = vmul.f32 0.999995, %v3104_v29  ;;  %3284 = vxpose.xlu0.b32.cont [12/16] (narrow) %v3268_v44, 64 }
 0x5df   : > { %v3201_v20 = vmul.f32 %v5848_v61, %v3166_v58 }
 0x5e1   : > { %v3237_v21 = vadd.f32 %v5853_v27, %v3201_v20 }
 0x5e2   : > { %v3105_v18 = vpop.f32.mrf.mxu1 }
 0x5e3   : > { %v3269_v45 = vadd.f32 %v3237_v21, %v6425_v57  ;;  %v3106_v14 = vadd.f32 %v5842_v38, %v3105_v18 }
 0x5e5   : > { %v3167_v31 = vmul.f32 0.999995, %v3106_v14  ;;  %3285 = vxpose.xlu0.b32.cont [13/16] (narrow) %v3269_v45, 64  ;;  %v6433_v14 = vld [vmem:[#allocation32_spill] sm:$0xff] }
 0x5e7   : > { %v3202_v11 = vmul.f32 %v5848_v61, %v3167_v31 }
 0x5e9   : > { %v3238_v7 = vadd.f32 %v5853_v27, %v3202_v11 }
 0x5ea   : > { %v3108_v60 = vpop.f32.mrf.mxu1 }
 0x5eb   : > { %v3270_v55 = vadd.f32 %v3238_v7, %v6426_v56  ;;  %v3109_v34 = vadd.f32 %v5842_v38, %v3108_v60 }
 0x5ed   : > { %v3168_v3 = vmul.f32 0.999995, %v3109_v34  ;;  %3286 = vxpose.xlu0.b32.cont [14/16] (narrow) %v3270_v55, 64 }
 0x5ef   : > { %v3203_v0 = vmul.f32 %v5848_v61, %v3168_v3 }
 0x5f1   : > { %v3239_v17 = vadd.f32 %v5853_v27, %v3203_v0  ;;  %v6434_v0 = vld [vmem:[#allocation34_spill] sm:$0xff] }
 0x5f2   : > { %v3110_v62 = vpop.f32.mrf.mxu1 }
 0x5f3   : > { %v3271_v46 = vadd.f32 %v3239_v17, %v6427_v16  ;;  %v3111_v10 = vadd.f32 %v5842_v38, %v3110_v62 }
 0x5f5   : > { %v3169_v30 = vmul.f32 0.999995, %v3111_v10  ;;  %3287 = vxpose.xlu0.b32.cont [15/16] (narrow) %v3271_v46, 64 }
 0x5f7   : > { %v3204_v5 = vmul.f32 %v5848_v61, %v3169_v30 }
 0x5f9   : > { %v3240_v15 = vadd.f32 %v5853_v27, %v3204_v5 }
 0x5fa   : > { %v3113_v40 = vpop.f32.mrf.mxu1 }
 0x5fb   : > { %v3272_v50 = vadd.f32 %v3240_v15, %v6428_v63  ;;  %v3114_v12 = vadd.f32 %v5842_v38, %v3113_v40  ;;  %v6435_v15 = vld [vmem:[#allocation35_spill] sm:$0xff] }
 0x5fd   : > { %v3170_v9 = vmul.f32 0.999995, %v3114_v12  ;;  %3288 = vxpose.xlu0.b32.end [16/16] (narrow) %v3272_v50, 64 }
 0x5ff   : > { %v3205_v2 = vmul.f32 %v5848_v61, %v3170_v9 }
 0x601   : > { %v3241_v22 = vadd.f32 %v5853_v27, %v3205_v2 }
 0x602   : > { %v3115_v59 = vpop.f32.mrf.mxu1 }
 0x603   : > { %v3116_v24 = vadd.f32 %v5842_v38, %v3115_v59  ;;  %v3313_v26 = vadd.f32 %v3241_v22, %v6429_v28  ;;  %v6436_v59 = vld [vmem:[#allocation38_spill] sm:$0xff] }
 0x605   : > { %v3171_v51 = vmul.f32 0.999995, %v3116_v24  ;;  %3329 = vxpose.xlu1.b32.start [1/16] (narrow) %v3313_v26, 64 }
 0x607   : > { %v3206_v13 = vmul.f32 %v5848_v61, %v3171_v51 }
 0x609   : > { %v3242_v47 = vadd.f32 %v5853_v27, %v3206_v13 }
 0x60b   : > { %v3314_v35 = vadd.f32 %v3242_v47, %v6430_v48 }
 0x60d   : > { %v3118_v53 = vpop.f32.mrf.mxu1  ;;  %3330 = vxpose.xlu1.b32.cont [2/16] (narrow) %v3314_v35, 64  ;;  %v6437_v35 = vld [vmem:[#allocation40_spill] sm:$0xff] }
 0x60e   : > { %v3119_v54 = vadd.f32 %v5842_v38, %v3118_v53 }
 0x610   : > { %v3172_v39 = vmul.f32 0.999995, %v3119_v54 }
 0x612   : > { %v3207_v52 = vmul.f32 %v5848_v61, %v3172_v39 }
 0x614   : > { %v3243_v8 = vadd.f32 %v5853_v27, %v3207_v52 }
 0x615   : > { %v3120_v23 = vpop.f32.mrf.mxu1 }
 0x616   : > { %v3315_v25 = vadd.f32 %v3243_v8, %v6431_v6  ;;  %v3121_v49 = vadd.f32 %v5842_v38, %v3120_v23  ;;  %v2960_v36 = vpop.f32.mrf.mxu2  ;;  %v6438_v6 = vld [vmem:[#allocation46_spill] sm:$0xff] }
 0x618   : > { %v3173_v41 = vmul.f32 0.999995, %v3121_v49  ;;  %3331 = vxpose.xlu1.b32.cont [3/16] (narrow) %v3315_v25, 64 }
 0x61a   : > { %v3208_v1 = vmul.f32 %v5848_v61, %v3173_v41 }
 0x61c   : > { %v3244_v32 = vadd.f32 %v5853_v27, %v3208_v1 }
 0x61e   : > { %v3316_v33 = vadd.f32 %v3244_v32, %v6432_v19  ;;  %v2962_v43 = vpop.f32.mrf.mxu2  ;;  %v6439_v19 = vld [vmem:[#allocation52_spill] sm:$0xff] }
 0x61f   : > { %v2992_v37 = vpack.c.bf16 %v2962_v43, %v2960_v36 }
 0x620   : > { %3332 = vxpose.xlu1.b32.cont [4/16] (narrow) %v3316_v33, 64 }
 0x621   : > { %3585 = vmatmul.msk.bf16.gmra.mxu1 %vm2003_vm9, %v2992_v37 }
 0x626   : > { %v2965_v42 = vpop.f32.mrf.mxu2 }
 0x62e   : > { %v2967_v4 = vpop.f32.mrf.mxu2 }
 0x62f   : > { %v2993_v44 = vpack.c.bf16 %v2967_v4, %v2965_v42 }
 0x631   : > { %3586 = vmatmul.msk.bf16.gmra.mxu1 %vm2003_vm9, %v2993_v44 }
 0x632   : > { %v3123_v29 = vpop.f32.mrf.mxu1 }
 0x633   : > { %v3124_v58 = vadd.f32 %v5842_v38, %v3123_v29  ;;  %v6440_v29 = vld [vmem:[#allocation57_spill] sm:$0xff] }
 0x635   : > { %v3174_v20 = vmul.f32 0.999995, %v3124_v58 }
 0x636   : > { %v2970_v18 = vpop.f32.mrf.mxu2 }
 0x637   : > { %v3209_v21 = vmul.f32 %v5848_v61, %v3174_v20 }
 0x639   : > { %v3245_v57 = vadd.f32 %v5853_v27, %v3209_v21 }
 0x63a   : > { %v3125_v45 = vpop.f32.mrf.mxu1 }
 0x63b   : > { %v3317_v31 = vadd.f32 %v3245_v57, %v6433_v14  ;;  %v3126_v11 = vadd.f32 %v5842_v38, %v3125_v45 }
 0x63d   : > { %v3175_v7 = vmul.f32 0.999995, %v3126_v11  ;;  %3333 = vxpose.xlu1.b32.cont [5/16] (narrow) %v3317_v31, 64  ;;  %v6441_v31 = vld [vmem:[#allocation61_spill] sm:$0xff] }
 0x63e   : > { %v2972_v56 = vpop.f32.mrf.mxu2 }
 0x63f   : > { %v3210_v60 = vmul.f32 %v5848_v61, %v3175_v7  ;;  %v2994_v55 = vpack.c.bf16 %v2972_v56, %v2970_v18  ;;  %v3289_v18 = vpop.trf.xlu0 }
 0x640   : > { %3305 = vst [vmem:[%s5991_s12] sm:$0xff] %v3289_v18 }
 0x641   : > { %v3246_v34 = vadd.f32 %v5853_v27, %v3210_v60  ;;  %3587 = vmatmul.msk.bf16.gmra.mxu1 %vm2003_vm9, %v2994_v55 }
 0x642   : > { %v3128_v3 = vpop.f32.mrf.mxu1 }
 0x643   : > { %v3318_v17 = vadd.f32 %v3246_v34, %v6434_v0  ;;  %v3129_v62 = vadd.f32 %v5842_v38, %v3128_v3  ;;  %v6442_v3 = vld [vmem:[#allocation63_spill] sm:$0xff] }
 0x645   : > { %v3176_v16 = vmul.f32 0.999995, %v3129_v62  ;;  %3334 = vxpose.xlu1.b32.cont [6/16] (narrow) %v3318_v17, 64 }
 0x646   : > { %v2975_v10 = vpop.f32.mrf.mxu2 }
 0x647   : > { %v3211_v46 = vmul.f32 %v5848_v61, %v3176_v16 }
 0x649   : > { %v3247_v30 = vadd.f32 %v5853_v27, %v3211_v46 }
 0x64a   : > { %v3130_v5 = vpop.f32.mrf.mxu1 }
 0x64b   : > { %v3319_v40 = vadd.f32 %v3247_v30, %v6435_v15  ;;  %v3131_v63 = vadd.f32 %v5842_v38, %v3130_v5  ;;  %v6443_v30 = vld [vmem:[#allocation64_spill] sm:$0xff] }
 0x64d   : > { %v3177_v50 = vmul.f32 0.999995, %v3131_v63  ;;  %3335 = vxpose.xlu1.b32.cont [7/16] (narrow) %v3319_v40, 64 }
 0x64e   : > { %v2977_v9 = vpop.f32.mrf.mxu2 }
 0x64f   : > { %v3212_v12 = vmul.f32 %v5848_v61, %v3177_v50  ;;  %v2995_v2 = vpack.c.bf16 %v2977_v9, %v2975_v10 }
 0x651   : > { %v3248_v22 = vadd.f32 %v5853_v27, %v3212_v12  ;;  %3588 = vmatmul.msk.bf16.gmra.mxu1 %vm2003_vm9, %v2995_v2  ;;  %v6444_v12 = vld [vmem:[#allocation67_spill] sm:$0xff]  ;;  %v3290_v2 = vpop.trf.xlu0 }
 0x652   : > { %3306 = vst [vmem:[%s5991_s12 + $0x8] sm:$0xff] %v3290_v2 }
 0x653   : > { %v3320_v24 = vadd.f32 %v3248_v22, %v6436_v59 }
 0x655   : > { %3336 = vxpose.xlu1.b32.cont [8/16] (narrow) %v3320_v24, 64 }
 0x659   : > { %v3291_v22 = vpop.trf.xlu0 }
 0x65a   : > { %3307 = vst [vmem:[%s5991_s12 + $0x10] sm:$0xff] %v3291_v22 }
 0x69e   : > { %v3133_v28 = vpop.f32.mrf.mxu1 }
 0x69f   : > { %v3134_v26 = vadd.f32 %v5842_v38, %v3133_v28 }
 0x6a1   : > { %v3178_v51 = vmul.f32 0.999995, %v3134_v26 }
 0x6a3   : > { %v3213_v13 = vmul.f32 %v5848_v61, %v3178_v51 }
 0x6a5   : > { %v3249_v47 = vadd.f32 %v5853_v27, %v3213_v13 }
 0x6a6   : > { %v3135_v48 = vpop.f32.mrf.mxu1 }
 0x6a7   : > { %v3321_v53 = vadd.f32 %v3249_v47, %v6437_v35  ;;  %v3136_v54 = vadd.f32 %v5842_v38, %v3135_v48 }
 0x6a9   : > { %v3179_v39 = vmul.f32 0.999995, %v3136_v54  ;;  %3337 = vxpose.xlu1.b32.cont [9/16] (narrow) %v3321_v53, 64 }
 0x6ab   : > { %v3214_v52 = vmul.f32 %v5848_v61, %v3179_v39 }
 0x6ad   : > { %v3250_v8 = vadd.f32 %v5853_v27, %v3214_v52 }
 0x6ae   : > { %v3138_v23 = vpop.f32.mrf.mxu1 }
 0x6af   : > { %v3322_v25 = vadd.f32 %v3250_v8, %v6438_v6  ;;  %v3139_v49 = vadd.f32 %v5842_v38, %v3138_v23 }
 0x6b1   : > { %v3180_v36 = vmul.f32 0.999995, %v3139_v49  ;;  %3338 = vxpose.xlu1.b32.cont [10/16] (narrow) %v3322_v25, 64 }
 0x6b3   : > { %v3215_v41 = vmul.f32 %v5848_v61, %v3180_v36 }
 0x6b5   : > { %v3251_v1 = vadd.f32 %v5853_v27, %v3215_v41 }
 0x6b6   : > { %v3140_v32 = vpop.f32.mrf.mxu1 }
 0x6b7   : > { %v3323_v33 = vadd.f32 %v3251_v1, %v6439_v19  ;;  %v3141_v43 = vadd.f32 %v5842_v38, %v3140_v32 }
 0x6b9   : > { %v3181_v37 = vmul.f32 0.999995, %v3141_v43  ;;  %3339 = vxpose.xlu1.b32.cont [11/16] (narrow) %v3323_v33, 64 }
 0x6bb   : > { %v3216_v42 = vmul.f32 %v5848_v61, %v3181_v37 }
 0x6bd   : > { %v3252_v4 = vadd.f32 %v5853_v27, %v3216_v42 }
 0x6be   : > { %v3143_v44 = vpop.f32.mrf.mxu1 }
 0x6bf   : > { %v3324_v58 = vadd.f32 %v3252_v4, %v6440_v29  ;;  %v3144_v20 = vadd.f32 %v5842_v38, %v3143_v44 }
 0x6c1   : > { %v3182_v21 = vmul.f32 0.999995, %v3144_v20  ;;  %3340 = vxpose.xlu1.b32.cont [12/16] (narrow) %v3324_v58, 64 }
 0x6c3   : > { %v3217_v57 = vmul.f32 %v5848_v61, %v3182_v21 }
 0x6c5   : > { %v3253_v45 = vadd.f32 %v5853_v27, %v3217_v57 }
 0x6c6   : > { %v3145_v14 = vpop.f32.mrf.mxu1 }
 0x6c7   : > { %v3325_v11 = vadd.f32 %v3253_v45, %v6441_v31  ;;  %v3146_v7 = vadd.f32 %v5842_v38, %v3145_v14 }
 0x6c9   : > { %v3183_v60 = vmul.f32 0.999995, %v3146_v7  ;;  %3341 = vxpose.xlu1.b32.cont [13/16] (narrow) %v3325_v11, 64 }
 0x6cb   : > { %v3218_v56 = vmul.f32 %v5848_v61, %v3183_v60 }
 0x6cd   : > { %v3254_v55 = vadd.f32 %v5853_v27, %v3218_v56 }
 0x6ce   : > { %v3148_v34 = vpop.f32.mrf.mxu1 }
 0x6cf   : > { %v3326_v0 = vadd.f32 %v3254_v55, %v6442_v3  ;;  %v3149_v17 = vadd.f32 %v5842_v38, %v3148_v34 }
 0x6d1   : > { %v3184_v62 = vmul.f32 0.999995, %v3149_v17  ;;  %3342 = vxpose.xlu1.b32.cont [14/16] (narrow) %v3326_v0, 64 }
 0x6d3   : > { %v3219_v16 = vmul.f32 %v5848_v61, %v3184_v62 }
 0x6d5   : > { %v3255_v46 = vadd.f32 %v5853_v27, %v3219_v16 }
 0x6d6   : > { %v3150_v10 = vpop.f32.mrf.mxu1 }
 0x6d7   : > { %v3327_v5 = vadd.f32 %v3255_v46, %v6443_v30  ;;  %v3151_v15 = vadd.f32 %v5842_v38, %v3150_v10  ;;  %v3292_v38 = vpop.trf.xlu0 }
 0x6d8   : > { %3308 = vst [vmem:[%s5991_s12 + $0x18] sm:$0xff] %v3292_v38 }
 0x6d9   : > { %v3185_v40 = vmul.f32 0.999995, %v3151_v15  ;;  %3343 = vxpose.xlu1.b32.cont [15/16] (narrow) %v3327_v5, 64 }
 0x6db   : > { %v3220_v63 = vmul.f32 %v5848_v61, %v3185_v40 }
 0x6dd   : > { %v3256_v50 = vadd.f32 %v5853_v27, %v3220_v63 }
 0x6df   : > { %v3328_v9 = vadd.f32 %v3256_v50, %v6444_v12  ;;  %v3293_v59 = vpop.trf.xlu0 }
 0x6e0   : > { %3309 = vst [vmem:[%s5991_s12 + $0x20] sm:$0xff] %v3293_v59 }
 0x6e1   : > { %3344 = vxpose.xlu1.b32.end [16/16] (narrow) %v3328_v9, 64 }
 0x6e7   : > { %v3294_v27 = vpop.trf.xlu0 }
 0x6e8   : > { %3310 = vst [vmem:[%s5991_s12 + $0x28] sm:$0xff] %v3294_v27 }
 0x6ef   : > { %v3295_v28 = vpop.trf.xlu0 }
 0x6f0   : > { %3311 = vst [vmem:[%s5991_s12 + $0x30] sm:$0xff] %v3295_v28 }
 0x6f7   : > { %v3296_v51 = vpop.trf.xlu0 }
 0x6f8   : > { %3312 = vst [vmem:[%s5991_s12 + $0x38] sm:$0xff] %v3296_v51 }
 0x70d   : > { %v3345_v61 = vpop.trf.xlu1 }
 0x70e   : > { %3589 = vst [vmem:[%s5991_s12 + $0x40] sm:$0xff] %v3345_v61 }
 0x715   : > { %v3346_v24 = vpop.trf.xlu1 }
 0x716   : > { %3590 = vst [vmem:[%s5991_s12 + $0x48] sm:$0xff] %v3346_v24 }
 0x71d   : > { %v3347_v26 = vpop.trf.xlu1 }
 0x71e   : > { %3591 = vst [vmem:[%s5991_s12 + $0x50] sm:$0xff] %v3347_v26 }
 0x725   : > { %v3348_v13 = vpop.trf.xlu1 }
 0x726   : > { %3592 = vst [vmem:[%s5991_s12 + $0x58] sm:$0xff] %v3348_v13 }
 0x72d   : > { %v3349_v47 = vpop.trf.xlu1 }
 0x72e   : > { %3593 = vst [vmem:[%s5991_s12 + $0x60] sm:$0xff] %v3349_v47 }
 0x735   : > { %v3350_v48 = vpop.trf.xlu1 }
 0x736   : > { %3594 = vst [vmem:[%s5991_s12 + $0x68] sm:$0xff] %v3350_v48 }
 0x73d   : > { %v3351_v35 = vpop.trf.xlu1 }
 0x73e   : > { %3595 = vst [vmem:[%s5991_s12 + $0x70] sm:$0xff] %v3351_v35 }
 0x745   : > { %v3352_v53 = vpop.trf.xlu1 }
 0x746   : > { %3596 = vst [vmem:[%s5991_s12 + $0x78] sm:$0xff] %v3352_v53 }
 0x747   : > { %3940 = shalt.err (!%p3937_p10)
}
 0x748   : > { %s3993_s14 = smov 128   ;;  %s3994_s12 = smov 8  }
 0x749   : > { %3623 = dma.vmem_to_hbm [thread:$0]  (%p4101_p3), %s3385_s23, 2048, %s3387_s15, %s3371_s16, %s3993_s14, %s3993_s14, %s3994_s12  }
 0x74a PF: > { %s3401_s29 = sand.u32 1, %s3971_s24   ;;  %p6445_p12 = scmp.ge.s32.totalorder %s3983_s27, 2 }
 0x74b   : > { %s3402_s19 = scalar_lea.sflag [#allocation4], %s3401_s29 }
 0x74c   : > { %p3637_p13 = pnand %p6445_p12, %p4070_p6 }
 0x74e   : > { %p3638_p0 = pneg %p3637_p13 }
 0x750   : > { %3966 = dma.done.wait (%p3638_p0), %s3402_s19, 2048  }
 0x751   : > { %3968 = vsyncadd (%p3638_p0), %s3402_s19, 4294965248  ;;  %p21_p5 = scmp.ge.s32.totalorder %s4091_s22, 4   ;;  %s6446_s24 = smov %s3975_s25 }
 0x752   : > { %s6447_s25 = smov %s3979_s26  ;;  %s6448_s26 = smov %s4107_s10 }
 0x753   : > { %s6449_s27 = smov %s4091_s22  ;;  %23 = sbr.rel (!%p21_p5) target bundleno = 8 (0x8), region = 103 }
 0x758   :  { %3408 = vsyncpa [#allocation3], 1 }
 0x759   :  { %3410 = vsyncpa [#allocation3 + $0x1], 1 }
 0x75a   :  { %3411 = vsyncpa [#allocation6], 1 }
 0x75b   :  { %3412 = vsyncpa [#allocation4], 1 }
 0x75c   :  { %3414 = vsyncpa [#allocation4 + $0x1], 1 }

</bundles_post_ra>
